<compile_context>
chip_gen: v7x
topology: tpu7x:2x2x1
jax: 0.10.0
libtpu: 0.0.40
codegen_flags: <defaults>
</compile_context>

<pallas_src>
import math
import jax
import jax.numpy as jnp
from jax.experimental import pallas as pl
from jax.experimental.pallas import tpu as pltpu


# SMEM packing layout of the 5 tiny gating linears (17 f32 scalars).
# MUST stay in sync between fc_decoder_forward() packing and the kernel.
_WT0, _WT1, _WT2, _BT = 0, 1, 2, 3        # hs_transformer_linear (3 -> 1)
_WM0, _WM1, _WM2, _BM = 4, 5, 6, 7        # hs_mamba_linear       (3 -> 1)
_WP0, _WP1, _BP = 8, 9, 10                # hs_P_linear           (2 -> 1)
_WF0, _WF1, _BF = 11, 12, 13              # hs_F_linear           (2 -> 1)
_WC0, _WC1, _BC = 14, 15, 16              # hs_C_linear           (2 -> 1)


def _fc_decoder_kernel(hs_ref, gw_ref, w1_ref, b1_ref, w2_ref, b2_ref,
                       w3_ref, b3_ref, out_ref, gated_ref):
    # hs_ref:   (6, TB, D)  bf16   batch tile of the 6 fusion streams
    # gw_ref:   (17,)       f32    SMEM gating scalars
    # w1/w2/w3: bf16, b1/b2/b3: f32 (H2/C lane-padded in the wrapper)
    # out_ref:  (TB, C_pad) f32
    # gated_ref:(TB, 6*D)   bf16   VMEM scratch = matmul-1 LHS (no concat copy)
    D = hs_ref.shape[-1]

    # adaptive_avg_pool1d(output_size=1) == mean over D; accumulate in f32.
    avg = [jnp.mean(hs_ref[s].astype(jnp.float32), axis=-1, keepdims=True)
           for s in range(6)]
    a0, a1, a2, a3, a4, a5 = avg

    # Tiny gating linears (scalars from SMEM); all gating math in f32.
    hs_t = a0 * gw_ref[_WT0] + a1 * gw_ref[_WT1] + a2 * gw_ref[_WT2] + gw_ref[_BT]
    hs_m = a3 * gw_ref[_WM0] + a4 * gw_ref[_WM1] + a5 * gw_ref[_WM2] + gw_ref[_BM]
    hs_p = a0 * gw_ref[_WP0] + a3 * gw_ref[_WP1] + gw_ref[_BP]
    hs_f = a1 * gw_ref[_WF0] + a4 * gw_ref[_WF1] + gw_ref[_BF]
    hs_c = a2 * gw_ref[_WC0] + a5 * gw_ref[_WC1] + gw_ref[_BC]

    # softmax over the 2 encoder logits (transformer vs mamba) — exact divide,
    # the vectors are only (TB, 1).
    m_e = jnp.maximum(hs_t, hs_m)
    e_t = jnp.exp(hs_t - m_e)
    e_m = jnp.exp(hs_m - m_e)
    inv_e = 1.0 / (e_t + e_m)
    p_t = e_t * inv_e
    p_m = e_m * inv_e

    # softmax over the 3 aspect logits (P, F, C)
    m_a = jnp.maximum(jnp.maximum(hs_p, hs_f), hs_c)
    e_p = jnp.exp(hs_p - m_a)
    e_f = jnp.exp(hs_f - m_a)
    e_c = jnp.exp(hs_c - m_a)
    inv_a = 1.0 / (e_p + e_f + e_c)
    p_p = e_p * inv_a
    p_f = e_f * inv_a
    p_c = e_c * inv_a

    # Per-stream gates, matching sig_hs = cat(enc_t * aspect, enc_m * aspect).
    gates = (p_t * p_p, p_t * p_f, p_t * p_c,
             p_m * p_p, p_m * p_f, p_m * p_c)

    # flatten(1) of (sig * hs): write each gated stream straight into its lane
    # slice of the (TB, 6D) bf16 scratch (no jnp.concatenate materialization).
    for s in range(6):
        gated_ref[:, s * D:(s + 1) * D] = (
            gates[s] * hs_ref[s].astype(jnp.float32)).astype(jnp.bfloat16)

    # output_layer1: single K=6D MXU matmul, f32 accumulation; bias + ReLU fused.
    # TODO(synk): for very large D on v7x, split this matmul over a 6-long stream
    # grid axis (w1 block (D, H1), f32 accumulator scratch) to bound resident w1.
    h1 = jnp.maximum(
        jnp.dot(gated_ref[...], w1_ref[...], preferred_element_type=jnp.float32)
        + b1_ref[...], 0.0)                            # activation1 = ReLU
    # TODO(synk): dropout1/dropout2 are eval-mode identities (no RNG dropout here).

    h2 = jnp.dot(h1.astype(jnp.bfloat16), w2_ref[...],
                 preferred_element_type=jnp.float32) + b2_ref[...]
    h2 = jax.nn.sigmoid(h2)                            # activation2 (lane-dense, H2 padded)

    out = jnp.dot(h2.astype(jnp.bfloat16), w3_ref[...],
                  preferred_element_type=jnp.float32) + b3_ref[...]
    out_ref[...] = out.astype(out_ref.dtype)


def _round_up(x, m):
    return (x + m - 1) // m * m


def fc_decoder_forward(hs, params, *, block_b=512):
    """hs: (S=6, B, D) float32, seq-first, exactly as the PyTorch module receives it."""
    S, B, D = hs.shape
    assert S == 6, "FC_Decoder fusion expects exactly 6 streams (3 transformer + 3 mamba)"
    # Note: D (and H1=3D) should be a multiple of 128 for lane-dense matmuls;
    # other values still lower correctly (full-dim blocks) but use masked layouts.

    w1 = params["w1"]           # (6*D, H1)   row blocks ordered stream 0..5
    w2 = params["w2"]           # (H1, H2)
    w3 = params["w3"]           # (H2, C)
    H1 = w1.shape[1]
    H2 = w2.shape[1]
    C = w3.shape[1]

    # Batch tile: multiple of 128 when B allows (feeds the 128/256-wide MXU and
    # amortizes per-grid-step overhead); small B uses one tile rounded to 8.
    if B >= 128:
        TB = min(_round_up(block_b, 128), _round_up(B, 128))
    else:
        TB = _round_up(B, 8)
    B_pad = _round_up(B, TB)

    C_pad = _round_up(max(C, 128), 128)                 # lane-dense output store
    H2_pad = _round_up(max(H2, 128), 128)               # lane-dense layers 2/3

    # hs travels as bf16 (halves the dominant HBM stream); gating math upcasts
    # to f32 inside the kernel.
    hs_in = hs.astype(jnp.bfloat16)
    if B_pad != B:
        hs_in = jnp.pad(hs_in, ((0, 0), (0, B_pad - B), (0, 0)))

    # Pack the five tiny gating linears into one f32 scalar vector for SMEM.
    gw = jnp.concatenate([
        params["wt"][:, 0], params["bt"],
        params["wm"][:, 0], params["bm"],
        params["wp"][:, 0], params["bp"],
        params["wf"][:, 0], params["bf"],
        params["wc"][:, 0], params["bc"],
    ]).astype(jnp.float32)                               # (17,)

    # bf16 matmul operands (f32 accumulation in-kernel); biases stay f32.
    w1b = w1.astype(jnp.bfloat16)
    w2b = jnp.pad(w2, ((0, 0), (0, H2_pad - H2))).astype(jnp.bfloat16)
    # Padded w3 rows are zero, so the sigmoid(0)=0.5 activations of padded H2
    # columns contribute nothing to the output.
    w3b = jnp.pad(w3, ((0, H2_pad - H2), (0, C_pad - C))).astype(jnp.bfloat16)
    b1 = params["b1"][None, :].astype(jnp.float32)
    b2 = jnp.pad(params["b2"], ((0, H2_pad - H2),))[None, :].astype(jnp.float32)
    b3 = jnp.pad(params["b3"], ((0, C_pad - C),))[None, :].astype(jnp.float32)

    # Chip-aware scoped-VMEM budget: single-buffered resident weights +
    # double-buffered hs/out tiles + gated-LHS scratch + headroom.
    try:
        phys_vmem = int(pltpu.get_tpu_info().vmem_capacity_bytes)
    except Exception:                                    # conservative (v7x) fallback
        phys_vmem = 64 << 20
    weight_bytes = 2 * (w1b.size + w2b.size + w3b.size) + \
        4 * (b1.size + b2.size + b3.size)
    tile_bytes = 2 * (6 * TB * D * 2) + 2 * (TB * C_pad * 4) + TB * 6 * D * 2
    vmem_limit = int(min(max(weight_bytes + tile_bytes + (4 << 20), 32 << 20),
                         phys_vmem - (8 << 20)))

    cost = pl.CostEstimate(
        flops=int(2 * B_pad * (6 * D * H1 + H1 * H2_pad + H2_pad * C_pad)),
        transcendentals=int(B_pad * (H2_pad + 5)),
        bytes_accessed=int(hs_in.size * 2 + weight_bytes + B_pad * C_pad * 4),
    )

    def _wspec(shape, pipeline_mode):
        if pipeline_mode is None:
            return pl.BlockSpec(shape, lambda i: (0, 0))
        return pl.BlockSpec(shape, lambda i: (0, 0), pipeline_mode=pipeline_mode)

    def _call(single_buffer_weights):
        pm = pl.Buffered(1) if single_buffer_weights else None
        grid_spec = pltpu.PrefetchScalarGridSpec(
            num_scalar_prefetch=0,
            grid=(B_pad // TB,),
            in_specs=[
                pl.BlockSpec((6, TB, D), lambda i: (0, i, 0)),          # hs batch tile
                pl.BlockSpec(memory_space=pltpu.MemorySpace.SMEM),      # gating scalars
                _wspec((6 * D, H1), pm),                                # w1 (resident)
                _wspec((1, H1), pm),                                    # b1
                _wspec((H1, H2_pad), pm),                               # w2 (lane-padded)
                _wspec((1, H2_pad), pm),                                # b2
                _wspec((H2_pad, C_pad), pm),                            # w3 (lane-padded)
                _wspec((1, C_pad), pm),                                 # b3
            ],
            out_specs=pl.BlockSpec((TB, C_pad), lambda i: (i, 0)),
            scratch_shapes=[pltpu.VMEM((TB, 6 * D), jnp.bfloat16)],     # matmul-1 LHS
        )
        return pl.pallas_call(
            _fc_decoder_kernel,
            out_shape=jax.ShapeDtypeStruct((B_pad, C_pad), jnp.float32),
            grid_spec=grid_spec,
            compiler_params=pltpu.CompilerParams(
                dimension_semantics=("parallel",),   # megacore split on v7x
                vmem_limit_bytes=vmem_limit,
            ),
            cost_estimate=cost,
        )(hs_in, gw, w1b, b1, w2b, b2, w3b, b3)

    try:
        out_pad = _call(True)                   # single-buffered constant weights
    except Exception:
        # pipeline_mode=pl.Buffered(1) unsupported on this jax build; default
        # double-buffered weight blocks are still correct (just more VMEM).
        out_pad = _call(False)

    return out_pad[:B, :C]


def init_params(key, num_class, dim_feedforward, input_num=6):
    """Deterministic init mirroring the nn.Linear shapes (weights stored transposed)."""
    D = dim_feedforward
    half = input_num // 2                                # int(input_num / 2) = 3
    H1 = D * half                                        # output_layer1 out features
    H2 = D // half                                       # output_layer2 out features

    def linear(k, fan_in, fan_out):
        kw, kb = jax.random.split(k)
        bound = 1.0 / math.sqrt(fan_in)
        w = jax.random.uniform(kw, (fan_in, fan_out), jnp.float32, -bound, bound)
        b = jax.random.uniform(kb, (fan_out,), jnp.float32, -bound, bound)
        return w, b

    keys = jax.random.split(key, 8)
    w1, b1 = linear(keys[0], D * input_num, H1)          # Linear(6D, 3D)
    w2, b2 = linear(keys[1], H1, H2)                     # Linear(3D, D//3)
    w3, b3 = linear(keys[2], H2, num_class)              # Linear(D//3, num_class)
    wt, bt = linear(keys[3], 3, 1)                       # hs_transformer_linear
    wm, bm = linear(keys[4], 3, 1)                       # hs_mamba_linear
    wp, bp = linear(keys[5], 2, 1)                       # hs_P_linear
    wf, bf = linear(keys[6], 2, 1)                       # hs_F_linear
    wc, bc = linear(keys[7], 2, 1)                       # hs_C_linear

    return {"w1": w1, "b1": b1, "w2": w2, "b2": b2, "w3": w3, "b3": b3,
            "wt": wt, "bt": bt, "wm": wm, "bm": bm,
            "wp": wp, "bp": bp, "wf": wf, "bf": bf, "wc": wc, "bc": bc}


def ref_forward(hs, p):
    """Pure-JAX f32 reference matching the PyTorch forward line-by-line."""
    hsb = jnp.transpose(hs, (1, 0, 2))                   # (B, 6, D)
    B, S, D = hsb.shape
    avg = jnp.mean(hsb, axis=2)                          # (B, 6)
    hs_t = avg[:, :3] @ p["wt"] + p["bt"]
    hs_m = avg[:, 3:] @ p["wm"] + p["bm"]
    enc = jax.nn.softmax(jnp.concatenate([hs_t, hs_m], axis=1), axis=1)
    hs_p = jnp.stack([avg[:, 0], avg[:, 3]], axis=1) @ p["wp"] + p["bp"]
    hs_f = jnp.stack([avg[:, 1], avg[:, 4]], axis=1) @ p["wf"] + p["bf"]
    hs_c = jnp.stack([avg[:, 2], avg[:, 5]], axis=1) @ p["wc"] + p["bc"]
    asp = jax.nn.softmax(jnp.concatenate([hs_p, hs_f, hs_c], axis=1), axis=1)
    sig = jnp.concatenate([enc[:, 0:1] * asp, enc[:, 1:2] * asp], axis=1)[:, :, None]
    flat = (sig * hsb).reshape(B, S * D)
    h1 = jnp.maximum(flat @ p["w1"] + p["b1"], 0.0)
    h2 = jax.nn.sigmoid(h1 @ p["w2"] + p["b2"])
    return h2 @ p["w3"] + p["b3"]


if __name__ == "__main__":
    num_class = 10
    dim_feedforward = 128      # D % 128 == 0 -> lane-aligned fused layer-1 matmul
    batch = 24
    streams = 6                # 3 transformer + 3 mamba

    key = jax.random.PRNGKey(0)
    k_x, k_p = jax.random.split(key)
    hs = jax.random.normal(k_x, (streams, batch, dim_feedforward), dtype=jnp.float32)
    params = init_params(k_p, num_class, dim_feedforward, input_num=streams)

    out = fc_decoder_forward(hs, params)                 # single batch tile at B=24
    out = jax.block_until_ready(out)

    ref = ref_forward(hs, params)
    assert out.shape == (batch, num_class)
    max_err = float(jnp.max(jnp.abs(out - ref)))
    # bf16 hs + bf16 matmul operands (f32 accumulation) -> loose-but-tight tolerance.
    assert bool(jnp.allclose(out, ref, atol=3e-2, rtol=3e-2)), \
        f"kernel/reference mismatch, max abs err={max_err}"
    print("KERNEL_OK")
</pallas_src>

<mosaic_0001>
module attributes {stable_mosaic.version = 11 : i64} {
  func.func @_fc_decoder_kernel(%arg0: i32, %arg1: memref<6x24x128xbf16, #tpu.memory_space<vmem>>, %arg2: memref<17xf32, #tpu.memory_space<smem>>, %arg3: memref<768x384xbf16, #tpu.memory_space<vmem>>, %arg4: memref<1x384xf32, #tpu.memory_space<vmem>>, %arg5: memref<384x128xbf16, #tpu.memory_space<vmem>>, %arg6: memref<1x128xf32, #tpu.memory_space<vmem>>, %arg7: memref<128x128xbf16, #tpu.memory_space<vmem>>, %arg8: memref<1x128xf32, #tpu.memory_space<vmem>>, %arg9: memref<24x128xf32, #tpu.memory_space<vmem>>, %arg10: memref<24x768xbf16, #tpu.memory_space<vmem>>) attributes {dimension_semantics = [#tpu.dimension_semantics<parallel>], iteration_bounds = array<i64: 1>, scalar_prefetch = 0 : i64, scratch_operands = 1 : i64, tpu.core_type = #tpu.core_type<tc>, window_params = [{transform_indices = @transform_0, window_bounds = array<i64: 6, 24, 128>}, {transform_indices = @transform_1, window_bounds = array<i64: 17>}, {pipeline_mode = #tpu.pipeline_mode<synchronous>, transform_indices = @transform_2, window_bounds = array<i64: 768, 384>}, {pipeline_mode = #tpu.pipeline_mode<synchronous>, transform_indices = @transform_3, window_bounds = array<i64: 1, 384>}, {pipeline_mode = #tpu.pipeline_mode<synchronous>, transform_indices = @transform_4, window_bounds = array<i64: 384, 128>}, {pipeline_mode = #tpu.pipeline_mode<synchronous>, transform_indices = @transform_5, window_bounds = array<i64: 1, 128>}, {pipeline_mode = #tpu.pipeline_mode<synchronous>, transform_indices = @transform_6, window_bounds = array<i64: 128, 128>}, {pipeline_mode = #tpu.pipeline_mode<synchronous>, transform_indices = @transform_7, window_bounds = array<i64: 1, 128>}, {transform_indices = @transform_8, window_bounds = array<i64: 24, 128>}]} {
    %c0 = arith.constant 0 : index
    %c0_0 = arith.constant 0 : index
    %c0_1 = arith.constant 0 : index
    %0 = vector.load %arg1[%c0, %c0_0, %c0_1] : memref<6x24x128xbf16, #tpu.memory_space<vmem>>, vector<1x24x128xbf16>
    %1 = vector.shape_cast %0 : vector<1x24x128xbf16> to vector<24x128xbf16>
    %2 = arith.extf %1 : vector<24x128xbf16> to vector<24x128xf32>
    %cst = arith.constant dense<0.000000e+00> : vector<24xf32>
    %3 = vector.multi_reduction <add>, %2, %cst [1] : vector<24x128xf32> to vector<24xf32>
    %4 = vector.shape_cast %3 : vector<24xf32> to vector<24x1xf32>
    %cst_2 = arith.constant 1.280000e+02 : f32
    %5 = vector.broadcast %cst_2 : f32 to vector<24x1xf32>
    %6 = arith.divf %4, %5 : vector<24x1xf32>
    %c1 = arith.constant 1 : index
    %c0_3 = arith.constant 0 : index
    %c0_4 = arith.constant 0 : index
    %7 = vector.load %arg1[%c1, %c0_3, %c0_4] : memref<6x24x128xbf16, #tpu.memory_space<vmem>>, vector<1x24x128xbf16>
    %8 = vector.shape_cast %7 : vector<1x24x128xbf16> to vector<24x128xbf16>
    %9 = arith.extf %8 : vector<24x128xbf16> to vector<24x128xf32>
    %cst_5 = arith.constant dense<0.000000e+00> : vector<24xf32>
    %10 = vector.multi_reduction <add>, %9, %cst_5 [1] : vector<24x128xf32> to vector<24xf32>
    %11 = vector.shape_cast %10 : vector<24xf32> to vector<24x1xf32>
    %cst_6 = arith.constant 1.280000e+02 : f32
    %12 = vector.broadcast %cst_6 : f32 to vector<24x1xf32>
    %13 = arith.divf %11, %12 : vector<24x1xf32>
    %c2 = arith.constant 2 : index
    %c0_7 = arith.constant 0 : index
    %c0_8 = arith.constant 0 : index
    %14 = vector.load %arg1[%c2, %c0_7, %c0_8] : memref<6x24x128xbf16, #tpu.memory_space<vmem>>, vector<1x24x128xbf16>
    %15 = vector.shape_cast %14 : vector<1x24x128xbf16> to vector<24x128xbf16>
    %16 = arith.extf %15 : vector<24x128xbf16> to vector<24x128xf32>
    %cst_9 = arith.constant dense<0.000000e+00> : vector<24xf32>
    %17 = vector.multi_reduction <add>, %16, %cst_9 [1] : vector<24x128xf32> to vector<24xf32>
    %18 = vector.shape_cast %17 : vector<24xf32> to vector<24x1xf32>
    %cst_10 = arith.constant 1.280000e+02 : f32
    %19 = vector.broadcast %cst_10 : f32 to vector<24x1xf32>
    %20 = arith.divf %18, %19 : vector<24x1xf32>
    %c3 = arith.constant 3 : index
    %c0_11 = arith.constant 0 : index
    %c0_12 = arith.constant 0 : index
    %21 = vector.load %arg1[%c3, %c0_11, %c0_12] : memref<6x24x128xbf16, #tpu.memory_space<vmem>>, vector<1x24x128xbf16>
    %22 = vector.shape_cast %21 : vector<1x24x128xbf16> to vector<24x128xbf16>
    %23 = arith.extf %22 : vector<24x128xbf16> to vector<24x128xf32>
    %cst_13 = arith.constant dense<0.000000e+00> : vector<24xf32>
    %24 = vector.multi_reduction <add>, %23, %cst_13 [1] : vector<24x128xf32> to vector<24xf32>
    %25 = vector.shape_cast %24 : vector<24xf32> to vector<24x1xf32>
    %cst_14 = arith.constant 1.280000e+02 : f32
    %26 = vector.broadcast %cst_14 : f32 to vector<24x1xf32>
    %27 = arith.divf %25, %26 : vector<24x1xf32>
    %c4 = arith.constant 4 : index
    %c0_15 = arith.constant 0 : index
    %c0_16 = arith.constant 0 : index
    %28 = vector.load %arg1[%c4, %c0_15, %c0_16] : memref<6x24x128xbf16, #tpu.memory_space<vmem>>, vector<1x24x128xbf16>
    %29 = vector.shape_cast %28 : vector<1x24x128xbf16> to vector<24x128xbf16>
    %30 = arith.extf %29 : vector<24x128xbf16> to vector<24x128xf32>
    %cst_17 = arith.constant dense<0.000000e+00> : vector<24xf32>
    %31 = vector.multi_reduction <add>, %30, %cst_17 [1] : vector<24x128xf32> to vector<24xf32>
    %32 = vector.shape_cast %31 : vector<24xf32> to vector<24x1xf32>
    %cst_18 = arith.constant 1.280000e+02 : f32
    %33 = vector.broadcast %cst_18 : f32 to vector<24x1xf32>
    %34 = arith.divf %32, %33 : vector<24x1xf32>
    %c5 = arith.constant 5 : index
    %c0_19 = arith.constant 0 : index
    %c0_20 = arith.constant 0 : index
    %35 = vector.load %arg1[%c5, %c0_19, %c0_20] : memref<6x24x128xbf16, #tpu.memory_space<vmem>>, vector<1x24x128xbf16>
    %36 = vector.shape_cast %35 : vector<1x24x128xbf16> to vector<24x128xbf16>
    %37 = arith.extf %36 : vector<24x128xbf16> to vector<24x128xf32>
    %cst_21 = arith.constant dense<0.000000e+00> : vector<24xf32>
    %38 = vector.multi_reduction <add>, %37, %cst_21 [1] : vector<24x128xf32> to vector<24xf32>
    %39 = vector.shape_cast %38 : vector<24xf32> to vector<24x1xf32>
    %cst_22 = arith.constant 1.280000e+02 : f32
    %40 = vector.broadcast %cst_22 : f32 to vector<24x1xf32>
    %41 = arith.divf %39, %40 : vector<24x1xf32>
    %c0_23 = arith.constant 0 : index
    %42 = memref.load %arg2[%c0_23] : memref<17xf32, #tpu.memory_space<smem>>
    %43 = vector.broadcast %42 : f32 to vector<24x1xf32>
    %44 = arith.mulf %6, %43 : vector<24x1xf32>
    %c1_24 = arith.constant 1 : index
    %45 = memref.load %arg2[%c1_24] : memref<17xf32, #tpu.memory_space<smem>>
    %46 = vector.broadcast %45 : f32 to vector<24x1xf32>
    %47 = arith.mulf %13, %46 : vector<24x1xf32>
    %48 = arith.addf %44, %47 : vector<24x1xf32>
    %c2_25 = arith.constant 2 : index
    %49 = memref.load %arg2[%c2_25] : memref<17xf32, #tpu.memory_space<smem>>
    %50 = vector.broadcast %49 : f32 to vector<24x1xf32>
    %51 = arith.mulf %20, %50 : vector<24x1xf32>
    %52 = arith.addf %48, %51 : vector<24x1xf32>
    %c3_26 = arith.constant 3 : index
    %53 = memref.load %arg2[%c3_26] : memref<17xf32, #tpu.memory_space<smem>>
    %54 = vector.broadcast %53 : f32 to vector<24x1xf32>
    %55 = arith.addf %52, %54 : vector<24x1xf32>
    %c4_27 = arith.constant 4 : index
    %56 = memref.load %arg2[%c4_27] : memref<17xf32, #tpu.memory_space<smem>>
    %57 = vector.broadcast %56 : f32 to vector<24x1xf32>
    %58 = arith.mulf %27, %57 : vector<24x1xf32>
    %c5_28 = arith.constant 5 : index
    %59 = memref.load %arg2[%c5_28] : memref<17xf32, #tpu.memory_space<smem>>
    %60 = vector.broadcast %59 : f32 to vector<24x1xf32>
    %61 = arith.mulf %34, %60 : vector<24x1xf32>
    %62 = arith.addf %58, %61 : vector<24x1xf32>
    %c6 = arith.constant 6 : index
    %63 = memref.load %arg2[%c6] : memref<17xf32, #tpu.memory_space<smem>>
    %64 = vector.broadcast %63 : f32 to vector<24x1xf32>
    %65 = arith.mulf %41, %64 : vector<24x1xf32>
    %66 = arith.addf %62, %65 : vector<24x1xf32>
    %c7 = arith.constant 7 : index
    %67 = memref.load %arg2[%c7] : memref<17xf32, #tpu.memory_space<smem>>
    %68 = vector.broadcast %67 : f32 to vector<24x1xf32>
    %69 = arith.addf %66, %68 : vector<24x1xf32>
    %c8 = arith.constant 8 : index
    %70 = memref.load %arg2[%c8] : memref<17xf32, #tpu.memory_space<smem>>
    %71 = vector.broadcast %70 : f32 to vector<24x1xf32>
    %72 = arith.mulf %6, %71 : vector<24x1xf32>
    %c9 = arith.constant 9 : index
    %73 = memref.load %arg2[%c9] : memref<17xf32, #tpu.memory_space<smem>>
    %74 = vector.broadcast %73 : f32 to vector<24x1xf32>
    %75 = arith.mulf %27, %74 : vector<24x1xf32>
    %76 = arith.addf %72, %75 : vector<24x1xf32>
    %c10 = arith.constant 10 : index
    %77 = memref.load %arg2[%c10] : memref<17xf32, #tpu.memory_space<smem>>
    %78 = vector.broadcast %77 : f32 to vector<24x1xf32>
    %79 = arith.addf %76, %78 : vector<24x1xf32>
    %c11 = arith.constant 11 : index
    %80 = memref.load %arg2[%c11] : memref<17xf32, #tpu.memory_space<smem>>
    %81 = vector.broadcast %80 : f32 to vector<24x1xf32>
    %82 = arith.mulf %13, %81 : vector<24x1xf32>
    %c12 = arith.constant 12 : index
    %83 = memref.load %arg2[%c12] : memref<17xf32, #tpu.memory_space<smem>>
    %84 = vector.broadcast %83 : f32 to vector<24x1xf32>
    %85 = arith.mulf %34, %84 : vector<24x1xf32>
    %86 = arith.addf %82, %85 : vector<24x1xf32>
    %c13 = arith.constant 13 : index
    %87 = memref.load %arg2[%c13] : memref<17xf32, #tpu.memory_space<smem>>
    %88 = vector.broadcast %87 : f32 to vector<24x1xf32>
    %89 = arith.addf %86, %88 : vector<24x1xf32>
    %c14 = arith.constant 14 : index
    %90 = memref.load %arg2[%c14] : memref<17xf32, #tpu.memory_space<smem>>
    %91 = vector.broadcast %90 : f32 to vector<24x1xf32>
    %92 = arith.mulf %20, %91 : vector<24x1xf32>
    %c15 = arith.constant 15 : index
    %93 = memref.load %arg2[%c15] : memref<17xf32, #tpu.memory_space<smem>>
    %94 = vector.broadcast %93 : f32 to vector<24x1xf32>
    %95 = arith.mulf %41, %94 : vector<24x1xf32>
    %96 = arith.addf %92, %95 : vector<24x1xf32>
    %c16 = arith.constant 16 : index
    %97 = memref.load %arg2[%c16] : memref<17xf32, #tpu.memory_space<smem>>
    %98 = vector.broadcast %97 : f32 to vector<24x1xf32>
    %99 = arith.addf %96, %98 : vector<24x1xf32>
    %100 = arith.maximumf %55, %69 : vector<24x1xf32>
    %101 = arith.subf %55, %100 : vector<24x1xf32>
    %102 = math.exp %101 : vector<24x1xf32>
    %103 = arith.subf %69, %100 : vector<24x1xf32>
    %104 = math.exp %103 : vector<24x1xf32>
    %105 = arith.addf %102, %104 : vector<24x1xf32>
    %cst_29 = arith.constant 1.000000e+00 : f32
    %106 = vector.broadcast %cst_29 : f32 to vector<24x1xf32>
    %107 = arith.divf %106, %105 : vector<24x1xf32>
    %108 = arith.mulf %102, %107 : vector<24x1xf32>
    %109 = arith.mulf %104, %107 : vector<24x1xf32>
    %110 = arith.maximumf %79, %89 : vector<24x1xf32>
    %111 = arith.maximumf %110, %99 : vector<24x1xf32>
    %112 = arith.subf %79, %111 : vector<24x1xf32>
    %113 = math.exp %112 : vector<24x1xf32>
    %114 = arith.subf %89, %111 : vector<24x1xf32>
    %115 = math.exp %114 : vector<24x1xf32>
    %116 = arith.subf %99, %111 : vector<24x1xf32>
    %117 = math.exp %116 : vector<24x1xf32>
    %118 = arith.addf %113, %115 : vector<24x1xf32>
    %119 = arith.addf %118, %117 : vector<24x1xf32>
    %cst_30 = arith.constant 1.000000e+00 : f32
    %120 = vector.broadcast %cst_30 : f32 to vector<24x1xf32>
    %121 = arith.divf %120, %119 : vector<24x1xf32>
    %122 = arith.mulf %113, %121 : vector<24x1xf32>
    %123 = arith.mulf %115, %121 : vector<24x1xf32>
    %124 = arith.mulf %117, %121 : vector<24x1xf32>
    %125 = arith.mulf %108, %122 : vector<24x1xf32>
    %126 = arith.mulf %108, %123 : vector<24x1xf32>
    %127 = arith.mulf %108, %124 : vector<24x1xf32>
    %128 = arith.mulf %109, %122 : vector<24x1xf32>
    %129 = arith.mulf %109, %123 : vector<24x1xf32>
    %130 = arith.mulf %109, %124 : vector<24x1xf32>
    %c0_31 = arith.constant 0 : index
    %c0_32 = arith.constant 0 : index
    %c0_33 = arith.constant 0 : index
    %131 = vector.load %arg1[%c0_31, %c0_32, %c0_33] : memref<6x24x128xbf16, #tpu.memory_space<vmem>>, vector<1x24x128xbf16>
    %132 = vector.shape_cast %131 : vector<1x24x128xbf16> to vector<24x128xbf16>
    %133 = arith.extf %132 : vector<24x128xbf16> to vector<24x128xf32>
    %134 = vector.broadcast %125 : vector<24x1xf32> to vector<24x128xf32>
    %135 = arith.mulf %134, %133 : vector<24x128xf32>
    %136 = arith.truncf %135 : vector<24x128xf32> to vector<24x128xbf16>
    %c0_34 = arith.constant 0 : index
    %c0_35 = arith.constant 0 : index
    %137 = vector.load %arg10[%c0_34, %c0_35] : memref<24x768xbf16, #tpu.memory_space<vmem>>, vector<24x128xbf16>
    tpu.vector_store %arg10[%c0_34, %c0_35], %136 {strides = array<i32>} : memref<24x768xbf16, #tpu.memory_space<vmem>>, vector<24x128xbf16>,
    %c1_36 = arith.constant 1 : index
    %c0_37 = arith.constant 0 : index
    %c0_38 = arith.constant 0 : index
    %138 = vector.load %arg1[%c1_36, %c0_37, %c0_38] : memref<6x24x128xbf16, #tpu.memory_space<vmem>>, vector<1x24x128xbf16>
    %139 = vector.shape_cast %138 : vector<1x24x128xbf16> to vector<24x128xbf16>
    %140 = arith.extf %139 : vector<24x128xbf16> to vector<24x128xf32>
    %141 = vector.broadcast %126 : vector<24x1xf32> to vector<24x128xf32>
    %142 = arith.mulf %141, %140 : vector<24x128xf32>
    %143 = arith.truncf %142 : vector<24x128xf32> to vector<24x128xbf16>
    %c0_39 = arith.constant 0 : index
    %c128 = arith.constant 128 : index
    %144 = vector.load %arg10[%c0_39, %c128] : memref<24x768xbf16, #tpu.memory_space<vmem>>, vector<24x128xbf16>
    tpu.vector_store %arg10[%c0_39, %c128], %143 {strides = array<i32>} : memref<24x768xbf16, #tpu.memory_space<vmem>>, vector<24x128xbf16>,
    %c2_40 = arith.constant 2 : index
    %c0_41 = arith.constant 0 : index
    %c0_42 = arith.constant 0 : index
    %145 = vector.load %arg1[%c2_40, %c0_41, %c0_42] : memref<6x24x128xbf16, #tpu.memory_space<vmem>>, vector<1x24x128xbf16>
    %146 = vector.shape_cast %145 : vector<1x24x128xbf16> to vector<24x128xbf16>
    %147 = arith.extf %146 : vector<24x128xbf16> to vector<24x128xf32>
    %148 = vector.broadcast %127 : vector<24x1xf32> to vector<24x128xf32>
    %149 = arith.mulf %148, %147 : vector<24x128xf32>
    %150 = arith.truncf %149 : vector<24x128xf32> to vector<24x128xbf16>
    %c0_43 = arith.constant 0 : index
    %c256 = arith.constant 256 : index
    %151 = vector.load %arg10[%c0_43, %c256] : memref<24x768xbf16, #tpu.memory_space<vmem>>, vector<24x128xbf16>
    tpu.vector_store %arg10[%c0_43, %c256], %150 {strides = array<i32>} : memref<24x768xbf16, #tpu.memory_space<vmem>>, vector<24x128xbf16>,
    %c3_44 = arith.constant 3 : index
    %c0_45 = arith.constant 0 : index
    %c0_46 = arith.constant 0 : index
    %152 = vector.load %arg1[%c3_44, %c0_45, %c0_46] : memref<6x24x128xbf16, #tpu.memory_space<vmem>>, vector<1x24x128xbf16>
    %153 = vector.shape_cast %152 : vector<1x24x128xbf16> to vector<24x128xbf16>
    %154 = arith.extf %153 : vector<24x128xbf16> to vector<24x128xf32>
    %155 = vector.broadcast %128 : vector<24x1xf32> to vector<24x128xf32>
    %156 = arith.mulf %155, %154 : vector<24x128xf32>
    %157 = arith.truncf %156 : vector<24x128xf32> to vector<24x128xbf16>
    %c0_47 = arith.constant 0 : index
    %c384 = arith.constant 384 : index
    %158 = vector.load %arg10[%c0_47, %c384] : memref<24x768xbf16, #tpu.memory_space<vmem>>, vector<24x128xbf16>
    tpu.vector_store %arg10[%c0_47, %c384], %157 {strides = array<i32>} : memref<24x768xbf16, #tpu.memory_space<vmem>>, vector<24x128xbf16>,
    %c4_48 = arith.constant 4 : index
    %c0_49 = arith.constant 0 : index
    %c0_50 = arith.constant 0 : index
    %159 = vector.load %arg1[%c4_48, %c0_49, %c0_50] : memref<6x24x128xbf16, #tpu.memory_space<vmem>>, vector<1x24x128xbf16>
    %160 = vector.shape_cast %159 : vector<1x24x128xbf16> to vector<24x128xbf16>
    %161 = arith.extf %160 : vector<24x128xbf16> to vector<24x128xf32>
    %162 = vector.broadcast %129 : vector<24x1xf32> to vector<24x128xf32>
    %163 = arith.mulf %162, %161 : vector<24x128xf32>
    %164 = arith.truncf %163 : vector<24x128xf32> to vector<24x128xbf16>
    %c0_51 = arith.constant 0 : index
    %c512 = arith.constant 512 : index
    %165 = vector.load %arg10[%c0_51, %c512] : memref<24x768xbf16, #tpu.memory_space<vmem>>, vector<24x128xbf16>
    tpu.vector_store %arg10[%c0_51, %c512], %164 {strides = array<i32>} : memref<24x768xbf16, #tpu.memory_space<vmem>>, vector<24x128xbf16>,
    %c5_52 = arith.constant 5 : index
    %c0_53 = arith.constant 0 : index
    %c0_54 = arith.constant 0 : index
    %166 = vector.load %arg1[%c5_52, %c0_53, %c0_54] : memref<6x24x128xbf16, #tpu.memory_space<vmem>>, vector<1x24x128xbf16>
    %167 = vector.shape_cast %166 : vector<1x24x128xbf16> to vector<24x128xbf16>
    %168 = arith.extf %167 : vector<24x128xbf16> to vector<24x128xf32>
    %169 = vector.broadcast %130 : vector<24x1xf32> to vector<24x128xf32>
    %170 = arith.mulf %169, %168 : vector<24x128xf32>
    %171 = arith.truncf %170 : vector<24x128xf32> to vector<24x128xbf16>
    %c0_55 = arith.constant 0 : index
    %c640 = arith.constant 640 : index
    %172 = vector.load %arg10[%c0_55, %c640] : memref<24x768xbf16, #tpu.memory_space<vmem>>, vector<24x128xbf16>
    tpu.vector_store %arg10[%c0_55, %c640], %171 {strides = array<i32>} : memref<24x768xbf16, #tpu.memory_space<vmem>>, vector<24x128xbf16>,
    %c0_56 = arith.constant 0 : index
    %c0_57 = arith.constant 0 : index
    %173 = vector.load %arg10[%c0_56, %c0_57] : memref<24x768xbf16, #tpu.memory_space<vmem>>, vector<24x768xbf16>
    %c0_58 = arith.constant 0 : index
    %c0_59 = arith.constant 0 : index
    %174 = vector.load %arg3[%c0_58, %c0_59] : memref<768x384xbf16, #tpu.memory_space<vmem>>, vector<768x384xbf16>
    %cst_60 = arith.constant dense<0.000000e+00> : vector<24x384xf32>
    %175 = tpu.matmul %173, %174, %cst_60 {dimension_numbers = #tpu.dot_dimension_numbers<[1], [0], [0], [1], [0, 0, 1, 1], [], []>} : vector<24x768xbf16>, vector<768x384xbf16>, vector<24x384xf32> -> vector<24x384xf32>
    %c0_61 = arith.constant 0 : index
    %c0_62 = arith.constant 0 : index
    %176 = vector.load %arg4[%c0_61, %c0_62] : memref<1x384xf32, #tpu.memory_space<vmem>>, vector<1x384xf32>
    %177 = vector.broadcast %176 : vector<1x384xf32> to vector<24x384xf32>
    %178 = arith.addf %175, %177 : vector<24x384xf32>
    %cst_63 = arith.constant 0.000000e+00 : f32
    %179 = vector.broadcast %cst_63 : f32 to vector<24x384xf32>
    %180 = arith.maximumf %178, %179 : vector<24x384xf32>
    %181 = arith.truncf %180 : vector<24x384xf32> to vector<24x384xbf16>
    %c0_64 = arith.constant 0 : index
    %c0_65 = arith.constant 0 : index
    %182 = vector.load %arg5[%c0_64, %c0_65] : memref<384x128xbf16, #tpu.memory_space<vmem>>, vector<384x128xbf16>
    %cst_66 = arith.constant dense<0.000000e+00> : vector<24x128xf32>
    %183 = tpu.matmul %181, %182, %cst_66 {dimension_numbers = #tpu.dot_dimension_numbers<[1], [0], [0], [1], [0, 0, 1, 1], [], []>} : vector<24x384xbf16>, vector<384x128xbf16>, vector<24x128xf32> -> vector<24x128xf32>
    %c0_67 = arith.constant 0 : index
    %c0_68 = arith.constant 0 : index
    %184 = vector.load %arg6[%c0_67, %c0_68] : memref<1x128xf32, #tpu.memory_space<vmem>>, vector<1x128xf32>
    %185 = vector.broadcast %184 : vector<1x128xf32> to vector<24x128xf32>
    %186 = arith.addf %183, %185 : vector<24x128xf32>
    %187 = arith.negf %186 : vector<24x128xf32>
    %188 = math.exp %187 : vector<24x128xf32>
    %cst_69 = arith.constant 1.000000e+00 : f32
    %189 = vector.broadcast %cst_69 : f32 to vector<24x128xf32>
    %190 = arith.addf %189, %188 : vector<24x128xf32>
    %191 = arith.divf %189, %190 : vector<24x128xf32>
    %192 = arith.truncf %191 : vector<24x128xf32> to vector<24x128xbf16>
    %c0_70 = arith.constant 0 : index
    %c0_71 = arith.constant 0 : index
    %193 = vector.load %arg7[%c0_70, %c0_71] : memref<128x128xbf16, #tpu.memory_space<vmem>>, vector<128x128xbf16>
    %cst_72 = arith.constant dense<0.000000e+00> : vector<24x128xf32>
    %194 = tpu.matmul %192, %193, %cst_72 {dimension_numbers = #tpu.dot_dimension_numbers<[1], [0], [0], [1], [0, 0, 1, 1], [], []>} : vector<24x128xbf16>, vector<128x128xbf16>, vector<24x128xf32> -> vector<24x128xf32>
    %c0_73 = arith.constant 0 : index
    %c0_74 = arith.constant 0 : index
    %195 = vector.load %arg8[%c0_73, %c0_74] : memref<1x128xf32, #tpu.memory_space<vmem>>, vector<1x128xf32>
    %196 = vector.broadcast %195 : vector<1x128xf32> to vector<24x128xf32>
    %197 = arith.addf %194, %196 : vector<24x128xf32>
    %c0_75 = arith.constant 0 : index
    %c0_76 = arith.constant 0 : index
    %198 = vector.load %arg9[%c0_75, %c0_76] : memref<24x128xf32, #tpu.memory_space<vmem>>, vector<24x128xf32>
    tpu.vector_store %arg9[%c0_75, %c0_76], %197 {strides = array<i32>} : memref<24x128xf32, #tpu.memory_space<vmem>>, vector<24x128xf32>,
    return
  }
  func.func @transform_0(%arg0: i32) -> (i32, i32, i32) {
    %c0_i32 = arith.constant 0 : i32
    %c0_i32_0 = arith.constant 0 : i32
    %c0_i32_1 = arith.constant 0 : i32
    return %c0_i32, %arg0, %c0_i32_0 : i32, i32, i32
  }
  func.func @transform_1(%arg0: i32) -> i32 {
    %c0_i32 = arith.constant 0 : i32
    %c0_i32_0 = arith.constant 0 : i32
    return %c0_i32 : i32
  }
  func.func @transform_2(%arg0: i32) -> (i32, i32) {
    %c0_i32 = arith.constant 0 : i32
    %c0_i32_0 = arith.constant 0 : i32
    %c0_i32_1 = arith.constant 0 : i32
    return %c0_i32, %c0_i32_0 : i32, i32
  }
  func.func @transform_3(%arg0: i32) -> (i32, i32) {
    %c0_i32 = arith.constant 0 : i32
    %c0_i32_0 = arith.constant 0 : i32
    %c0_i32_1 = arith.constant 0 : i32
    return %c0_i32, %c0_i32_0 : i32, i32
  }
  func.func @transform_4(%arg0: i32) -> (i32, i32) {
    %c0_i32 = arith.constant 0 : i32
    %c0_i32_0 = arith.constant 0 : i32
    %c0_i32_1 = arith.constant 0 : i32
    return %c0_i32, %c0_i32_0 : i32, i32
  }
  func.func @transform_5(%arg0: i32) -> (i32, i32) {
    %c0_i32 = arith.constant 0 : i32
    %c0_i32_0 = arith.constant 0 : i32
    %c0_i32_1 = arith.constant 0 : i32
    return %c0_i32, %c0_i32_0 : i32, i32
  }
  func.func @transform_6(%arg0: i32) -> (i32, i32) {
    %c0_i32 = arith.constant 0 : i32
    %c0_i32_0 = arith.constant 0 : i32
    %c0_i32_1 = arith.constant 0 : i32
    return %c0_i32, %c0_i32_0 : i32, i32
  }
  func.func @transform_7(%arg0: i32) -> (i32, i32) {
    %c0_i32 = arith.constant 0 : i32
    %c0_i32_0 = arith.constant 0 : i32
    %c0_i32_1 = arith.constant 0 : i32
    return %c0_i32, %c0_i32_0 : i32, i32
  }
  func.func @transform_8(%arg0: i32) -> (i32, i32) {
    %c0_i32 = arith.constant 0 : i32
    %c0_i32_0 = arith.constant 0 : i32
    return %arg0, %c0_i32 : i32, i32
  }
}

module attributes {stable_mosaic.version = 11 : i64} {
  func.func @_fc_decoder_kernel(%arg0: i32, %arg1: memref<6x24x128xbf16, #tpu.memory_space<vmem>>, %arg2: memref<17xf32, #tpu.memory_space<smem>>, %arg3: memref<768x384xbf16, #tpu.memory_space<vmem>>, %arg4: memref<1x384xf32, #tpu.memory_space<vmem>>, %arg5: memref<384x128xbf16, #tpu.memory_space<vmem>>, %arg6: memref<1x128xf32, #tpu.memory_space<vmem>>, %arg7: memref<128x128xbf16, #tpu.memory_space<vmem>>, %arg8: memref<1x128xf32, #tpu.memory_space<vmem>>, %arg9: memref<24x128xf32, #tpu.memory_space<vmem>>, %arg10: memref<24x768xbf16, #tpu.memory_space<vmem>>) attributes {dimension_semantics = [#tpu.dimension_semantics<parallel>], iteration_bounds = array<i64: 1>, scalar_prefetch = 0 : i64, scratch_operands = 1 : i64, tpu.core_type = #tpu.core_type<tc>, window_params = [{transform_indices = @transform_0, window_bounds = array<i64: 6, 24, 128>}, {transform_indices = @transform_1, window_bounds = array<i64: 17>}, {pipeline_mode = #tpu.pipeline_mode<synchronous>, transform_indices = @transform_2, window_bounds = array<i64: 768, 384>}, {pipeline_mode = #tpu.pipeline_mode<synchronous>, transform_indices = @transform_3, window_bounds = array<i64: 1, 384>}, {pipeline_mode = #tpu.pipeline_mode<synchronous>, transform_indices = @transform_4, window_bounds = array<i64: 384, 128>}, {pipeline_mode = #tpu.pipeline_mode<synchronous>, transform_indices = @transform_5, window_bounds = array<i64: 1, 128>}, {pipeline_mode = #tpu.pipeline_mode<synchronous>, transform_indices = @transform_6, window_bounds = array<i64: 128, 128>}, {pipeline_mode = #tpu.pipeline_mode<synchronous>, transform_indices = @transform_7, window_bounds = array<i64: 1, 128>}, {transform_indices = @transform_8, window_bounds = array<i64: 24, 128>}]} {
    %c0 = arith.constant 0 : index
    %c0_0 = arith.constant 0 : index
    %c0_1 = arith.constant 0 : index
    %0 = vector.load %arg1[%c0, %c0_0, %c0_1] : memref<6x24x128xbf16, #tpu.memory_space<vmem>>, vector<1x24x128xbf16>
    %1 = vector.shape_cast %0 : vector<1x24x128xbf16> to vector<24x128xbf16>
    %2 = arith.extf %1 : vector<24x128xbf16> to vector<24x128xf32>
    %cst = arith.constant dense<0.000000e+00> : vector<24xf32>
    %3 = vector.multi_reduction <add>, %2, %cst [1] : vector<24x128xf32> to vector<24xf32>
    %4 = vector.shape_cast %3 : vector<24xf32> to vector<24x1xf32>
    %cst_2 = arith.constant 1.280000e+02 : f32
    %5 = vector.broadcast %cst_2 : f32 to vector<24x1xf32>
    %6 = arith.divf %4, %5 : vector<24x1xf32>
    %c1 = arith.constant 1 : index
    %c0_3 = arith.constant 0 : index
    %c0_4 = arith.constant 0 : index
    %7 = vector.load %arg1[%c1, %c0_3, %c0_4] : memref<6x24x128xbf16, #tpu.memory_space<vmem>>, vector<1x24x128xbf16>
    %8 = vector.shape_cast %7 : vector<1x24x128xbf16> to vector<24x128xbf16>
    %9 = arith.extf %8 : vector<24x128xbf16> to vector<24x128xf32>
    %cst_5 = arith.constant dense<0.000000e+00> : vector<24xf32>
    %10 = vector.multi_reduction <add>, %9, %cst_5 [1] : vector<24x128xf32> to vector<24xf32>
    %11 = vector.shape_cast %10 : vector<24xf32> to vector<24x1xf32>
    %cst_6 = arith.constant 1.280000e+02 : f32
    %12 = vector.broadcast %cst_6 : f32 to vector<24x1xf32>
    %13 = arith.divf %11, %12 : vector<24x1xf32>
    %c2 = arith.constant 2 : index
    %c0_7 = arith.constant 0 : index
    %c0_8 = arith.constant 0 : index
    %14 = vector.load %arg1[%c2, %c0_7, %c0_8] : memref<6x24x128xbf16, #tpu.memory_space<vmem>>, vector<1x24x128xbf16>
    %15 = vector.shape_cast %14 : vector<1x24x128xbf16> to vector<24x128xbf16>
    %16 = arith.extf %15 : vector<24x128xbf16> to vector<24x128xf32>
    %cst_9 = arith.constant dense<0.000000e+00> : vector<24xf32>
    %17 = vector.multi_reduction <add>, %16, %cst_9 [1] : vector<24x128xf32> to vector<24xf32>
    %18 = vector.shape_cast %17 : vector<24xf32> to vector<24x1xf32>
    %cst_10 = arith.constant 1.280000e+02 : f32
    %19 = vector.broadcast %cst_10 : f32 to vector<24x1xf32>
    %20 = arith.divf %18, %19 : vector<24x1xf32>
    %c3 = arith.constant 3 : index
    %c0_11 = arith.constant 0 : index
    %c0_12 = arith.constant 0 : index
    %21 = vector.load %arg1[%c3, %c0_11, %c0_12] : memref<6x24x128xbf16, #tpu.memory_space<vmem>>, vector<1x24x128xbf16>
    %22 = vector.shape_cast %21 : vector<1x24x128xbf16> to vector<24x128xbf16>
    %23 = arith.extf %22 : vector<24x128xbf16> to vector<24x128xf32>
    %cst_13 = arith.constant dense<0.000000e+00> : vector<24xf32>
    %24 = vector.multi_reduction <add>, %23, %cst_13 [1] : vector<24x128xf32> to vector<24xf32>
    %25 = vector.shape_cast %24 : vector<24xf32> to vector<24x1xf32>
    %cst_14 = arith.constant 1.280000e+02 : f32
    %26 = vector.broadcast %cst_14 : f32 to vector<24x1xf32>
    %27 = arith.divf %25, %26 : vector<24x1xf32>
    %c4 = arith.constant 4 : index
    %c0_15 = arith.constant 0 : index
    %c0_16 = arith.constant 0 : index
    %28 = vector.load %arg1[%c4, %c0_15, %c0_16] : memref<6x24x128xbf16, #tpu.memory_space<vmem>>, vector<1x24x128xbf16>
    %29 = vector.shape_cast %28 : vector<1x24x128xbf16> to vector<24x128xbf16>
    %30 = arith.extf %29 : vector<24x128xbf16> to vector<24x128xf32>
    %cst_17 = arith.constant dense<0.000000e+00> : vector<24xf32>
    %31 = vector.multi_reduction <add>, %30, %cst_17 [1] : vector<24x128xf32> to vector<24xf32>
    %32 = vector.shape_cast %31 : vector<24xf32> to vector<24x1xf32>
    %cst_18 = arith.constant 1.280000e+02 : f32
    %33 = vector.broadcast %cst_18 : f32 to vector<24x1xf32>
    %34 = arith.divf %32, %33 : vector<24x1xf32>
    %c5 = arith.constant 5 : index
    %c0_19 = arith.constant 0 : index
    %c0_20 = arith.constant 0 : index
    %35 = vector.load %arg1[%c5, %c0_19, %c0_20] : memref<6x24x128xbf16, #tpu.memory_space<vmem>>, vector<1x24x128xbf16>
    %36 = vector.shape_cast %35 : vector<1x24x128xbf16> to vector<24x128xbf16>
    %37 = arith.extf %36 : vector<24x128xbf16> to vector<24x128xf32>
    %cst_21 = arith.constant dense<0.000000e+00> : vector<24xf32>
    %38 = vector.multi_reduction <add>, %37, %cst_21 [1] : vector<24x128xf32> to vector<24xf32>
    %39 = vector.shape_cast %38 : vector<24xf32> to vector<24x1xf32>
    %cst_22 = arith.constant 1.280000e+02 : f32
    %40 = vector.broadcast %cst_22 : f32 to vector<24x1xf32>
    %41 = arith.divf %39, %40 : vector<24x1xf32>
    %c0_23 = arith.constant 0 : index
    %42 = memref.load %arg2[%c0_23] : memref<17xf32, #tpu.memory_space<smem>>
    %43 = vector.broadcast %42 : f32 to vector<24x1xf32>
    %44 = arith.mulf %6, %43 : vector<24x1xf32>
    %c1_24 = arith.constant 1 : index
    %45 = memref.load %arg2[%c1_24] : memref<17xf32, #tpu.memory_space<smem>>
    %46 = vector.broadcast %45 : f32 to vector<24x1xf32>
    %47 = arith.mulf %13, %46 : vector<24x1xf32>
    %48 = arith.addf %44, %47 : vector<24x1xf32>
    %c2_25 = arith.constant 2 : index
    %49 = memref.load %arg2[%c2_25] : memref<17xf32, #tpu.memory_space<smem>>
    %50 = vector.broadcast %49 : f32 to vector<24x1xf32>
    %51 = arith.mulf %20, %50 : vector<24x1xf32>
    %52 = arith.addf %48, %51 : vector<24x1xf32>
    %c3_26 = arith.constant 3 : index
    %53 = memref.load %arg2[%c3_26] : memref<17xf32, #tpu.memory_space<smem>>
    %54 = vector.broadcast %53 : f32 to vector<24x1xf32>
    %55 = arith.addf %52, %54 : vector<24x1xf32>
    %c4_27 = arith.constant 4 : index
    %56 = memref.load %arg2[%c4_27] : memref<17xf32, #tpu.memory_space<smem>>
    %57 = vector.broadcast %56 : f32 to vector<24x1xf32>
    %58 = arith.mulf %27, %57 : vector<24x1xf32>
    %c5_28 = arith.constant 5 : index
    %59 = memref.load %arg2[%c5_28] : memref<17xf32, #tpu.memory_space<smem>>
    %60 = vector.broadcast %59 : f32 to vector<24x1xf32>
    %61 = arith.mulf %34, %60 : vector<24x1xf32>
    %62 = arith.addf %58, %61 : vector<24x1xf32>
    %c6 = arith.constant 6 : index
    %63 = memref.load %arg2[%c6] : memref<17xf32, #tpu.memory_space<smem>>
    %64 = vector.broadcast %63 : f32 to vector<24x1xf32>
    %65 = arith.mulf %41, %64 : vector<24x1xf32>
    %66 = arith.addf %62, %65 : vector<24x1xf32>
    %c7 = arith.constant 7 : index
    %67 = memref.load %arg2[%c7] : memref<17xf32, #tpu.memory_space<smem>>
    %68 = vector.broadcast %67 : f32 to vector<24x1xf32>
    %69 = arith.addf %66, %68 : vector<24x1xf32>
    %c8 = arith.constant 8 : index
    %70 = memref.load %arg2[%c8] : memref<17xf32, #tpu.memory_space<smem>>
    %71 = vector.broadcast %70 : f32 to vector<24x1xf32>
    %72 = arith.mulf %6, %71 : vector<24x1xf32>
    %c9 = arith.constant 9 : index
    %73 = memref.load %arg2[%c9] : memref<17xf32, #tpu.memory_space<smem>>
    %74 = vector.broadcast %73 : f32 to vector<24x1xf32>
    %75 = arith.mulf %27, %74 : vector<24x1xf32>
    %76 = arith.addf %72, %75 : vector<24x1xf32>
    %c10 = arith.constant 10 : index
    %77 = memref.load %arg2[%c10] : memref<17xf32, #tpu.memory_space<smem>>
    %78 = vector.broadcast %77 : f32 to vector<24x1xf32>
    %79 = arith.addf %76, %78 : vector<24x1xf32>
    %c11 = arith.constant 11 : index
    %80 = memref.load %arg2[%c11] : memref<17xf32, #tpu.memory_space<smem>>
    %81 = vector.broadcast %80 : f32 to vector<24x1xf32>
    %82 = arith.mulf %13, %81 : vector<24x1xf32>
    %c12 = arith.constant 12 : index
    %83 = memref.load %arg2[%c12] : memref<17xf32, #tpu.memory_space<smem>>
    %84 = vector.broadcast %83 : f32 to vector<24x1xf32>
    %85 = arith.mulf %34, %84 : vector<24x1xf32>
    %86 = arith.addf %82, %85 : vector<24x1xf32>
    %c13 = arith.constant 13 : index
    %87 = memref.load %arg2[%c13] : memref<17xf32, #tpu.memory_space<smem>>
    %88 = vector.broadcast %87 : f32 to vector<24x1xf32>
    %89 = arith.addf %86, %88 : vector<24x1xf32>
    %c14 = arith.constant 14 : index
    %90 = memref.load %arg2[%c14] : memref<17xf32, #tpu.memory_space<smem>>
    %91 = vector.broadcast %90 : f32 to vector<24x1xf32>
    %92 = arith.mulf %20, %91 : vector<24x1xf32>
    %c15 = arith.constant 15 : index
    %93 = memref.load %arg2[%c15] : memref<17xf32, #tpu.memory_space<smem>>
    %94 = vector.broadcast %93 : f32 to vector<24x1xf32>
    %95 = arith.mulf %41, %94 : vector<24x1xf32>
    %96 = arith.addf %92, %95 : vector<24x1xf32>
    %c16 = arith.constant 16 : index
    %97 = memref.load %arg2[%c16] : memref<17xf32, #tpu.memory_space<smem>>
    %98 = vector.broadcast %97 : f32 to vector<24x1xf32>
    %99 = arith.addf %96, %98 : vector<24x1xf32>
    %100 = arith.maximumf %55, %69 : vector<24x1xf32>
    %101 = arith.subf %55, %100 : vector<24x1xf32>
    %102 = math.exp %101 : vector<24x1xf32>
    %103 = arith.subf %69, %100 : vector<24x1xf32>
    %104 = math.exp %103 : vector<24x1xf32>
    %105 = arith.addf %102, %104 : vector<24x1xf32>
    %cst_29 = arith.constant 1.000000e+00 : f32
    %106 = vector.broadcast %cst_29 : f32 to vector<24x1xf32>
    %107 = arith.divf %106, %105 : vector<24x1xf32>
    %108 = arith.mulf %102, %107 : vector<24x1xf32>
    %109 = arith.mulf %104, %107 : vector<24x1xf32>
    %110 = arith.maximumf %79, %89 : vector<24x1xf32>
    %111 = arith.maximumf %110, %99 : vector<24x1xf32>
    %112 = arith.subf %79, %111 : vector<24x1xf32>
    %113 = math.exp %112 : vector<24x1xf32>
    %114 = arith.subf %89, %111 : vector<24x1xf32>
    %115 = math.exp %114 : vector<24x1xf32>
    %116 = arith.subf %99, %111 : vector<24x1xf32>
    %117 = math.exp %116 : vector<24x1xf32>
    %118 = arith.addf %113, %115 : vector<24x1xf32>
    %119 = arith.addf %118, %117 : vector<24x1xf32>
    %cst_30 = arith.constant 1.000000e+00 : f32
    %120 = vector.broadcast %cst_30 : f32 to vector<24x1xf32>
    %121 = arith.divf %120, %119 : vector<24x1xf32>
    %122 = arith.mulf %113, %121 : vector<24x1xf32>
    %123 = arith.mulf %115, %121 : vector<24x1xf32>
    %124 = arith.mulf %117, %121 : vector<24x1xf32>
    %125 = arith.mulf %108, %122 : vector<24x1xf32>
    %126 = arith.mulf %108, %123 : vector<24x1xf32>
    %127 = arith.mulf %108, %124 : vector<24x1xf32>
    %128 = arith.mulf %109, %122 : vector<24x1xf32>
    %129 = arith.mulf %109, %123 : vector<24x1xf32>
    %130 = arith.mulf %109, %124 : vector<24x1xf32>
    %c0_31 = arith.constant 0 : index
    %c0_32 = arith.constant 0 : index
    %c0_33 = arith.constant 0 : index
    %131 = vector.load %arg1[%c0_31, %c0_32, %c0_33] : memref<6x24x128xbf16, #tpu.memory_space<vmem>>, vector<1x24x128xbf16>
    %132 = vector.shape_cast %131 : vector<1x24x128xbf16> to vector<24x128xbf16>
    %133 = arith.extf %132 : vector<24x128xbf16> to vector<24x128xf32>
    %134 = vector.broadcast %125 : vector<24x1xf32> to vector<24x128xf32>
    %135 = arith.mulf %134, %133 : vector<24x128xf32>
    %136 = arith.truncf %135 : vector<24x128xf32> to vector<24x128xbf16>
    %c0_34 = arith.constant 0 : index
    %c0_35 = arith.constant 0 : index
    %137 = vector.load %arg10[%c0_34, %c0_35] : memref<24x768xbf16, #tpu.memory_space<vmem>>, vector<24x128xbf16>
    tpu.vector_store %arg10[%c0_34, %c0_35], %136 {strides = array<i32>} : memref<24x768xbf16, #tpu.memory_space<vmem>>, vector<24x128xbf16>,
    %c1_36 = arith.constant 1 : index
    %c0_37 = arith.constant 0 : index
    %c0_38 = arith.constant 0 : index
    %138 = vector.load %arg1[%c1_36, %c0_37, %c0_38] : memref<6x24x128xbf16, #tpu.memory_space<vmem>>, vector<1x24x128xbf16>
    %139 = vector.shape_cast %138 : vector<1x24x128xbf16> to vector<24x128xbf16>
    %140 = arith.extf %139 : vector<24x128xbf16> to vector<24x128xf32>
    %141 = vector.broadcast %126 : vector<24x1xf32> to vector<24x128xf32>
    %142 = arith.mulf %141, %140 : vector<24x128xf32>
    %143 = arith.truncf %142 : vector<24x128xf32> to vector<24x128xbf16>
    %c0_39 = arith.constant 0 : index
    %c128 = arith.constant 128 : index
    %144 = vector.load %arg10[%c0_39, %c128] : memref<24x768xbf16, #tpu.memory_space<vmem>>, vector<24x128xbf16>
    tpu.vector_store %arg10[%c0_39, %c128], %143 {strides = array<i32>} : memref<24x768xbf16, #tpu.memory_space<vmem>>, vector<24x128xbf16>,
    %c2_40 = arith.constant 2 : index
    %c0_41 = arith.constant 0 : index
    %c0_42 = arith.constant 0 : index
    %145 = vector.load %arg1[%c2_40, %c0_41, %c0_42] : memref<6x24x128xbf16, #tpu.memory_space<vmem>>, vector<1x24x128xbf16>
    %146 = vector.shape_cast %145 : vector<1x24x128xbf16> to vector<24x128xbf16>
    %147 = arith.extf %146 : vector<24x128xbf16> to vector<24x128xf32>
    %148 = vector.broadcast %127 : vector<24x1xf32> to vector<24x128xf32>
    %149 = arith.mulf %148, %147 : vector<24x128xf32>
    %150 = arith.truncf %149 : vector<24x128xf32> to vector<24x128xbf16>
    %c0_43 = arith.constant 0 : index
    %c256 = arith.constant 256 : index
    %151 = vector.load %arg10[%c0_43, %c256] : memref<24x768xbf16, #tpu.memory_space<vmem>>, vector<24x128xbf16>
    tpu.vector_store %arg10[%c0_43, %c256], %150 {strides = array<i32>} : memref<24x768xbf16, #tpu.memory_space<vmem>>, vector<24x128xbf16>,
    %c3_44 = arith.constant 3 : index
    %c0_45 = arith.constant 0 : index
    %c0_46 = arith.constant 0 : index
    %152 = vector.load %arg1[%c3_44, %c0_45, %c0_46] : memref<6x24x128xbf16, #tpu.memory_space<vmem>>, vector<1x24x128xbf16>
    %153 = vector.shape_cast %152 : vector<1x24x128xbf16> to vector<24x128xbf16>
    %154 = arith.extf %153 : vector<24x128xbf16> to vector<24x128xf32>
    %155 = vector.broadcast %128 : vector<24x1xf32> to vector<24x128xf32>
    %156 = arith.mulf %155, %154 : vector<24x128xf32>
    %157 = arith.truncf %156 : vector<24x128xf32> to vector<24x128xbf16>
    %c0_47 = arith.constant 0 : index
    %c384 = arith.constant 384 : index
    %158 = vector.load %arg10[%c0_47, %c384] : memref<24x768xbf16, #tpu.memory_space<vmem>>, vector<24x128xbf16>
    tpu.vector_store %arg10[%c0_47, %c384], %157 {strides = array<i32>} : memref<24x768xbf16, #tpu.memory_space<vmem>>, vector<24x128xbf16>,
    %c4_48 = arith.constant 4 : index
    %c0_49 = arith.constant 0 : index
    %c0_50 = arith.constant 0 : index
    %159 = vector.load %arg1[%c4_48, %c0_49, %c0_50] : memref<6x24x128xbf16, #tpu.memory_space<vmem>>, vector<1x24x128xbf16>
    %160 = vector.shape_cast %159 : vector<1x24x128xbf16> to vector<24x128xbf16>
    %161 = arith.extf %160 : vector<24x128xbf16> to vector<24x128xf32>
    %162 = vector.broadcast %129 : vector<24x1xf32> to vector<24x128xf32>
    %163 = arith.mulf %162, %161 : vector<24x128xf32>
    %164 = arith.truncf %163 : vector<24x128xf32> to vector<24x128xbf16>
    %c0_51 = arith.constant 0 : index
    %c512 = arith.constant 512 : index
    %165 = vector.load %arg10[%c0_51, %c512] : memref<24x768xbf16, #tpu.memory_space<vmem>>, vector<24x128xbf16>
    tpu.vector_store %arg10[%c0_51, %c512], %164 {strides = array<i32>} : memref<24x768xbf16, #tpu.memory_space<vmem>>, vector<24x128xbf16>,
    %c5_52 = arith.constant 5 : index
    %c0_53 = arith.constant 0 : index
    %c0_54 = arith.constant 0 : index
    %166 = vector.load %arg1[%c5_52, %c0_53, %c0_54] : memref<6x24x128xbf16, #tpu.memory_space<vmem>>, vector<1x24x128xbf16>
    %167 = vector.shape_cast %166 : vector<1x24x128xbf16> to vector<24x128xbf16>
    %168 = arith.extf %167 : vector<24x128xbf16> to vector<24x128xf32>
    %169 = vector.broadcast %130 : vector<24x1xf32> to vector<24x128xf32>
    %170 = arith.mulf %169, %168 : vector<24x128xf32>
    %171 = arith.truncf %170 : vector<24x128xf32> to vector<24x128xbf16>
    %c0_55 = arith.constant 0 : index
    %c640 = arith.constant 640 : index
    %172 = vector.load %arg10[%c0_55, %c640] : memref<24x768xbf16, #tpu.memory_space<vmem>>, vector<24x128xbf16>
    tpu.vector_store %arg10[%c0_55, %c640], %171 {strides = array<i32>} : memref<24x768xbf16, #tpu.memory_space<vmem>>, vector<24x128xbf16>,
    %c0_56 = arith.constant 0 : index
    %c0_57 = arith.constant 0 : index
    %173 = vector.load %arg10[%c0_56, %c0_57] : memref<24x768xbf16, #tpu.memory_space<vmem>>, vector<24x768xbf16>
    %c0_58 = arith.constant 0 : index
    %c0_59 = arith.constant 0 : index
    %174 = vector.load %arg3[%c0_58, %c0_59] : memref<768x384xbf16, #tpu.memory_space<vmem>>, vector<768x384xbf16>
    %cst_60 = arith.constant dense<0.000000e+00> : vector<24x384xf32>
    %175 = tpu.matmul %173, %174, %cst_60 {dimension_numbers = #tpu.dot_dimension_numbers<[1], [0], [0], [1], [0, 0, 1, 1], [], []>} : vector<24x768xbf16>, vector<768x384xbf16>, vector<24x384xf32> -> vector<24x384xf32>
    %c0_61 = arith.constant 0 : index
    %c0_62 = arith.constant 0 : index
    %176 = vector.load %arg4[%c0_61, %c0_62] : memref<1x384xf32, #tpu.memory_space<vmem>>, vector<1x384xf32>
    %177 = vector.broadcast %176 : vector<1x384xf32> to vector<24x384xf32>
    %178 = arith.addf %175, %177 : vector<24x384xf32>
    %cst_63 = arith.constant 0.000000e+00 : f32
    %179 = vector.broadcast %cst_63 : f32 to vector<24x384xf32>
    %180 = arith.maximumf %178, %179 : vector<24x384xf32>
    %181 = arith.truncf %180 : vector<24x384xf32> to vector<24x384xbf16>
    %c0_64 = arith.constant 0 : index
    %c0_65 = arith.constant 0 : index
    %182 = vector.load %arg5[%c0_64, %c0_65] : memref<384x128xbf16, #tpu.memory_space<vmem>>, vector<384x128xbf16>
    %cst_66 = arith.constant dense<0.000000e+00> : vector<24x128xf32>
    %183 = tpu.matmul %181, %182, %cst_66 {dimension_numbers = #tpu.dot_dimension_numbers<[1], [0], [0], [1], [0, 0, 1, 1], [], []>} : vector<24x384xbf16>, vector<384x128xbf16>, vector<24x128xf32> -> vector<24x128xf32>
    %c0_67 = arith.constant 0 : index
    %c0_68 = arith.constant 0 : index
    %184 = vector.load %arg6[%c0_67, %c0_68] : memref<1x128xf32, #tpu.memory_space<vmem>>, vector<1x128xf32>
    %185 = vector.broadcast %184 : vector<1x128xf32> to vector<24x128xf32>
    %186 = arith.addf %183, %185 : vector<24x128xf32>
    %187 = arith.negf %186 : vector<24x128xf32>
    %188 = math.exp %187 : vector<24x128xf32>
    %cst_69 = arith.constant 1.000000e+00 : f32
    %189 = vector.broadcast %cst_69 : f32 to vector<24x128xf32>
    %190 = arith.addf %189, %188 : vector<24x128xf32>
    %191 = arith.divf %189, %190 : vector<24x128xf32>
    %192 = arith.truncf %191 : vector<24x128xf32> to vector<24x128xbf16>
    %c0_70 = arith.constant 0 : index
    %c0_71 = arith.constant 0 : index
    %193 = vector.load %arg7[%c0_70, %c0_71] : memref<128x128xbf16, #tpu.memory_space<vmem>>, vector<128x128xbf16>
    %cst_72 = arith.constant dense<0.000000e+00> : vector<24x128xf32>
    %194 = tpu.matmul %192, %193, %cst_72 {dimension_numbers = #tpu.dot_dimension_numbers<[1], [0], [0], [1], [0, 0, 1, 1], [], []>} : vector<24x128xbf16>, vector<128x128xbf16>, vector<24x128xf32> -> vector<24x128xf32>
    %c0_73 = arith.constant 0 : index
    %c0_74 = arith.constant 0 : index
    %195 = vector.load %arg8[%c0_73, %c0_74] : memref<1x128xf32, #tpu.memory_space<vmem>>, vector<1x128xf32>
    %196 = vector.broadcast %195 : vector<1x128xf32> to vector<24x128xf32>
    %197 = arith.addf %194, %196 : vector<24x128xf32>
    %c0_75 = arith.constant 0 : index
    %c0_76 = arith.constant 0 : index
    %198 = vector.load %arg9[%c0_75, %c0_76] : memref<24x128xf32, #tpu.memory_space<vmem>>, vector<24x128xf32>
    tpu.vector_store %arg9[%c0_75, %c0_76], %197 {strides = array<i32>} : memref<24x128xf32, #tpu.memory_space<vmem>>, vector<24x128xf32>,
    return
  }
  func.func @transform_0(%arg0: i32) -> (i32, i32, i32) {
    %c0_i32 = arith.constant 0 : i32
    %c0_i32_0 = arith.constant 0 : i32
    %c0_i32_1 = arith.constant 0 : i32
    return %c0_i32, %arg0, %c0_i32_0 : i32, i32, i32
  }
  func.func @transform_1(%arg0: i32) -> i32 {
    %c0_i32 = arith.constant 0 : i32
    %c0_i32_0 = arith.constant 0 : i32
    return %c0_i32 : i32
  }
  func.func @transform_2(%arg0: i32) -> (i32, i32) {
    %c0_i32 = arith.constant 0 : i32
    %c0_i32_0 = arith.constant 0 : i32
    %c0_i32_1 = arith.constant 0 : i32
    return %c0_i32, %c0_i32_0 : i32, i32
  }
  func.func @transform_3(%arg0: i32) -> (i32, i32) {
    %c0_i32 = arith.constant 0 : i32
    %c0_i32_0 = arith.constant 0 : i32
    %c0_i32_1 = arith.constant 0 : i32
    return %c0_i32, %c0_i32_0 : i32, i32
  }
  func.func @transform_4(%arg0: i32) -> (i32, i32) {
    %c0_i32 = arith.constant 0 : i32
    %c0_i32_0 = arith.constant 0 : i32
    %c0_i32_1 = arith.constant 0 : i32
    return %c0_i32, %c0_i32_0 : i32, i32
  }
  func.func @transform_5(%arg0: i32) -> (i32, i32) {
    %c0_i32 = arith.constant 0 : i32
    %c0_i32_0 = arith.constant 0 : i32
    %c0_i32_1 = arith.constant 0 : i32
    return %c0_i32, %c0_i32_0 : i32, i32
  }
  func.func @transform_6(%arg0: i32) -> (i32, i32) {
    %c0_i32 = arith.constant 0 : i32
    %c0_i32_0 = arith.constant 0 : i32
    %c0_i32_1 = arith.constant 0 : i32
    return %c0_i32, %c0_i32_0 : i32, i32
  }
  func.func @transform_7(%arg0: i32) -> (i32, i32) {
    %c0_i32 = arith.constant 0 : i32
    %c0_i32_0 = arith.constant 0 : i32
    %c0_i32_1 = arith.constant 0 : i32
    return %c0_i32, %c0_i32_0 : i32, i32
  }
  func.func @transform_8(%arg0: i32) -> (i32, i32) {
    %c0_i32 = arith.constant 0 : i32
    %c0_i32_0 = arith.constant 0 : i32
    return %arg0, %c0_i32 : i32, i32
  }
}

</mosaic_0001>

<bundles_post_ra>
// kernel: tpu_custom_call.1
= control target key start
LH: loop header
LB: loop body
LE: loop exit
PB: predicated region body
PF: predicated region fallthrough
CT: control target
= control target key end

     0   :  { %13 = vsyncpa [#allocation4], 0  ;;  %s3651_s0 = inlined_call_operand.hbm [shape: bf16[6,24,128], index: 0, kind: input, shape index: {}]   ;;  %s3652_s1 = inlined_call_operand.vmem [shape: f32[17], index: 1, kind: input, shape index: {}]   ;;  %s3653_s2 = inlined_call_operand.hbm [shape: bf16[768,384], index: 2, kind: input, shape index: {}]   ;;  %s3654_s3 = inlined_call_operand.vmem [shape: f32[1,384], index: 3, kind: input, shape index: {}]   ;;  %s3655_s4 = inlined_call_operand.hbm [shape: bf16[384,128], index: 4, kind: input, shape index: {}]   ;;  %s3656_s5 = inlined_call_operand.vmem [shape: f32[1,128], index: 5, kind: input, shape index: {}]   ;;  %s3657_s6 = inlined_call_operand.hbm [shape: bf16[128,128], index: 6, kind: input, shape index: {}]   ;;  %s3658_s7 = inlined_call_operand.vmem [shape: f32[1,128], index: 7, kind: input, shape index: {}]   ;;  %s3659_s8 = inlined_call_operand.hbm [shape: f32[24,128], index: 8, kind: output, shape index: {}]  }
   0x1   :  { %14 = vsyncpa [#allocation6], 0 }
   0x2   :  { %15 = vsyncpa [#allocation9], 0 }
   0x3   :  { %16 = vsyncpa [#allocation12], 0 }
   0x4   :  { %17 = vsyncpa [#allocation5], 0  ;;  %s3285_s27 = smov [#allocation8]   ;;  %s3153_s9 = scalar_lea.hbm %s3653_s2, 18432 }
   0x5   :  { %s45_s28 = sshll.u32 %s3285_s27, 4  ;;  %p3154_p0 = scmp.ne.s32.totalorder %s3653_s2, %s3153_s9  ;;  %s46_s28 = int_to_ptr.vmem [resolvable:$true] %s45_s28 }
   0x6   :  { %p3157_p1 = scmp.lt.u32.totalorder %s3153_s9, %s3653_s2 }
   0x8   :  { %p3159_p2 = pnand %p3157_p1, %p3154_p0 }
   0xa   :  { %3162 = shalt.err (!%p3159_p2)
}
   0xb   :  { %s3163_s14 = scalar_lea.vmem %s46_s28, 18432  ;;  %p3168_p4 = scmp.lt.s32.totalorder %s46_s28, %s46_s28 }
   0xc   :  { %p3164_p3 = scmp.ne.s32.totalorder %s46_s28, %s3163_s14  ;;  %p3169_p5 = scmp.lt.s32.totalorder %s3163_s14, %s3163_s14 }
   0xe   :  { %p3170_p6 = por %p3169_p5, %p3168_p4 }
  0x10   :  { %p3171_p7 = pnand %p3170_p6, %p3164_p3 }
  0x12   :  { %3174 = shalt.err (!%p3171_p7)
}
  0x13   :  { %s3286_s15 = smov 192   ;;  %s3287_s16 = smov 12  }
  0x14   :  { %51 = dma.hbm_to_vmem [thread:$0]  %s3653_s2, 18432, %s46_s28, [#allocation9], %s3286_s15, %s3286_s15, %s3287_s16  }
  0x15   :  { %s3288_s19 = smov [#allocation3]   ;;  %s3175_s23 = scalar_lea.hbm %s3651_s0, 1152 }
  0x16   :  { %s23_s20 = sshll.u32 %s3288_s19, 4  ;;  %p3176_p8 = scmp.ne.s32.totalorder %s3651_s0, %s3175_s23  ;;  %s24_s20 = int_to_ptr.vmem [resolvable:$true] %s23_s20 }
  0x17   :  { %p3179_p9 = scmp.lt.u32.totalorder %s3175_s23, %s3651_s0 }
  0x19   :  { %p3181_p10 = pnand %p3179_p9, %p3176_p8 }
  0x1b   :  { %3184 = shalt.err (!%p3181_p10)
}
  0x1c   :  { %s3185_s29 = scalar_lea.vmem %s24_s20, 1152  ;;  %p3190_p12 = scmp.lt.s32.totalorder %s24_s20, %s24_s20 }
  0x1d   :  { %p3186_p11 = scmp.ne.s32.totalorder %s24_s20, %s3185_s29  ;;  %p3191_p13 = scmp.lt.s32.totalorder %s3185_s29, %s3185_s29 }
  0x1f   :  { %p3192_p0 = por %p3191_p13, %p3190_p12 }
  0x21   :  { %p3193_p1 = pnand %p3192_p0, %p3186_p11 }
  0x23   :  { %3196 = shalt.err (!%p3193_p1)
}
  0x24   :  { %s3289_s2 = smov 64   ;;  %s3290_s28 = smov 4  }
  0x25   :  { %29 = dma.hbm_to_vmem [thread:$0]  %s3651_s0, 1152, %s24_s20, [#allocation4], %s3289_s2, %s3289_s2, %s3290_s28  }
  0x26   :  { %s36_s12 = sshll.u32 %s3652_s1, 4  ;;  %s37_s12 = int_to_ptr.vmem [resolvable:$true] %s36_s12 }
  0x27   :  { %s3197_s13 = scalar_lea.vmem %s37_s12, 16  ;;  %p3202_p3 = scmp.lt.s32.totalorder %s37_s12, %s37_s12 }
  0x28   :  { %p3198_p2 = scmp.ne.s32.totalorder %s37_s12, %s3197_s13  ;;  %p3203_p4 = scmp.lt.s32.totalorder %s3197_s13, %s3197_s13 }
  0x2a   :  { %p3204_p5 = por %p3203_p4, %p3202_p3 }
  0x2c   :  { %p3205_p6 = pnand %p3204_p5, %p3198_p2 }
  0x2e   :  { %3208 = shalt.err (!%p3205_p6)
}
  0x2f   :  { %s3291_s14 = smov [#allocation7]   ;;  %s3292_s15 = smov [#allocation10]  }
  0x30   :  { %39 = dma.vmem_to_smem %s37_s12, 16, %s3291_s14, [#allocation6]  }
  0x31   :  { %s59_s16 = sshll.u32 %s3292_s15, 4  ;;  %s3293_s17 = smov [#allocation11]   ;;  %s60_s16 = int_to_ptr.vmem [resolvable:$true] %s59_s16 }
  0x32   :  { %s73_s18 = sshll.u32 %s3293_s17, 4  ;;  %s3209_s20 = scalar_lea.hbm %s3655_s4, 3072  ;;  %s74_s18 = int_to_ptr.vmem [resolvable:$true] %s73_s18 }
  0x33   :  { %p3210_p7 = scmp.ne.s32.totalorder %s3655_s4, %s3209_s20  ;;  %p3213_p8 = scmp.lt.u32.totalorder %s3209_s20, %s3655_s4 }
  0x35   :  { %p3215_p9 = pnand %p3213_p8, %p3210_p7 }
  0x37   :  { %3218 = shalt.err (!%p3215_p9)
}
  0x38   :  { %s3219_s24 = scalar_lea.vmem %s60_s16, 3072  ;;  %p3224_p11 = scmp.lt.s32.totalorder %s60_s16, %s60_s16 }
  0x39   :  { %p3220_p10 = scmp.ne.s32.totalorder %s60_s16, %s3219_s24  ;;  %p3225_p12 = scmp.lt.s32.totalorder %s3219_s24, %s3219_s24 }
  0x3b   :  { %p3226_p13 = por %p3225_p12, %p3224_p11 }
  0x3d   :  { %p3227_p0 = pnand %p3226_p13, %p3220_p10 }
  0x3f   :  { %3230 = shalt.err (!%p3227_p0)
}
  0x40   :  { %65 = dma.hbm_to_vmem [thread:$0]  %s3655_s4, 3072, %s60_s16, [#allocation9], %s3289_s2, %s3289_s2, %s3290_s28  }
  0x41   :  { %s3231_s30 = scalar_lea.hbm %s3657_s6, 1024 }
  0x42   :  { %p3232_p1 = scmp.ne.s32.totalorder %s3657_s6, %s3231_s30  ;;  %p3235_p2 = scmp.lt.u32.totalorder %s3231_s30, %s3657_s6 }
  0x44   :  { %p3237_p3 = pnand %p3235_p2, %p3232_p1 }
  0x46   :  { %3240 = shalt.err (!%p3237_p3)
}
  0x47   :  { %s3241_s13 = scalar_lea.vmem %s74_s18, 1024  ;;  %p3246_p5 = scmp.lt.s32.totalorder %s74_s18, %s74_s18 }
  0x48   :  { %p3242_p4 = scmp.ne.s32.totalorder %s74_s18, %s3241_s13  ;;  %p3247_p6 = scmp.lt.s32.totalorder %s3241_s13, %s3241_s13 }
  0x4a   :  { %p3248_p7 = por %p3247_p6, %p3246_p5 }
  0x4c   :  { %p3249_p8 = pnand %p3248_p7, %p3242_p4 }
  0x4e   :  { %3252 = shalt.err (!%p3249_p8)
}
  0x4f   :  { %79 = dma.hbm_to_vmem [thread:$0]  %s3657_s6, 1024, %s74_s18, [#allocation12], %s3289_s2, %s3289_s2, %s3290_s28  }
  0x50   :  { %3275 = dma.done.wait [#allocation4], 1152  }
  0x51   :  { %3276 = vsyncadd [#allocation4], 4294966144 }
  0x52   :  { %3277 = dma.done.wait [#allocation6], 16  }
  0x53   :  { %3278 = vsyncadd [#allocation6], 4294967280 }
  0x54   :  { %3279 = dma.done.wait [#allocation9], 21504  }
  0x55   :  { %3280 = vsyncadd [#allocation9], 4294945792 }
  0x56   :  { %3281 = dma.done.wait [#allocation12], 1024  }
  0x57   :  { %3282 = vsyncadd [#allocation12], 4294966272 }
  0x58   :  { %97 = sfence }
  0x59   :  { %v3402_v0 = vld [vmem:[#allocation3 + $0x8] sm:$0xff]   ;;  %v3404_v1 = vld [vmem:[#allocation3] sm:$0xff]   ;;  %v3406_v2 = vld [vmem:[#allocation3 + $0x10] sm:$0xff]   ;;  %s2359_s6 = sld [smem:[#allocation7 + $0x1]]  ;;  %s2369_s2 = sld [smem:[#allocation7 + $0xb]] }
  0x5a   :  { %v119_v3 = vunpack.c.h.bf16 %v3402_v0  ;;  %v3666_v4 = vunpack.c.l.bf16 %v3404_v1  ;;  %v3410_v5 = vld [vmem:[#allocation3 + $0x28] sm:$0xff]   ;;  %v148_v6 = vld [vmem:[#allocation3 + $0x20] sm:$0xff]   ;;  %v2610_v7 = vunpack.c.l.bf16 %v3406_v2  ;;  %v2607_v8 = vunpack.c.h.bf16 %v3404_v1  ;;  %v3416_v9 = vld [vmem:[#allocation3 + $0x30] sm:$0xff]   ;;  %s195_s28 = sld [smem:[#allocation7]]  ;;  %s2362_s16 = sld [smem:[#allocation7 + $0x4]] }
  0x5b   :  { %v2618_v10 = vunpack.c.l.bf16 %v3410_v5  ;;  %v151_v11 = vunpack.c.h.bf16 %v148_v6  ;;  %v2623_v12 = vunpack.c.h.bf16 %v3416_v9  ;;  %v3665_v13 = vunpack.c.l.bf16 %v3416_v9  ;;  %v3427_v14 = vld [vmem:[#allocation3 + $0x18] sm:$0xff]   ;;  %v3429_v15 = vld [vmem:[#allocation3 + $0x40] sm:$0xff]   ;;  %v2862_v26 = vld [vmem:[#allocation8] ss:$12 sps:$4 sm:$0xff]   ;;  %s2366_s15 = sld [smem:[#allocation7 + $0x8]]  ;;  %s2367_s17 = sld [smem:[#allocation7 + $0x9]] }
  0x5c   :  { %122 = vadd.xlane.f32.xlu1 %v119_v3  ;;  %105 = vadd.xlane.f32.xlu0 %v3666_v4  ;;  %v180_v16 = vld [vmem:[#allocation3 + $0x38] sm:$0xff]   ;;  %v2615_v17 = vunpack.c.h.bf16 %v3427_v14  ;;  %v3664_v18 = vunpack.c.l.bf16 %v3427_v14  ;;  %v3667_v19 = vunpack.c.l.bf16 %v3429_v15  ;;  %v3662_v21 = vunpack.c.h.bf16 %v3406_v2  ;;  %v2863_v29 = vld [vmem:[#allocation8 + $0x1c] ss:$12 sps:$4 sm:$0xff]   ;;  %v2865_v30 = vld [vmem:[#allocation8 + $0x18] ss:$12 sps:$4 sm:$0xff]   ;;  %s2368_s18 = sld [smem:[#allocation7 + $0xa]] }
  0x5d   :  { %v183_v20 = vunpack.c.h.bf16 %v180_v16  ;;  %v3663_v22 = vunpack.c.l.bf16 %v3402_v0  ;;  %v169_v23 = vunpack.c.l.bf16 %v180_v16  ;;  %v3661_v24 = vunpack.c.h.bf16 %v3410_v5  ;;  %v2860_v25 = vld [vmem:[#allocation8 + $0x4] ss:$12 sps:$4 sm:$0xff]   ;;  %v2866_v31 = vld [vmem:[#allocation8 + $0x34] ss:$12 sps:$4 sm:$0xff]   ;;  %v2869_v33 = vld [vmem:[#allocation8 + $0x4c] ss:$12 sps:$4 sm:$0xff]  }
  0x5e   :  { %v3660_v27 = vunpack.c.h.bf16 %v3429_v15  ;;  %v137_v28 = vunpack.c.l.bf16 %v148_v6  ;;  %1590 = vmatprep.subr.bf16.mxu0 %v2860_v25  ;;  %v2868_v32 = vld [vmem:[#allocation8 + $0x30] ss:$12 sps:$4 sm:$0xff]   ;;  %v2871_v34 = vld [vmem:[#allocation8 + $0x48] ss:$12 sps:$4 sm:$0xff]   ;;  %v2874_v36 = vld [vmem:[#allocation8 + $0x60] ss:$12 sps:$4 sm:$0xff]  }
  0x5f   :  { %1591 = vmatpush1.bf16.msra.mxu0 %v2862_v26  ;;  %v2872_v35 = vld [vmem:[#allocation8 + $0x64] ss:$12 sps:$4 sm:$0xff]   ;;  %v2875_v37 = vld [vmem:[#allocation8 + $0x7c] ss:$12 sps:$4 sm:$0xff]   ;;  %v2878_v39 = vld [vmem:[#allocation8 + $0x94] ss:$12 sps:$4 sm:$0xff]  }
  0x60   :  { %124 = vadd.xlane.f32.xlu1 %v2610_v7  ;;  %107 = vadd.xlane.f32.xlu0 %v2607_v8  ;;  %v2877_v38 = vld [vmem:[#allocation8 + $0x78] ss:$12 sps:$4 sm:$0xff]   ;;  %v2880_v40 = vld [vmem:[#allocation8 + $0x90] ss:$12 sps:$4 sm:$0xff]   ;;  %v2883_v42 = vld [vmem:[#allocation8 + $0xa8] ss:$12 sps:$4 sm:$0xff]  }
  0x61   :  { %1592 = vmatprep.subr.bf16.mxu0 %v2863_v29  ;;  %v2881_v41 = vld [vmem:[#allocation8 + $0xac] ss:$12 sps:$4 sm:$0xff]   ;;  %v2884_v43 = vld [vmem:[#allocation8 + $0xc4] ss:$12 sps:$4 sm:$0xff]   ;;  %v2886_v44 = vld [vmem:[#allocation8 + $0xc8] ss:$12 sps:$4 sm:$0xff]  }
  0x62   :  { %v2887_v45 = vld [vmem:[#allocation8 + $0xc0] ss:$12 sps:$4 sm:$0xff]   ;;  %v2888_v46 = vld [vmem:[#allocation8 + $0x8] ss:$12 sps:$4 sm:$0xff]   ;;  %2654 = vmatprep.subr.bf16.mxu1 %v2886_v44  ;;  %v2892_v49 = vld [vmem:[#allocation8 + $0xd8] ss:$12 sps:$4 sm:$0xff]  }
  0x63   :  { %1593 = vmatpush1.bf16.msra.mxu0 %v2865_v30  ;;  %2655 = vmatpush3.bf16.msra.mxu1 %v2888_v46  ;;  %v2889_v47 = vld [vmem:[#allocation8 + $0xdc] ss:$12 sps:$4 sm:$0xff]   ;;  %v2891_v48 = vld [vmem:[#allocation8 + $0xe0] ss:$12 sps:$4 sm:$0xff]   ;;  %v2896_v52 = vld [vmem:[#allocation8 + $0xf8] ss:$12 sps:$4 sm:$0xff]  }
  0x64   :  { %156 = vadd.xlane.f32.xlu1 %v2618_v10  ;;  %154 = vadd.xlane.f32.xlu0 %v151_v11  ;;  %v2893_v50 = vld [vmem:[#allocation8 + $0x20] ss:$12 sps:$4 sm:$0xff]   ;;  %v2897_v53 = vld [vmem:[#allocation8 + $0xf0] ss:$12 sps:$4 sm:$0xff]   ;;  %v2898_v54 = vld [vmem:[#allocation8 + $0x38] ss:$12 sps:$4 sm:$0xff]  }
  0x65   :  { %1594 = vmatprep.subr.bf16.mxu0 %v2866_v31  ;;  %2656 = vmatprep.subr.bf16.mxu1 %v2891_v48  ;;  %v2894_v51 = vld [vmem:[#allocation8 + $0xf4] ss:$12 sps:$4 sm:$0xff]   ;;  %v2899_v55 = vld [vmem:[#allocation8 + $0x10c] ss:$12 sps:$4 sm:$0xff]   ;;  %v2901_v56 = vld [vmem:[#allocation8 + $0x110] ss:$12 sps:$4 sm:$0xff]   ;;  %v3470_v48 = vstv %s2362_s16 }
  0x66   :  { %v2902_v57 = vld [vmem:[#allocation8 + $0x108] ss:$12 sps:$4 sm:$0xff]   ;;  %v2903_v58 = vld [vmem:[#allocation8 + $0x50] ss:$12 sps:$4 sm:$0xff]   ;;  %v2907_v61 = vld [vmem:[#allocation8 + $0x120] ss:$12 sps:$4 sm:$0xff]  }
  0x67   :  { %1595 = vmatpush1.bf16.msra.mxu0 %v2868_v32  ;;  %2657 = vmatpush3.bf16.msra.mxu1 %v2893_v50  ;;  %v2904_v59 = vld [vmem:[#allocation8 + $0x124] ss:$12 sps:$4 sm:$0xff]   ;;  %v2906_v60 = vld [vmem:[#allocation8 + $0x128] ss:$12 sps:$4 sm:$0xff]   ;;  %v2911_v3 = vld [vmem:[#allocation8 + $0x140] ss:$12 sps:$4 sm:$0xff]  }
  0x68   :  { %172 = vadd.xlane.f32.xlu1 %v2623_v12  ;;  %170 = vadd.xlane.f32.xlu0 %v3665_v13  ;;  %v2908_v62 = vld [vmem:[#allocation8 + $0x68] ss:$12 sps:$4 sm:$0xff]   ;;  %v2912_v6 = vld [vmem:[#allocation8 + $0x138] ss:$12 sps:$4 sm:$0xff]   ;;  %v2913_v11 = vld [vmem:[#allocation8 + $0x80] ss:$12 sps:$4 sm:$0xff]  }
  0x69   :  { %1596 = vmatprep.subr.bf16.mxu0 %v2869_v33  ;;  %2658 = vmatprep.subr.bf16.mxu1 %v2896_v52  ;;  %v2909_v63 = vld [vmem:[#allocation8 + $0x13c] ss:$12 sps:$4 sm:$0xff]   ;;  %v2914_v16 = vld [vmem:[#allocation8 + $0x154] ss:$12 sps:$4 sm:$0xff]   ;;  %v2918_v25 = vld [vmem:[#allocation8 + $0x98] ss:$12 sps:$4 sm:$0xff]  }
  0x6a   :  { %v2919_v26 = vld [vmem:[#allocation8 + $0x16c] ss:$12 sps:$4 sm:$0xff]   ;;  %v2922_v29 = vld [vmem:[#allocation8 + $0x168] ss:$12 sps:$4 sm:$0xff]   ;;  %v2923_v30 = vld [vmem:[#allocation8 + $0xb0] ss:$12 sps:$4 sm:$0xff]  }
  0x6b   :  { %1597 = vmatpush1.bf16.msra.mxu0 %v2871_v34  ;;  %2659 = vmatpush3.bf16.msra.mxu1 %v2898_v54  ;;  %v2929_v31 = vld [vmem:[#allocation8 + $0x184] ss:$12 sps:$4 sm:$0xff]   ;;  %v2930_v32 = vld [vmem:[#allocation8 + $0x248] ss:$12 sps:$4 sm:$0xff]   ;;  %s2363_s0 = sld [smem:[#allocation7 + $0x5]]  ;;  %s2370_s19 = sld [smem:[#allocation7 + $0xc]] }
  0x6c   :  { %140 = vadd.xlane.f32.xlu1 %v2615_v17  ;;  %138 = vadd.xlane.f32.xlu0 %v3664_v18  ;;  %s2371_s20 = sld [smem:[#allocation7 + $0xd]]  ;;  %s2360_s1 = sld [smem:[#allocation7 + $0x2]] }
  0x6d   :  { %1598 = vmatprep.subr.bf16.mxu0 %v2872_v35  ;;  %2660 = vmatprep.subr.bf16.mxu1 %v2901_v56  ;;  %s2372_s21 = sld [smem:[#allocation7 + $0xe]]  ;;  %s3456_s22 = sld [smem:[#allocation7 + $0x3]] }
  0x6e   :  { %s3458_s23 = sld [smem:[#allocation7 + $0x6]]  ;;  %s3474_s24 = sld [smem:[#allocation7 + $0x7]] }
  0x6f   :  { %1599 = vmatpush1.bf16.msra.mxu0 %v2874_v36  ;;  %2661 = vmatpush3.bf16.msra.mxu1 %v2903_v58  ;;  %s3476_s25 = sld [smem:[#allocation7 + $0xf]]  ;;  %s3482_s26 = sld [smem:[#allocation7 + $0x10]] }
  0x70   :  { %188 = vadd.xlane.f32.xlu1 %v3667_v19  ;;  %186 = vadd.xlane.f32.xlu0 %v183_v20  ;;  %v2916_v20 = vld [vmem:[#allocation8 + $0x158] ss:$12 sps:$4 sm:$0xff]   ;;  %s3294_s10 = smov [#allocation13]  }
  0x71   :  { %1600 = vmatprep.subr.bf16.mxu0 %v2875_v37  ;;  %2662 = vmatprep.subr.bf16.mxu1 %v2906_v60  ;;  %v3460_v37 = vstv %s2359_s6  ;;  %v3478_v52 = vstv %s2363_s0  ;;  %s2344_s11 = sshll.u32 %s3294_s10, 4  ;;  %s2345_s11 = int_to_ptr.vmem [resolvable:$true] %s2344_s11 }
  0x72   :  { %v3487_v58 = vstv %s2360_s1  ;;  %s3253_s12 = scalar_lea.vmem %s2345_s11, 384  ;;  %p3258_p10 = scmp.lt.s32.totalorder %s2345_s11, %s2345_s11 }
  0x73   :  { %1601 = vmatpush1.bf16.msra.mxu0 %v2877_v38  ;;  %2663 = vmatpush3.bf16.msra.mxu1 %v2908_v62  ;;  %v3462_v38 = vstv %s2369_s2  ;;  %p3254_p9 = scmp.ne.s32.totalorder %s2345_s11, %s3253_s12  ;;  %p3259_p11 = scmp.lt.s32.totalorder %s3253_s12, %s3253_s12 }
  0x74   :  { %126 = vadd.xlane.f32.xlu1 %v3662_v21  ;;  %109 = vadd.xlane.f32.xlu0 %v3663_v22 }
  0x75   :  { %1602 = vmatprep.subr.bf16.mxu0 %v2878_v39  ;;  %2664 = vmatprep.subr.bf16.mxu1 %v2911_v3  ;;  %v3464_v39 = vstv %s195_s28  ;;  %p3260_p12 = por %p3259_p11, %p3258_p10 }
  0x77   :  { %1603 = vmatpush1.bf16.msra.mxu0 %v2880_v40  ;;  %2665 = vmatpush3.bf16.msra.mxu1 %v2913_v11  ;;  %p3261_p13 = pnand %p3260_p12, %p3254_p9 }
  0x78   :  { %174 = vadd.xlane.f32.xlu1 %v169_v23  ;;  %158 = vadd.xlane.f32.xlu0 %v3661_v24  ;;  %v2917_v23 = vld [vmem:[#allocation8 + $0x150] ss:$12 sps:$4 sm:$0xff]  }
  0x79   :  { %1604 = vmatprep.subr.bf16.mxu0 %v2881_v41  ;;  %2666 = vmatprep.subr.bf16.mxu1 %v2916_v20 }
  0x7b   :  { %1605 = vmatpush1.bf16.msra.mxu0 %v2883_v42  ;;  %2667 = vmatpush3.bf16.msra.mxu1 %v2918_v25  ;;  %v3466_v42 = vstv %s2366_s15 }
  0x7c   :  { %190 = vadd.xlane.f32.xlu1 %v3660_v27  ;;  %142 = vadd.xlane.f32.xlu0 %v137_v28  ;;  %v2921_v28 = vld [vmem:[#allocation8 + $0x170] ss:$12 sps:$4 sm:$0xff]  }
  0x7d   :  { %1606 = vmatprep.subr.bf16.mxu0 %v2884_v43  ;;  %2668 = vmatprep.subr.bf16.mxu1 %v2921_v28  ;;  %v3468_v43 = vstv %s2367_s17 }
  0x7f   :  { %1607 = vmatpush1.bf16.msra.mxu0 %v2887_v45  ;;  %2669 = vmatpush3.bf16.msra.mxu1 %v2923_v30 }
  0x80   :  { %1608 = vmatprep.subr.bf16.mxu0 %v2889_v47  ;;  %2682 = vmatprep.subr.bf16.mxu1 %v2930_v32 }
  0x83   :  { %1609 = vmatpush1.bf16.msra.mxu0 %v2892_v49  ;;  %v3472_v49 = vstv %s2368_s18 }
  0x84   :  { %1610 = vmatprep.subr.bf16.mxu0 %v2894_v51 }
  0x87   :  { %1611 = vmatpush1.bf16.msra.mxu0 %v2897_v53  ;;  %v3480_v53 = vstv %s2370_s19 }
  0x88   :  { %1612 = vmatprep.subr.bf16.mxu0 %v2899_v55  ;;  %v3485_v55 = vstv %s2371_s20 }
  0x8b   :  { %1613 = vmatpush1.bf16.msra.mxu0 %v2902_v57 }
  0x8c   :  { %1614 = vmatprep.subr.bf16.mxu0 %v2904_v59  ;;  %v3489_v59 = vstv %s2372_s21 }
  0x8f   :  { %1615 = vmatpush1.bf16.msra.mxu0 %v2907_v61 }
  0x90   :  { %1616 = vmatprep.subr.bf16.mxu0 %v2909_v63  ;;  %v3493_v63 = vstv %s3456_s22 }
  0x93   :  { %1617 = vmatpush1.bf16.msra.mxu0 %v2912_v6 }
  0x94   :  { %1618 = vmatprep.subr.bf16.mxu0 %v2914_v16  ;;  %v3499_v16 = vstv %s3458_s23 }
  0x97   :  { %1619 = vmatpush1.bf16.msra.mxu0 %v2917_v23 }
  0x98   :  { %1620 = vmatprep.subr.bf16.mxu0 %v2919_v26 }
  0x9b   :  { %1621 = vmatpush1.bf16.msra.mxu0 %v2922_v29 }
  0x9c   :  { %1641 = vmatprep.subr.bf16.mxu0 %v2929_v31 }
  0xe9   :  { %v123_v33 = vpop.xlane.xlu1 %122  ;;  %v106_v34 = vpop.xlane.xlu0 %105 }
  0xea   :  { %v128_v46 = vmul.f32 0.0078125, %v123_v33  ;;  %v112_v50 = vmul.f32 0.0078125, %v106_v34 }
  0xec   :  { %v202_v3 = vmul.f32 %v3460_v37, %v128_v46  ;;  %v267_v6 = vmul.f32 %v3462_v38, %v128_v46  ;;  %v197_v20 = vmul.f32 %v3464_v39, %v112_v50  ;;  %v249_v23 = vmul.f32 %v3466_v42, %v112_v50 }
  0xed   :  { %v125_v35 = vpop.xlane.xlu1 %124  ;;  %v108_v36 = vpop.xlane.xlu0 %107  ;;  %v3510_v50 = vstv %s3474_s24 }
  0xee   :  { %v113_v47 = vmul.f32 0.0078125, %v108_v36  ;;  %v129_v51 = vmul.f32 0.0078125, %v125_v35 }
  0xf0   :  { %v250_v11 = vmul.f32 %v3466_v42, %v113_v47  ;;  %v203_v25 = vmul.f32 %v3460_v37, %v129_v51  ;;  %v268_v28 = vmul.f32 %v3462_v38, %v129_v51  ;;  %v198_v29 = vmul.f32 %v3464_v39, %v113_v47 }
  0xf1   :  { %v157_v40 = vpop.xlane.xlu1 %156  ;;  %v155_v41 = vpop.xlane.xlu0 %154 }
  0xf2   :  { %v161_v44 = vmul.f32 0.0078125, %v157_v40  ;;  %v160_v45 = vmul.f32 0.0078125, %v155_v41 }
  0xf4   :  { %v255_v54 = vmul.f32 %v3468_v43, %v161_v44  ;;  %v254_v60 = vmul.f32 %v3468_v43, %v160_v45  ;;  %v224_v51 = vmul.f32 %v3470_v48, %v161_v44 }
  0xf5   :  { %v173_v56 = vpop.xlane.xlu1 %172  ;;  %v171_v57 = vpop.xlane.xlu0 %170 }
  0xf6   :  { %v177_v61 = vmul.f32 0.0078125, %v173_v56  ;;  %v176_v62 = vmul.f32 0.0078125, %v171_v57  ;;  %v258_v30 = vadd.f32 %v255_v54, %v250_v11  ;;  %v257_v34 = vadd.f32 %v254_v60, %v249_v23 }
  0xf7   :  { %v3513_v56 = vstv %s3476_s25  ;;  %v3519_v57 = vstv %s3482_s26  ;;  %v205_v11 = vadd.f32 %v202_v3, %v197_v20  ;;  %v206_v60 = vadd.f32 %v203_v25, %v198_v29 }
  0xf8   :  { %v273_v26 = vmul.f32 %v3480_v53, %v177_v61  ;;  %v272_v31 = vmul.f32 %v3480_v53, %v176_v62  ;;  %v229_v35 = vmul.f32 %v3478_v52, %v177_v61  ;;  %v223_v61 = vmul.f32 %v3470_v48, %v160_v45 }
  0xf9   :  { %v141_v32 = vpop.xlane.xlu1 %140  ;;  %v139_v33 = vpop.xlane.xlu0 %138  ;;  %v228_v23 = vmul.f32 %v3478_v52, %v176_v62 }
  0xfa   :  { %v145_v36 = vmul.f32 0.0078125, %v141_v32  ;;  %v144_v40 = vmul.f32 0.0078125, %v139_v33  ;;  %v276_v41 = vadd.f32 %v273_v26, %v268_v28  ;;  %v275_v46 = vadd.f32 %v272_v31, %v267_v6 }
  0xfb   :  { %v263_v28 = vadd.f32 %v3472_v49, %v258_v30  ;;  %v3525_v31 = vadd.f32 %v3472_v49, %v257_v34  ;;  %v232_v44 = vadd.f32 %v229_v35, %v224_v51  ;;  %v231_v24 = vadd.f32 %v228_v23, %v223_v61 }
  0xfc   :  { %v211_v47 = vmul.f32 %v3487_v58, %v145_v36  ;;  %v210_v54 = vmul.f32 %v3487_v58, %v144_v40  ;;  %v281_v33 = vadd.f32 %v3485_v55, %v276_v41  ;;  %v280_v27 = vadd.f32 %v3485_v55, %v275_v46 }
  0xfd   :  { %v189_v26 = vpop.xlane.xlu1 %188  ;;  %v187_v6 = vpop.xlane.xlu0 %186  ;;  %v286_v3 = vmul.f32 %v3489_v59, %v145_v36  ;;  %v285_v30 = vmul.f32 %v3489_v59, %v144_v40 }
  0xfe   :  { %v193_v32 = vmul.f32 0.0078125, %v189_v26  ;;  %v192_v20 = vmul.f32 0.0078125, %v187_v6  ;;  %v214_v25 = vadd.f32 %v211_v47, %v206_v60  ;;  %v213_v45 = vadd.f32 %v210_v54, %v205_v11 }
  0xff   :  { %v338_v6 = vmax.f32 %v263_v28, %v281_v33  ;;  %v337_v47 = vmax.f32 %v3525_v31, %v280_v27 }
 0x100   :  { %v237_v62 = vmul.f32 %v3499_v16, %v193_v32  ;;  %v291_v29 = vmul.f32 %v3513_v56, %v193_v32  ;;  %v236_v34 = vmul.f32 %v3499_v16, %v192_v20  ;;  %v290_v35 = vmul.f32 %v3513_v56, %v192_v20 }
 0x101   :  { %v127_v51 = vpop.xlane.xlu1 %126  ;;  %v110_v41 = vpop.xlane.xlu0 %109  ;;  %v219_v60 = vadd.f32 %v3493_v63, %v214_v25  ;;  %v218_v61 = vadd.f32 %v3493_v63, %v213_v45 }
 0x102   :  { %v240_v26 = vadd.f32 %v237_v62, %v232_v44  ;;  %v294_v46 = vadd.f32 %v291_v29, %v286_v3  ;;  %v130_v21 = vmul.f32 0.0078125, %v127_v51  ;;  %v114_v36 = vmul.f32 0.0078125, %v110_v41 }
 0x103   :  { %v239_v54 = vadd.f32 %v236_v34, %v231_v24  ;;  %v293_v11 = vadd.f32 %v290_v35, %v285_v30 }
 0x104   :  { %v245_v40 = vadd.f32 %v3510_v50, %v240_v26  ;;  %v299_v23 = vadd.f32 %v3519_v57, %v294_v46  ;;  %v204_v3 = vmul.f32 %v3460_v37, %v130_v21  ;;  %v269_v20 = vmul.f32 %v3462_v38, %v130_v21 }
 0x105   :  { %v244_v32 = vadd.f32 %v3510_v50, %v239_v54  ;;  %v298_v44 = vadd.f32 %v3519_v57, %v293_v11  ;;  %v175_v62 = vpop.xlane.xlu1 %174  ;;  %v199_v30 = vmul.f32 %v3464_v39, %v114_v36  ;;  %v251_v25 = vmul.f32 %v3466_v42, %v114_v36  ;;  %v159_v45 = vpop.xlane.xlu0 %158 }
 0x106   :  { %v302_v29 = vmax.f32 %v219_v60, %v245_v40  ;;  %v341_v24 = vmax.f32 %v338_v6, %v299_v23  ;;  %v178_v51 = vmul.f32 0.0078125, %v175_v62  ;;  %v162_v41 = vmul.f32 0.0078125, %v159_v45 }
 0x107   :  { %v301_v34 = vmax.f32 %v218_v61, %v244_v32  ;;  %v340_v35 = vmax.f32 %v337_v47, %v298_v44  ;;  %v207_v19 = vadd.f32 %v204_v3, %v199_v30 }
 0x108   :  { %v305_v26 = vsub.f32 %v219_v60, %v302_v29  ;;  %v314_v46 = vsub.f32 %v245_v40, %v302_v29  ;;  %v344_v54 = vsub.f32 %v263_v28, %v341_v24  ;;  %v353_v11 = vsub.f32 %v281_v33, %v341_v24 }
 0x109   :  { %v362_v22 = vsub.f32 %v299_v23, %v341_v24  ;;  %v304_v37 = vsub.f32 %v218_v61, %v301_v34  ;;  %v313_v18 = vsub.f32 %v244_v32, %v301_v34  ;;  %v343_v21 = vsub.f32 %v3525_v31, %v340_v35  ;;  %v191_v47 = vpop.xlane.xlu1 %190  ;;  %v143_v28 = vpop.xlane.xlu0 %142 }
 0x10a   :  { %v309_v38 = vmul.f32 1.442695, %v305_v26  ;;  %v318_v6 = vmul.f32 1.442695, %v314_v46  ;;  %v348_v13 = vmul.f32 1.442695, %v344_v54  ;;  %v352_v39 = vsub.f32 %v280_v27, %v340_v35 }
 0x10b   :  { %v357_v4 = vmul.f32 1.442695, %v353_v11  ;;  %v366_v42 = vmul.f32 1.442695, %v362_v22  ;;  %v361_v36 = vsub.f32 %v298_v44, %v340_v35  ;;  %v307_v62 = vmul.f32 1.442695, %v304_v37 }
 0x10c   :  { %3099 = vpow2.f32 %v309_v38  ;;  %v316_v60 = vmul.f32 1.442695, %v313_v18  ;;  %v346_v40 = vmul.f32 1.442695, %v343_v21  ;;  %v355_v33 = vmul.f32 1.442695, %v352_v39 }
 0x10d   :  { %3101 = vpow2.f32 %v318_v6  ;;  %v230_v61 = vmul.f32 %v3478_v52, %v178_v51  ;;  %v274_v31 = vmul.f32 %v3480_v53, %v178_v51  ;;  %v225_v23 = vmul.f32 %v3470_v48, %v162_v41 }
 0x10e   :  { %3103 = vpow2.f32 %v348_v13  ;;  %v256_v27 = vmul.f32 %v3468_v43, %v162_v41  ;;  %v194_v22 = vmul.f32 0.0078125, %v191_v47  ;;  %v364_v32 = vmul.f32 1.442695, %v361_v36 }
 0x10f   :  { %3105 = vpow2.f32 %v357_v4  ;;  %v277_v44 = vadd.f32 %v274_v31, %v269_v20  ;;  %v146_v3 = vmul.f32 0.0078125, %v143_v28  ;;  %v233_v18 = vadd.f32 %v230_v61, %v225_v23  ;;  %v428_v31 = vld [vmem:[#allocation3 + $0xc] sm:$0xf]  ;;  %v3562_v23 = vld [vmem:[#allocation3 + $0x20] sm:$0xff]  }
 0x110   :  { %3107 = vpow2.f32 %v366_v42  ;;  %v259_v29 = vadd.f32 %v256_v27, %v251_v25  ;;  %v238_v24 = vmul.f32 %v3499_v16, %v194_v22  ;;  %v292_v53 = vmul.f32 %v3513_v56, %v194_v22  ;;  %v3564_v27 = vld [vmem:[#allocation3 + $0x38] sm:$0xff]  }
 0x111   :  { %3109 = vpow2.f32 %v307_v62  ;;  %v282_v52 = vadd.f32 %v3485_v55, %v277_v44  ;;  %v212_v13 = vmul.f32 %v3487_v58, %v146_v3  ;;  %v287_v4 = vmul.f32 %v3489_v59, %v146_v3 }
 0x112   :  { %3111 = vpow2.f32 %v316_v60  ;;  %v264_v43 = vadd.f32 %v3472_v49, %v259_v29  ;;  %v241_v48 = vadd.f32 %v238_v24, %v233_v18 }
 0x113   :  { %3113 = vpow2.f32 %v346_v40  ;;  %v215_v20 = vadd.f32 %v212_v13, %v207_v19  ;;  %v295_v16 = vadd.f32 %v292_v53, %v287_v4  ;;  %v431_v53 = vunpack.c.l.bf16 %v428_v31 }
 0x114   :  { %3115 = vpow2.f32 %v355_v33  ;;  %v339_v30 = vmax.f32 %v264_v43, %v282_v52  ;;  %v246_v25 = vadd.f32 %v3510_v50, %v241_v48  ;;  %v481_v13 = vunpack.c.h.bf16 %v3562_v23 }
 0x115   :  { %v220_v45 = vadd.f32 %v3493_v63, %v215_v20  ;;  %3117 = vpow2.f32 %v364_v32  ;;  %v300_v56 = vadd.f32 %v3519_v57, %v295_v16 }
 0x116   :  { %v3100_v55 = vpop.eup %3099 }
 0x117   :  { %v3102_v58 = vpop.eup %3101  ;;  %v303_v34 = vmax.f32 %v220_v45, %v246_v25  ;;  %v342_v51 = vmax.f32 %v339_v30, %v300_v56 }
 0x118   :  { %v3104_v35 = vpop.eup %3103  ;;  %v323_v49 = vadd.f32 %v3102_v58, %v3100_v55 }
 0x119   :  { %v3106_v41 = vpop.eup %3105  ;;  %v306_v59 = vsub.f32 %v220_v45, %v303_v34  ;;  %v315_v26 = vsub.f32 %v246_v25, %v303_v34  ;;  %v345_v21 = vsub.f32 %v264_v43, %v342_v51  ;;  %v354_v57 = vsub.f32 %v282_v52, %v342_v51 }
 0x11a   :  { %v3108_v19 = vpop.eup %3107  ;;  %v371_v46 = vadd.f32 %v3106_v41, %v3104_v35  ;;  %3119 = vrcp.f32 %v323_v49  ;;  %v363_v36 = vsub.f32 %v300_v56, %v342_v51  ;;  %v531_v43 = vunpack.c.h.bf16 %v3564_v27 }
 0x11b   :  { %v3110_v54 = vpop.eup %3109  ;;  %v311_v50 = vmul.f32 1.442695, %v306_v59  ;;  %v320_v63 = vmul.f32 1.442695, %v315_v26  ;;  %v350_v62 = vmul.f32 1.442695, %v345_v21  ;;  %v3668_v26 = vunpack.c.l.bf16 %v3429_v15 }
 0x11c   :  { %v3112_v11 = vpop.eup %3111  ;;  %v374_v37 = vadd.f32 %v3108_v19, %v371_v46  ;;  %v359_v40 = vmul.f32 1.442695, %v354_v57  ;;  %v368_v28 = vmul.f32 1.442695, %v363_v36  ;;  %v3669_v36 = vunpack.c.l.bf16 %v3404_v1 }
 0x11d   :  { %v3114_v38 = vpop.eup %3113  ;;  %v322_v6 = vadd.f32 %v3112_v11, %v3110_v54  ;;  %3121 = vpow2.f32 %v311_v50 }
 0x11e   :  { %v3116_v39 = vpop.eup %3115  ;;  %3123 = vrcp.f32 %v374_v37 }
 0x11f   :  { %3125 = vrcp.f32 %v322_v6  ;;  %v370_v42 = vadd.f32 %v3116_v39, %v3114_v38  ;;  %v3118_v47 = vpop.eup %3117 }
 0x120   :  { %3127 = vpow2.f32 %v320_v63 }
 0x121   :  { %v373_v60 = vadd.f32 %v3118_v47, %v370_v42 }
 0x123   :  { %3129 = vrcp.f32 %v373_v60 }
 0x124   :  { %3131 = vpow2.f32 %v350_v62  ;;  %v3120_v33 = vpop.eup %3119 }
 0x125   :  { %3133 = vpow2.f32 %v359_v40  ;;  %v332_v32 = vmul.f32 %v3120_v33, %v3100_v55  ;;  %v335_v3 = vmul.f32 %v3120_v33, %v3102_v58 }
 0x126   :  { %3135 = vpow2.f32 %v368_v28  ;;  %v3670_v28 = vunpack.c.l.bf16 %v3416_v9  ;;  %v2927_v9 = vld [vmem:[#allocation8 + $0x180] ss:$12 sps:$4 sm:$0xff]  }
 0x127   :  { %v3560_v61 = vpop.eup %3121 }
 0x128   :  { %v3124_v22 = vpop.eup %3123 }
 0x129   :  { %v3126_v44 = vpop.eup %3125  ;;  %v383_v18 = vmul.f32 %v3124_v22, %v3104_v35  ;;  %v386_v29 = vmul.f32 %v3124_v22, %v3106_v41  ;;  %v389_v24 = vmul.f32 %v3124_v22, %v3108_v19  ;;  %v3671_v22 = vunpack.c.l.bf16 %v3427_v14 }
 0x12a   :  { %v3566_v52 = vpop.eup %3127  ;;  %v331_v48 = vmul.f32 %v3126_v44, %v3110_v54  ;;  %v334_v55 = vmul.f32 %v3126_v44, %v3112_v11 }
 0x12b   :  { %v392_v4 = vmul.f32 %v383_v18, %v332_v32  ;;  %v395_v20 = vmul.f32 %v386_v29, %v332_v32  ;;  %v398_v30 = vmul.f32 %v389_v24, %v332_v32  ;;  %v401_v25 = vmul.f32 %v383_v18, %v335_v3 }
 0x12c   :  { %v404_v16 = vmul.f32 %v386_v29, %v335_v3  ;;  %v407_v45 = vmul.f32 %v389_v24, %v335_v3  ;;  %v324_v56 = vadd.f32 %v3566_v52, %v3560_v61 }
 0x12d   :  { %v3130_v58 = vpop.eup %3129  ;;  %v410_v34 = vmul.f32 %v2607_v8, %v392_v4  ;;  %v435_v35 = vmul.f32 %v2610_v7, %v395_v20  ;;  %v460_v49 = vmul.f32 %v2615_v17, %v398_v30  ;;  %v485_v51 = vmul.f32 %v2618_v10, %v401_v25  ;;  %v2934_v30 = vld [vmem:[#allocation8 + $0x19c] ss:$12 sps:$4 sm:$0xff]  }
 0x12e   :  { %v3132_v41 = vpop.eup %3131  ;;  %v510_v59 = vmul.f32 %v2623_v12, %v404_v16  ;;  %v535_v19 = vmul.f32 %v3668_v26, %v407_v45  ;;  %v382_v46 = vmul.f32 %v3130_v58, %v3114_v38  ;;  %v385_v54 = vmul.f32 %v3130_v58, %v3116_v39  ;;  %v2935_v16 = vld [vmem:[#allocation8 + $0x260] ss:$12 sps:$4 sm:$0xff]  }
 0x12f   :  { %v3134_v50 = vpop.eup %3133  ;;  %v2587_v8 = vpack.c.bf16 %v410_v34, %v410_v34  ;;  %v2590_v11 = vpack.c.bf16 %v435_v35, %v435_v35  ;;  %v2593_v37 = vpack.c.bf16 %v460_v49, %v460_v49  ;;  %v2596_v7 = vpack.c.bf16 %v485_v51, %v485_v51  ;;  %v2932_v35 = vld [vmem:[#allocation8 + $0x198] ss:$12 sps:$4 sm:$0xff]   ;;  %v2939_v26 = vld [vmem:[#allocation8 + $0x1b4] ss:$12 sps:$4 sm:$0xff]  }
 0x130   :  { %v2599_v63 = vpack.c.bf16 %v510_v59, %v510_v59  ;;  %v2602_v21 = vpack.c.bf16 %v535_v19, %v535_v19  ;;  %v388_v17 = vmul.f32 %v3130_v58, %v3118_v47  ;;  %v391_v6 = vmul.f32 %v382_v46, %v331_v48  ;;  %v3136_v57 = vpop.eup %3135 }
 0x131   :  { %426 = vst [vmem:[#allocation2 + $0x18] sm:$0xf] %v2587_v8  ;;  %451 = vst [vmem:[#allocation2 + $0x1c] sm:$0xf] %v2590_v11  ;;  %v394_v10 = vmul.f32 %v385_v54, %v331_v48  ;;  %v400_v12 = vmul.f32 %v382_v46, %v334_v55  ;;  %v403_v42 = vmul.f32 %v385_v54, %v334_v55  ;;  %3137 = vrcp.f32 %v324_v56 }
 0x132   :  { %476 = vst [vmem:[#allocation2 + $0x20] sm:$0xf] %v2593_v37  ;;  %501 = vst [vmem:[#allocation2 + $0x24] sm:$0xf] %v2596_v7  ;;  %v397_v38 = vmul.f32 %v388_v17, %v331_v48  ;;  %v406_v39 = vmul.f32 %v388_v17, %v334_v55  ;;  %v409_v62 = vmul.f32 %v3669_v36, %v391_v6  ;;  %v458_v45 = vunpack.c.l.bf16 %v3562_v23  ;;  %v2940_v23 = vld [vmem:[#allocation8 + $0x278] ss:$12 sps:$4 sm:$0xff]  }
 0x133   :  { %526 = vst [vmem:[#allocation2 + $0x28] sm:$0xf] %v2599_v63  ;;  %551 = vst [vmem:[#allocation2 + $0x2c] sm:$0xf] %v2602_v21  ;;  %v372_v60 = vadd.f32 %v3134_v50, %v3132_v41  ;;  %v434_v40 = vmul.f32 %v431_v53, %v394_v10  ;;  %v484_v47 = vmul.f32 %v481_v13, %v400_v12  ;;  %v2931_v53 = vld [vmem:[#allocation8 + $0x188] ss:$12 sps:$4 sm:$0xff]   ;;  %v508_v34 = vunpack.c.l.bf16 %v3564_v27 }
 0x134   :  { %v509_v33 = vmul.f32 %v3670_v28, %v403_v42  ;;  %v2586_v31 = vpack.c.bf16 %v409_v62, %v409_v62  ;;  %v459_v32 = vmul.f32 %v3671_v22, %v397_v38  ;;  %v534_v44 = vmul.f32 %v531_v43, %v406_v39  ;;  %v2937_v17 = vld [vmem:[#allocation8 + $0x1b0] ss:$12 sps:$4 sm:$0xff]   ;;  %v2941_v6 = vld [vmem:[#allocation8 + $0x1b8] ss:$12 sps:$4 sm:$0xff]   ;;  %v2955_v62 = vld [vmem:[#allocation8 + $0x2a8] ss:$12 sps:$4 sm:$0xff]  }
 0x135   :  { %v375_v3 = vadd.f32 %v3136_v57, %v372_v60  ;;  %v2589_v18 = vpack.c.bf16 %v434_v40, %v434_v40  ;;  %v2595_v29 = vpack.c.bf16 %v484_v47, %v484_v47  ;;  %v3674_v11 = vunpack.c.h.bf16 %v3410_v5  ;;  %v2945_v42 = vld [vmem:[#allocation8 + $0x1cc] ss:$12 sps:$4 sm:$0xff]   ;;  %v2943_v5 = vld [vmem:[#allocation8 + $0x1c8] ss:$12 sps:$4 sm:$0xff]   ;;  %v2954_v36 = vld [vmem:[#allocation8 + $0x1e4] ss:$12 sps:$4 sm:$0xff]  }
 0x136   :  { %v2598_v24 = vpack.c.bf16 %v509_v33, %v509_v33  ;;  %425 = vst [vmem:[#allocation2] sm:$0xf] %v2586_v31  ;;  %v2592_v48 = vpack.c.bf16 %v459_v32, %v459_v32  ;;  %v2601_v4 = vpack.c.bf16 %v534_v44, %v534_v44  ;;  %v3675_v63 = vunpack.c.h.bf16 %v3429_v15  ;;  %v2948_v15 = vld [vmem:[#allocation8 + $0x1d0] ss:$12 sps:$4 sm:$0xff]   ;;  %v2952_v60 = vld [vmem:[#allocation8 + $0x1e0] ss:$12 sps:$4 sm:$0xff]  }
 0x137   :  { %3139 = vrcp.f32 %v375_v3  ;;  %450 = vst [vmem:[#allocation2 + $0x4] sm:$0xf] %v2589_v18  ;;  %500 = vst [vmem:[#allocation2 + $0xc] sm:$0xf] %v2595_v29  ;;  %v2956_v40 = vld [vmem:[#allocation8 + $0x1e8] ss:$12 sps:$4 sm:$0xff]  }
 0x138   :  { %525 = vst [vmem:[#allocation2 + $0x10] sm:$0xf] %v2598_v24  ;;  %475 = vst [vmem:[#allocation2 + $0x8] sm:$0xf] %v2592_v48  ;;  %v2959_v31 = vld [vmem:[#allocation8 + $0x1fc] ss:$12 sps:$4 sm:$0xff]  }
 0x139   :  { %550 = vst [vmem:[#allocation2 + $0x14] sm:$0xf] %v2601_v4  ;;  %v2960_v22 = vld [vmem:[#allocation8 + $0x2c0] ss:$12 sps:$4 sm:$0xff]   ;;  %v2957_v44 = vld [vmem:[#allocation8 + $0x1f8] ss:$12 sps:$4 sm:$0xff]  }
 0x13a   :  { %v2961_v3 = vld [vmem:[#allocation8 + $0x200] ss:$12 sps:$4 sm:$0xff]   ;;  %v2965_v29 = vld [vmem:[#allocation8 + $0x2d8] ss:$12 sps:$4 sm:$0xff]   ;;  %v2962_v24 = vld [vmem:[#allocation8 + $0x210] ss:$12 sps:$4 sm:$0xff]  }
 0x13b   :  { %v3138_v1 = vpop.eup %3137  ;;  %v2964_v18 = vld [vmem:[#allocation8 + $0x214] ss:$12 sps:$4 sm:$0xff]   ;;  %v2966_v48 = vld [vmem:[#allocation8 + $0x218] ss:$12 sps:$4 sm:$0xff]  }
 0x13c   :  { %v333_v43 = vmul.f32 %v3138_v1, %v3560_v61  ;;  %v336_v20 = vmul.f32 %v3138_v1, %v3566_v52  ;;  %v2936_v61 = vld [vmem:[#allocation8 + $0x1a0] ss:$12 sps:$4 sm:$0xff]   ;;  %v2970_v1 = vld [vmem:[#allocation8 + $0x2f0] ss:$12 sps:$4 sm:$0xff]  }
 0x13d   :  { %v2924_v13 = vld [vmem:[#allocation2] ss:$24 sps:$4 sm:$0xff]   ;;  %v2969_v4 = vld [vmem:[#allocation8 + $0x22c] ss:$12 sps:$4 sm:$0xff]  }
 0x13e   :  { %v2926_v14 = vld [vmem:[#allocation2 + $0x4] ss:$24 sps:$4 sm:$0xff]  }
 0x13f   :  { %1622 = vmatprep.mubr.bf16.mxu0 %v2926_v14  ;;  %1775 = vmatprep.mubr.bf16.mxu1 %v2926_v14  ;;  %v2951_v32 = vld [vmem:[#allocation2 + $0xc] ss:$24 sps:$4 sm:$0xff]  }
 0x140   :  { %1623 = vmatmul.mubr.bf16.vlgmr.msra.gmra.mrb[0].mxu0 %v2924_v13  ;;  %1776 = vmatmul.mubr.bf16.vlgmr.msra.gmra.mrb[0].mxu1 %v2924_v13  ;;  %v2974_v13 = vld [vmem:[#allocation8 + $0x244] ss:$12 sps:$4 sm:$0xff]   ;;  %v2975_v14 = vld [vmem:[#allocation8 + $0x3c8] ss:$12 sps:$4 sm:$0xff]  }
 0x141   :  { %v3140_v25 = vpop.eup %3139  ;;  %1642 = vmatpush1.bf16.msra.mxu0 %v2927_v9  ;;  %2683 = vmatpush3.bf16.msra.mxu1 %v2931_v53  ;;  %v2967_v9 = vld [vmem:[#allocation8 + $0x228] ss:$12 sps:$4 sm:$0xff]   ;;  %v2971_v53 = vld [vmem:[#allocation8 + $0x230] ss:$12 sps:$4 sm:$0xff]  }
 0x142   :  { %v384_v55 = vmul.f32 %v3140_v25, %v3132_v41  ;;  %v387_v56 = vmul.f32 %v3140_v25, %v3134_v50  ;;  %v390_v58 = vmul.f32 %v3140_v25, %v3136_v57  ;;  %1643 = vmatprep.subr.bf16.mxu0 %v2934_v30  ;;  %2684 = vmatprep.subr.bf16.mxu1 %v2935_v16  ;;  %v3672_v41 = vunpack.c.l.bf16 %v3402_v0  ;;  %v3602_v30 = vld [vmem:[#allocation2 + $0x8] ss:$24 sps:$4 sm:$0xff]   ;;  %v2977_v25 = vld [vmem:[#allocation8 + $0x308] ss:$12 sps:$4 sm:$0xff]  }
 0x143   :  { %v3673_v50 = vunpack.c.h.bf16 %v3406_v2  ;;  %v2946_v2 = vld [vmem:[#allocation8 + $0x290] ss:$12 sps:$4 sm:$0xff]  }
 0x144   :  { %v393_v49 = vmul.f32 %v384_v55, %v333_v43  ;;  %v396_v52 = vmul.f32 %v387_v56, %v333_v43  ;;  %v399_v51 = vmul.f32 %v390_v58, %v333_v43  ;;  %v402_v59 = vmul.f32 %v384_v55, %v336_v20  ;;  %v2980_v16 = vld [vmem:[#allocation8 + $0x25c] ss:$12 sps:$4 sm:$0xff]   ;;  %v2981_v55 = vld [vmem:[#allocation8 + $0x3e0] ss:$12 sps:$4 sm:$0xff]  }
 0x145   :  { %v405_v19 = vmul.f32 %v387_v56, %v336_v20  ;;  %v408_v46 = vmul.f32 %v390_v58, %v336_v20  ;;  %1644 = vmatpush1.bf16.msra.mxu0 %v2932_v35  ;;  %2685 = vmatpush3.bf16.msra.mxu1 %v2936_v61  ;;  %v2972_v20 = vld [vmem:[#allocation8 + $0x240] ss:$12 sps:$4 sm:$0xff]   ;;  %v2978_v56 = vld [vmem:[#allocation8 + $0x258] ss:$12 sps:$4 sm:$0xff]   ;;  %v2983_v61 = vld [vmem:[#allocation8 + $0x270] ss:$12 sps:$4 sm:$0xff]  }
 0x146   :  { %v411_v54 = vmul.f32 %v393_v49, %v3672_v41  ;;  %v436_v27 = vmul.f32 %v3673_v50, %v396_v52  ;;  %v461_v8 = vmul.f32 %v458_v45, %v399_v51  ;;  %v486_v37 = vmul.f32 %v3674_v11, %v402_v59  ;;  %1645 = vmatprep.subr.bf16.mxu0 %v2939_v26  ;;  %v2982_v58 = vld [vmem:[#allocation8 + $0x320] ss:$12 sps:$4 sm:$0xff]   ;;  %v2987_v35 = vld [vmem:[#allocation8 + $0x3f8] ss:$12 sps:$4 sm:$0xff]   ;;  %v2995_v26 = vld [vmem:[#allocation8 + $0x410] ss:$12 sps:$4 sm:$0xff]  }
 0x147   :  { %v511_v7 = vmul.f32 %v508_v34, %v405_v19  ;;  %v536_v21 = vmul.f32 %v3675_v63, %v408_v46  ;;  %2686 = vmatprep.subr.bf16.mxu1 %v2940_v23  ;;  %v2985_v34 = vld [vmem:[#allocation8 + $0x274] ss:$12 sps:$4 sm:$0xff]   ;;  %v2988_v52 = vld [vmem:[#allocation8 + $0x338] ss:$12 sps:$4 sm:$0xff]   ;;  %v2996_v46 = vld [vmem:[#allocation8 + $0x350] ss:$12 sps:$4 sm:$0xff]  }
 0x148   :  { %v2588_v57 = vpack.c.bf16 %v411_v54, %v411_v54  ;;  %v2591_v10 = vpack.c.bf16 %v436_v27, %v436_v27  ;;  %v2594_v12 = vpack.c.bf16 %v461_v8, %v461_v8  ;;  %v2597_v0 = vpack.c.bf16 %v486_v37, %v486_v37  ;;  %v2994_v51 = vld [vmem:[#allocation8 + $0x28c] ss:$12 sps:$4 sm:$0xff]   ;;  %v3610_v59 = vld [vmem:[#allocation2 + $0x14] ss:$24 sps:$4 sm:$0xff]   ;;  %v2992_v19 = vld [vmem:[#allocation8 + $0x288] ss:$12 sps:$4 sm:$0xff]  }
 0x149   :  { %v2600_v38 = vpack.c.bf16 %v511_v7, %v511_v7  ;;  %v2603_v39 = vpack.c.bf16 %v536_v21, %v536_v21  ;;  %1646 = vmatpush1.bf16.msra.mxu0 %v2937_v17  ;;  %2687 = vmatpush3.bf16.msra.mxu1 %v2941_v6  ;;  %v2999_v23 = vld [vmem:[#allocation8 + $0x2a4] ss:$12 sps:$4 sm:$0xff]   ;;  %v3000_v41 = vld [vmem:[#allocation8 + $0x428] ss:$12 sps:$4 sm:$0xff]   ;;  %v2997_v54 = vld [vmem:[#allocation8 + $0x2a0] ss:$12 sps:$4 sm:$0xff]  }
 0x14a   :  { %427 = vst [vmem:[#allocation2 + $0x30] sm:$0xf] %v2588_v57  ;;  %452 = vst [vmem:[#allocation2 + $0x34] sm:$0xf] %v2591_v10  ;;  %1647 = vmatprep.subr.bf16.mxu0 %v2945_v42  ;;  %2688 = vmatprep.subr.bf16.mxu1 %v2946_v2  ;;  %v3001_v50 = vld [vmem:[#allocation8 + $0x368] ss:$12 sps:$4 sm:$0xff]  }
 0x14b   :  { %477 = vst [vmem:[#allocation2 + $0x38] sm:$0xf] %v2594_v12  ;;  %502 = vst [vmem:[#allocation2 + $0x3c] sm:$0xf] %v2597_v0  ;;  %v3004_v27 = vld [vmem:[#allocation8 + $0x2bc] ss:$12 sps:$4 sm:$0xff]  }
 0x14c   :  { %527 = vst [vmem:[#allocation2 + $0x40] sm:$0xf] %v2600_v38  ;;  %552 = vst [vmem:[#allocation2 + $0x44] sm:$0xf] %v2603_v39  ;;  %v3005_v8 = vld [vmem:[#allocation8 + $0x440] ss:$12 sps:$4 sm:$0xff]  }
 0x14d   :  { %1648 = vmatpush1.bf16.msra.mxu0 %v2943_v5  ;;  %2689 = vmatpush3.bf16.msra.mxu1 %v2948_v15  ;;  %v3002_v11 = vld [vmem:[#allocation8 + $0x2b8] ss:$12 sps:$4 sm:$0xff]   ;;  %v3006_v37 = vld [vmem:[#allocation8 + $0x380] ss:$12 sps:$4 sm:$0xff]   ;;  %v3007_v21 = vld [vmem:[#allocation8 + $0x2d0] ss:$12 sps:$4 sm:$0xff]  }
 0x14e   :  { %1649 = vmatprep.subr.bf16.mxu0 %v2954_v36  ;;  %2690 = vmatprep.subr.bf16.mxu1 %v2955_v62  ;;  %v3009_v7 = vld [vmem:[#allocation8 + $0x2d4] ss:$12 sps:$4 sm:$0xff]   ;;  %v3010_v63 = vld [vmem:[#allocation8 + $0x458] ss:$12 sps:$4 sm:$0xff]   ;;  %v3015_v57 = vld [vmem:[#allocation8 + $0x470] ss:$12 sps:$4 sm:$0xff]  }
 0x14f   :  { %v3011_v17 = vld [vmem:[#allocation8 + $0x398] ss:$12 sps:$4 sm:$0xff]   ;;  %v3012_v10 = vld [vmem:[#allocation8 + $0x2e8] ss:$12 sps:$4 sm:$0xff]   ;;  %v3016_v12 = vld [vmem:[#allocation8 + $0x3b0] ss:$12 sps:$4 sm:$0xff]  }
 0x150   :  { %v3014_v6 = vld [vmem:[#allocation8 + $0x2ec] ss:$12 sps:$4 sm:$0xff]   ;;  %v3019_v0 = vld [vmem:[#allocation8 + $0x304] ss:$12 sps:$4 sm:$0xff]   ;;  %v3023_v39 = vld [vmem:[#allocation8 + $0x31c] ss:$12 sps:$4 sm:$0xff]  }
 0x151   :  { %v559_v47 = vld [vmem:[#allocation2 + $0x30] sm:$0xff]  ;;  %1650 = vmatpush1.bf16.msra.mxu0 %v2952_v60  ;;  %2691 = vmatpush3.bf16.msra.mxu1 %v2956_v40  ;;  %v3024_v62 = vld [vmem:[#allocation8 + $0x330] ss:$12 sps:$4 sm:$0xff]   ;;  %v3030_v40 = vld [vmem:[#allocation8 + $0x34c] ss:$12 sps:$4 sm:$0xff]  }
 0x152   :  { %v2400_v28 = vcombine.high %v559_v47, %v559_v47  ;;  %v2399_v33 = vcombine.low %v559_v47, %v559_v47  ;;  %1651 = vmatprep.subr.bf16.mxu0 %v2959_v31  ;;  %2692 = vmatprep.subr.bf16.mxu1 %v2960_v22  ;;  %v560_v43 = vld [vmem:[#allocation2 + $0x38] sm:$0xff]  ;;  %v3614_v38 = vld [vmem:[#allocation2 + $0x10] ss:$24 sps:$4 sm:$0xff]  }
 0x153   :  { %v3604_v45 = vcombine.high %v560_v43, %v560_v43  ;;  %v3608_v49 = vcombine.low %v560_v43, %v560_v43  ;;  %v561_v42 = vld [vmem:[#allocation2 + $0x40] sm:$0xff]  ;;  %v3017_v2 = vld [vmem:[#allocation8 + $0x300] ss:$12 sps:$4 sm:$0xff]   ;;  %v3021_v15 = vld [vmem:[#allocation8 + $0x318] ss:$12 sps:$4 sm:$0xff]  }
 0x154   :  { %1632 = vmatprep.mubr.bf16.mxu0 %v2400_v28  ;;  %1783 = vmatprep.mubr.bf16.mxu1 %v2400_v28  ;;  %v3617_v5 = vcombine.high %v561_v42, %v561_v42  ;;  %v3026_v36 = vld [vmem:[#allocation8 + $0x334] ss:$12 sps:$4 sm:$0xff]   ;;  %v2403_v60 = vcombine.low %v561_v42, %v561_v42  ;;  %v3033_v28 = vld [vmem:[#allocation8 + $0x364] ss:$12 sps:$4 sm:$0xff]   ;;  %v3036_v31 = vld [vmem:[#allocation8 + $0x37c] ss:$12 sps:$4 sm:$0xff]  }
 0x155   :  { %1633 = vmatmul.mubr.bf16.gmra.mrb[4].mxu0 %v2399_v33  ;;  %1784 = vmatmul.mubr.bf16.gmra.mrb[4].mxu1 %v2399_v33  ;;  %v3028_v47 = vld [vmem:[#allocation8 + $0x348] ss:$12 sps:$4 sm:$0xff]   ;;  %v3031_v33 = vld [vmem:[#allocation8 + $0x360] ss:$12 sps:$4 sm:$0xff]   ;;  %v3034_v22 = vld [vmem:[#allocation8 + $0x378] ss:$12 sps:$4 sm:$0xff]  }
 0x156   :  { %1673 = vmatprep.mubr.bf16.mxu0 %v2951_v32  ;;  %1823 = vmatprep.mubr.bf16.mxu1 %v2951_v32  ;;  %v3039_v32 = vld [vmem:[#allocation8 + $0x394] ss:$12 sps:$4 sm:$0xff]  }
 0x157   :  { %1652 = vmatpush1.bf16.msra.mxu0 %v2957_v44  ;;  %2693 = vmatpush3.bf16.msra.mxu1 %v2961_v3  ;;  %v3037_v44 = vld [vmem:[#allocation8 + $0x390] ss:$12 sps:$4 sm:$0xff]   ;;  %v3042_v3 = vld [vmem:[#allocation8 + $0x3ac] ss:$12 sps:$4 sm:$0xff]  }
 0x158   :  { %1653 = vmatprep.subr.bf16.mxu0 %v2964_v18  ;;  %2694 = vmatprep.subr.bf16.mxu1 %v2965_v29  ;;  %v3040_v18 = vld [vmem:[#allocation8 + $0x3a8] ss:$12 sps:$4 sm:$0xff]   ;;  %v3045_v29 = vld [vmem:[#allocation8 + $0x3c4] ss:$12 sps:$4 sm:$0xff]   ;;  %v3055_v43 = vld [vmem:[#allocation8 + $0x420] ss:$12 sps:$4 sm:$0xff]  }
 0x15b   :  { %1654 = vmatpush1.bf16.msra.mxu0 %v2962_v24  ;;  %2695 = vmatpush3.bf16.msra.mxu1 %v2966_v48  ;;  %v3043_v24 = vld [vmem:[#allocation8 + $0x3c0] ss:$12 sps:$4 sm:$0xff]   ;;  %v3048_v48 = vld [vmem:[#allocation8 + $0x3dc] ss:$12 sps:$4 sm:$0xff]  }
 0x15c   :  { %1655 = vmatprep.subr.bf16.mxu0 %v2969_v4  ;;  %2696 = vmatprep.subr.bf16.mxu1 %v2970_v1  ;;  %v3046_v4 = vld [vmem:[#allocation8 + $0x3d8] ss:$12 sps:$4 sm:$0xff]   ;;  %v3051_v1 = vld [vmem:[#allocation8 + $0x3f4] ss:$12 sps:$4 sm:$0xff]  }
 0x15f   :  { %1656 = vmatpush1.bf16.msra.mxu0 %v2967_v9  ;;  %2697 = vmatpush3.bf16.msra.mxu1 %v2971_v53  ;;  %v3049_v9 = vld [vmem:[#allocation8 + $0x3f0] ss:$12 sps:$4 sm:$0xff]   ;;  %v3054_v53 = vld [vmem:[#allocation8 + $0x40c] ss:$12 sps:$4 sm:$0xff]  }
 0x160   :  { %1657 = vmatprep.subr.bf16.mxu0 %v2974_v13  ;;  %2710 = vmatprep.subr.bf16.mxu1 %v2975_v14  ;;  %v3052_v13 = vld [vmem:[#allocation8 + $0x408] ss:$12 sps:$4 sm:$0xff]   ;;  %v3057_v14 = vld [vmem:[#allocation8 + $0x424] ss:$12 sps:$4 sm:$0xff]  }
 0x162   :  { %1824 = vmatmul.mubr.bf16.vlgmr.msra.gmra.mrb[8].mxu1 %v3602_v30 }
 0x163   :  { %1658 = vmatpush1.bf16.msra.mxu0 %v2972_v20  ;;  %1831 = vmatprep.mubr.bf16.mxu1 %v3604_v45  ;;  %v3060_v20 = vld [vmem:[#allocation8 + $0x43c] ss:$12 sps:$4 sm:$0xff]  }
 0x164   :  { %2711 = vmatpush3.bf16.msra.mxu1 %v2977_v25  ;;  %1659 = vmatprep.subr.bf16.mxu0 %v2980_v16  ;;  %v3063_v25 = vld [vmem:[#allocation8 + $0x454] ss:$12 sps:$4 sm:$0xff]   ;;  %v3061_v16 = vld [vmem:[#allocation8 + $0x450] ss:$12 sps:$4 sm:$0xff]  }
 0x165   :  { %2712 = vmatprep.subr.bf16.mxu1 %v2981_v55  ;;  %v3064_v55 = vld [vmem:[#allocation8 + $0x468] ss:$12 sps:$4 sm:$0xff]  }
 0x167   :  { %1660 = vmatpush1.bf16.msra.mxu0 %v2978_v56  ;;  %v3067_v56 = vld [vmem:[#allocation10 + $0x40] sm:$0xff]  }
 0x168   :  { %2713 = vmatpush3.bf16.msra.mxu1 %v2982_v58  ;;  %1661 = vmatprep.subr.bf16.mxu0 %v2985_v34  ;;  %v3068_v58 = vld [vmem:[#allocation10] sm:$0xff]   ;;  %v3069_v34 = vld [vmem:[#allocation10 + $0x48] sm:$0xff]  }
 0x169   :  { %2714 = vmatprep.subr.bf16.mxu1 %v2987_v35  ;;  %v3070_v35 = vld [vmem:[#allocation10 + $0x8] sm:$0xff]  }
 0x16a   :  { %1832 = vmatmul.mubr.bf16.gmra.mrb[12].mxu1 %v3608_v49 }
 0x16b   :  { %1662 = vmatpush1.bf16.msra.mxu0 %v2983_v61  ;;  %1871 = vmatprep.mubr.bf16.mxu1 %v3610_v59  ;;  %v3071_v61 = vld [vmem:[#allocation10 + $0x50] sm:$0xff]  }
 0x16c   :  { %2715 = vmatpush3.bf16.msra.mxu1 %v2988_v52  ;;  %1663 = vmatprep.subr.bf16.mxu0 %v2994_v51  ;;  %v3073_v52 = vld [vmem:[#allocation10 + $0x58] sm:$0xff]  }
 0x16d   :  { %2716 = vmatprep.subr.bf16.mxu1 %v2995_v26  ;;  %v3074_v51 = vld [vmem:[#allocation10 + $0x18] sm:$0xff]   ;;  %v3076_v26 = vld [vmem:[#allocation10 + $0x20] sm:$0xff]  }
 0x16f   :  { %1664 = vmatpush1.bf16.msra.mxu0 %v2992_v19  ;;  %v3077_v19 = vld [vmem:[#allocation10 + $0x68] sm:$0xff]  }
 0x170   :  { %2717 = vmatpush3.bf16.msra.mxu1 %v2996_v46  ;;  %1665 = vmatprep.subr.bf16.mxu0 %v2999_v23  ;;  %v3078_v46 = vld [vmem:[#allocation10 + $0x28] sm:$0xff]  }
 0x171   :  { %2718 = vmatprep.subr.bf16.mxu1 %v3000_v41 }
 0x173   :  { %1666 = vmatpush1.bf16.msra.mxu0 %v2997_v54 }
 0x174   :  { %2719 = vmatpush3.bf16.msra.mxu1 %v3001_v50  ;;  %1667 = vmatprep.subr.bf16.mxu0 %v3004_v27 }
 0x175   :  { %2720 = vmatprep.subr.bf16.mxu1 %v3005_v8 }
 0x177   :  { %1668 = vmatpush1.bf16.msra.mxu0 %v3002_v11  ;;  %v3079_v11 = vld [vmem:[#allocation10 + $0x70] sm:$0xff]  }
 0x178   :  { %2721 = vmatpush3.bf16.msra.mxu1 %v3006_v37  ;;  %1669 = vmatprep.subr.bf16.mxu0 %v3009_v7  ;;  %v3080_v37 = vld [vmem:[#allocation10 + $0x30] sm:$0xff]   ;;  %v3081_v7 = vld [vmem:[#allocation10 + $0x78] sm:$0xff]  }
 0x179   :  { %2722 = vmatprep.subr.bf16.mxu1 %v3010_v63  ;;  %v3082_v63 = vld [vmem:[#allocation10 + $0x38] sm:$0xff]  }
 0x17b   :  { %1670 = vmatpush1.bf16.msra.mxu0 %v3007_v21  ;;  %v3626_v21 = vld [vmem:[#allocation10 + $0x80] sm:$0xff]  }
 0x17c   :  { %2723 = vmatpush3.bf16.msra.mxu1 %v3011_v17  ;;  %1671 = vmatprep.subr.bf16.mxu0 %v3014_v6  ;;  %v756_v17 = vlaneseq }
 0x17d   :  { %2724 = vmatprep.subr.bf16.mxu1 %v3015_v57 }
 0x17e   :  { %v757_v42 = vshrl.u32 %v756_v17, 7 }
 0x17f   :  { %1672 = vmatpush1.bf16.msra.mxu0 %v3012_v10 }
 0x180   :  { %2725 = vmatpush3.bf16.msra.mxu1 %v3016_v12  ;;  %1692 = vmatprep.subr.bf16.mxu0 %v3019_v0 }
 0x181   :  { %2738 = vmatprep.subr.bf16.mxu1 %v3067_v56 }
 0x182   :  { %1674 = vmatmul.mubr.bf16.vlgmr.msra.gmra.mrb[0].mxu0 %v3602_v30  ;;  %v3058_v30 = vld [vmem:[#allocation8 + $0x438] ss:$12 sps:$4 sm:$0xff]  }
 0x183   :  { %1872 = vmatmul.mubr.bf16.vlgmr.msra.gmra.mrb[16].mxu1 %v3614_v38  ;;  %1683 = vmatprep.mubr.bf16.mxu0 %v3604_v45  ;;  %v3066_v45 = vld [vmem:[#allocation8 + $0x46c] ss:$12 sps:$4 sm:$0xff]  }
 0x184   :  { %1693 = vmatpush1.bf16.msra.mxu0 %v3017_v2  ;;  %1879 = vmatprep.mubr.bf16.mxu1 %v3617_v5  ;;  %v766_v2 = vsub.s32 2, %v757_v42 }
 0x185   :  { %1694 = vmatprep.subr.bf16.mxu0 %v3023_v39  ;;  %2739 = vmatpush3.bf16.msra.mxu1 %v3068_v58 }
 0x186   :  { %2740 = vmatprep.subr.bf16.mxu1 %v3069_v34 }
 0x188   :  { %1695 = vmatpush1.bf16.msra.mxu0 %v3021_v15 }
 0x189   :  { %1696 = vmatprep.subr.bf16.mxu0 %v3026_v36  ;;  %2741 = vmatpush3.bf16.msra.mxu1 %v3070_v35  ;;  %v758_v35 = vsub.s32 0, %v757_v42 }
 0x18a   :  { %1684 = vmatmul.mubr.bf16.gmra.mrb[4].mxu0 %v3608_v49  ;;  %v3072_v49 = vld [vmem:[#allocation10 + $0x10] sm:$0xff]   ;;  %2742 = vmatprep.subr.bf16.mxu1 %v3071_v61  ;;  %v762_v61 = vsub.s32 1, %v757_v42 }
 0x18b   :  { %1880 = vmatmul.mubr.bf16.gmra.mrb[20].mxu1 %v2403_v60  ;;  %1724 = vmatprep.mubr.bf16.mxu0 %v3610_v59  ;;  %v3075_v59 = vld [vmem:[#allocation10 + $0x60] sm:$0xff]  }
 0x18c   :  { %1697 = vmatpush1.bf16.msra.mxu0 %v3024_v62 }
 0x18d   :  { %1698 = vmatprep.subr.bf16.mxu0 %v3030_v40  ;;  %2743 = vmatpush3.bf16.msra.mxu1 %v3072_v49 }
 0x18e   :  { %2744 = vmatprep.subr.bf16.mxu1 %v3073_v52 }
 0x190   :  { %1699 = vmatpush1.bf16.msra.mxu0 %v3028_v47 }
 0x191   :  { %1700 = vmatprep.subr.bf16.mxu0 %v3033_v28  ;;  %2745 = vmatpush3.bf16.msra.mxu1 %v3074_v51 }
 0x192   :  { %2746 = vmatprep.subr.bf16.mxu1 %v3075_v59 }
 0x194   :  { %1701 = vmatpush1.bf16.msra.mxu0 %v3031_v33 }
 0x195   :  { %1702 = vmatprep.subr.bf16.mxu0 %v3036_v31  ;;  %2747 = vmatpush3.bf16.msra.mxu1 %v3076_v26 }
 0x196   :  { %2748 = vmatprep.subr.bf16.mxu1 %v3077_v19 }
 0x198   :  { %1703 = vmatpush1.bf16.msra.mxu0 %v3034_v22 }
 0x199   :  { %1704 = vmatprep.subr.bf16.mxu0 %v3039_v32  ;;  %2749 = vmatpush3.bf16.msra.mxu1 %v3078_v46 }
 0x19a   :  { %2750 = vmatprep.subr.bf16.mxu1 %v3079_v11 }
 0x19c   :  { %1705 = vmatpush1.bf16.msra.mxu0 %v3037_v44 }
 0x19d   :  { %1706 = vmatprep.subr.bf16.mxu0 %v3042_v3  ;;  %2751 = vmatpush3.bf16.msra.mxu1 %v3080_v37 }
 0x19e   :  { %2752 = vmatprep.subr.bf16.mxu1 %v3081_v7 }
 0x1a0   :  { %1707 = vmatpush1.bf16.msra.mxu0 %v3040_v18 }
 0x1a1   :  { %1708 = vmatprep.subr.bf16.mxu0 %v3045_v29  ;;  %2753 = vmatpush3.bf16.msra.mxu1 %v3082_v63 }
 0x1a2   :  { %2786 = vmatprep.subr.bf16.mxu1 %v3626_v21 }
 0x1a4   :  { %1709 = vmatpush1.bf16.msra.mxu0 %v3043_v24 }
 0x1a5   :  { %1710 = vmatprep.subr.bf16.mxu0 %v3048_v48 }
 0x1a8   :  { %1711 = vmatpush1.bf16.msra.mxu0 %v3046_v4 }
 0x1a9   :  { %1712 = vmatprep.subr.bf16.mxu0 %v3051_v1 }
 0x1ac   :  { %1713 = vmatpush1.bf16.msra.mxu0 %v3049_v9 }
 0x1ad   :  { %1714 = vmatprep.subr.bf16.mxu0 %v3054_v53 }
 0x1b0   :  { %1715 = vmatpush1.bf16.msra.mxu0 %v3052_v13 }
 0x1b1   :  { %1716 = vmatprep.subr.bf16.mxu0 %v3057_v14 }
 0x1b4   :  { %1717 = vmatpush1.bf16.msra.mxu0 %v3055_v43 }
 0x1b5   :  { %1718 = vmatprep.subr.bf16.mxu0 %v3060_v20 }
 0x1b8   :  { %1719 = vmatpush1.bf16.msra.mxu0 %v3058_v30 }
 0x1b9   :  { %1720 = vmatprep.subr.bf16.mxu0 %v3063_v25 }
 0x1bc   :  { %1721 = vmatpush1.bf16.msra.mxu0 %v3061_v16 }
 0x1bd   :  { %1722 = vmatprep.subr.bf16.mxu0 %v3066_v45 }
 0x1c0   :  { %1723 = vmatpush1.bf16.msra.mxu0 %v3064_v55 }
 0x1c3   :  { %1725 = vmatmul.mubr.bf16.vlgmr.msra.gmra.mrb[0].mxu0 %v3614_v38  ;;  %v754_v38 = vld [vmem:[%s3654_s3] sm:$0x7] }
 0x1c4   :  { %1734 = vmatprep.mubr.bf16.mxu0 %v3617_v5  ;;  %v767_v39 = vrot.slane %v754_v38, %v766_v2  ;;  %v759_v49 = vrot.slane %v754_v38, %v758_v35  ;;  %v763_v52 = vrot.slane %v754_v38, %v762_v61  ;;  %v3085_v38 = vld [vmem:[#allocation10 + $0x90] sm:$0xff]  }
 0x1cb   :  { %1735 = vmatmul.mubr.bf16.gmra.mrb[4].mxu0 %v2403_v60 }
 0x213   :  { %v2670_v23 = vpop.f32.mrb[0].mxu1 }
 0x214   :  { %v2671_v41 = vpop.f32.mrb[1].mxu1 }
 0x215   :  { %v2672_v54 = vadd.f32 %v2671_v41, %v2670_v23  ;;  %v2673_v50 = vpop.f32.mrb[2].mxu1 }
 0x216   :  { %v2674_v27 = vpop.f32.mrb[3].mxu1 }
 0x217   :  { %v2675_v8 = vadd.f32 %v2674_v27, %v2673_v50  ;;  %v1778_v36 = vadd.f32 %v2672_v54, %v767_v39 }
 0x219   :  { %v1781_v47 = vadd.f32 %v2675_v8, %v767_v39 }
 0x228   :  { %v2676_v6 = vpop.f32.mrb[4].mxu1 }
 0x229   :  { %v2677_v57 = vpop.f32.mrb[5].mxu1 }
 0x22a   :  { %v2678_v10 = vadd.f32 %v2677_v57, %v2676_v6  ;;  %v2679_v12 = vpop.f32.mrb[6].mxu1  ;;  %v3084_v57 = vld [vmem:[#allocation10 + $0x88] sm:$0xff]  }
 0x22b   :  { %v2680_v0 = vpop.f32.mrb[7].mxu1 }
 0x22c   :  { %v1786_v44 = vadd.f32 %v2678_v10, %v767_v39 }
 0x235   :  { %v2698_v5 = vpop.f32.mrb[8].mxu1 }
 0x236   :  { %v2699_v15 = vpop.f32.mrb[9].mxu1 }
 0x237   :  { %v2700_v62 = vadd.f32 %v2699_v15, %v2698_v5  ;;  %v2701_v60 = vpop.f32.mrb[10].mxu1  ;;  %v3086_v15 = vld [vmem:[#allocation10 + $0x98] sm:$0xff]  }
 0x238   :  { %v2702_v40 = vpop.f32.mrb[11].mxu1 }
 0x239   :  { %v1826_v28 = vadd.f32 %v2700_v62, %v1778_v36  ;;  %v2703_v33 = vadd.f32 %v2702_v40, %v2701_v60  ;;  %v3087_v36 = vld [vmem:[#allocation10 + $0xa0] sm:$0xff]   ;;  %v3088_v62 = vld [vmem:[#allocation10 + $0xa8] sm:$0xff]   ;;  %v3090_v60 = vld [vmem:[#allocation10 + $0xb8] sm:$0xff]  }
 0x23b   :  { %v1829_v31 = vadd.f32 %v2703_v33, %v1781_v47  ;;  %v3092_v33 = vld [vmem:[#allocation11 + $0x8] sm:$0xff]  }
 0x23d   :  { %v2704_v22 = vpop.f32.mrb[12].mxu1 }
 0x23e   :  { %v2705_v32 = vpop.f32.mrb[13].mxu1 }
 0x23f   :  { %v2706_v3 = vadd.f32 %v2705_v32, %v2704_v22  ;;  %v2707_v18 = vpop.f32.mrb[14].mxu1  ;;  %v3094_v22 = vld [vmem:[#allocation11 + $0x18] sm:$0xff]   ;;  %v3095_v32 = vld [vmem:[#allocation11 + $0x20] sm:$0xff]  }
 0x240   :  { %v2708_v29 = vpop.f32.mrb[15].mxu1  ;;  %v3098_v18 = vld [vmem:[#allocation11 + $0x38] sm:$0xff]  }
 0x241   :  { %v1834_v24 = vadd.f32 %v2706_v3, %v1786_v44  ;;  %v3096_v44 = vld [vmem:[#allocation11 + $0x28] sm:$0xff]   ;;  %v3097_v3 = vld [vmem:[#allocation11 + $0x30] sm:$0xff]  }
 0x256   :  { %v2726_v48 = vpop.f32.mrb[16].mxu1 }
 0x257   :  { %v2727_v4 = vpop.f32.mrb[17].mxu1 }
 0x258   :  { %v2728_v1 = vadd.f32 %v2727_v4, %v2726_v48  ;;  %v2729_v9 = vpop.f32.mrb[18].mxu1 }
 0x259   :  { %v2730_v53 = vpop.f32.mrb[19].mxu1 }
 0x25a   :  { %v1874_v13 = vadd.f32 %v2728_v1, %v1826_v28  ;;  %v2731_v14 = vadd.f32 %v2730_v53, %v2729_v9  ;;  %v3091_v28 = vld [vmem:[#allocation11] sm:$0xff]  }
 0x25c   :  { %v1877_v43 = vadd.f32 %v2731_v14, %v1829_v31  ;;  %v1889_v20 = vmax.f32 %v1874_v13, 0.0  ;;  %v3093_v31 = vld [vmem:[#allocation11 + $0x10] sm:$0xff]  }
 0x25e   :  { %v1892_v30 = vmax.f32 %v1877_v43, 0.0  ;;  %v2732_v25 = vpop.f32.mrb[20].mxu1 }
 0x25f   :  { %v2733_v16 = vpop.f32.mrb[21].mxu1 }
 0x260   :  { %v2734_v45 = vadd.f32 %v2733_v16, %v2732_v25  ;;  %v2735_v55 = vpop.f32.mrb[22].mxu1  ;;  %v1898_v56 = vpack.c.bf16 %v1892_v30, %v1889_v20  ;;  %v2549_v30 = vld [vmem:[%s3656_s5] ss:$0 sm:$0xff] }
 0x261   :  { %v2736_v58 = vpop.f32.mrb[23].mxu1 }
 0x262   :  { %v1882_v34 = vadd.f32 %v2734_v45, %v1834_v24 }
 0x264   :  { %v1895_v40 = vmax.f32 %v1882_v34, 0.0 }
 0x266   :  { %v1901_v47 = vpack.c.bf16 %v1895_v40, %v1895_v40 }
 0x296   :  { %v1726_v51 = vpop.f32.mrb[0].mxu0 }
 0x297   :  { %v2826_v59 = vadd.f32 %v1726_v51, %v759_v49  ;;  %v1728_v26 = vpop.f32.mrb[1].mxu0 }
 0x298   :  { %v2827_v19 = vadd.f32 %v1728_v26, %v763_v52  ;;  %v1730_v46 = vpop.f32.mrb[2].mxu0 }
 0x299   :  { %v2828_v23 = vadd.f32 %v1730_v46, %v759_v49  ;;  %v1732_v41 = vpop.f32.mrb[3].mxu0  ;;  %v1887_v50 = vmax.f32 %v2826_v59, 0.0 }
 0x29a   :  { %v2829_v54 = vadd.f32 %v1732_v41, %v763_v52  ;;  %v1888_v8 = vmax.f32 %v2827_v19, 0.0 }
 0x29b   :  { %v1890_v27 = vmax.f32 %v2828_v23, 0.0 }
 0x29c   :  { %v1891_v11 = vmax.f32 %v2829_v54, 0.0 }
 0x29d   :  { %v1896_v37 = vpack.c.bf16 %v1890_v27, %v1887_v50 }
 0x29e   :  { %v1897_v7 = vpack.c.bf16 %v1891_v11, %v1888_v8  ;;  %v1736_v63 = vpop.f32.mrb[4].mxu0 }
 0x29f   :  { %v2830_v17 = vadd.f32 %v1736_v63, %v759_v49  ;;  %v1738_v6 = vpop.f32.mrb[5].mxu0 }
 0x2a0   :  { %v2831_v10 = vadd.f32 %v1738_v6, %v763_v52  ;;  %v1740_v12 = vpop.f32.mrb[6].mxu0  ;;  %2133 = vmatprep.mubr.bf16.mxu1 %v1897_v7  ;;  %v2577_v7 = vld [vmem:[%s3658_s7] ss:$0 sm:$0xff] }
 0x2a1   :  { %v1741_v0 = vpop.f32.mrb[7].mxu0  ;;  %2134 = vmatmul.mubr.bf16.vlgmr.msra.gmra.mrb[24].mxu1 %v1896_v37  ;;  %v1893_v2 = vmax.f32 %v2830_v17, 0.0 }
 0x2a2   :  { %v1894_v42 = vmax.f32 %v2831_v10, 0.0  ;;  %2787 = vmatpush3.bf16.msra.mxu1 %v3626_v21  ;;  %v3089_v21 = vld [vmem:[#allocation10 + $0xb0] sm:$0xff]  }
 0x2a3   :  { %2788 = vmatprep.subr.bf16.mxu1 %v3084_v57  ;;  %v1899_v5 = vpack.c.bf16 %v1893_v2, %v1893_v2 }
 0x2a4   :  { %v1900_v39 = vpack.c.bf16 %v1894_v42, %v1894_v42 }
 0x2a6   :  { %2789 = vmatpush3.bf16.msra.mxu1 %v3084_v57  ;;  %2141 = vmatprep.mubr.bf16.mxu1 %v1900_v39 }
 0x2a7   :  { %2790 = vmatprep.subr.bf16.mxu1 %v3085_v38 }
 0x2a9   :  { %2142 = vmatmul.mubr.bf16.gmra.mrb[28].mxu1 %v1899_v5 }
 0x2aa   :  { %2791 = vmatpush3.bf16.msra.mxu1 %v3085_v38  ;;  %2802 = vmatprep.mubr.bf16.mxu1 %v1898_v56 }
 0x2ab   :  { %2792 = vmatprep.subr.bf16.mxu1 %v3086_v15 }
 0x2ae   :  { %2793 = vmatpush3.bf16.msra.mxu1 %v3086_v15 }
 0x2af   :  { %2794 = vmatprep.subr.bf16.mxu1 %v3087_v36 }
 0x2b2   :  { %2795 = vmatpush3.bf16.msra.mxu1 %v3087_v36 }
 0x2b3   :  { %2796 = vmatprep.subr.bf16.mxu1 %v3088_v62 }
 0x2b6   :  { %2797 = vmatpush3.bf16.msra.mxu1 %v3088_v62 }
 0x2b7   :  { %2798 = vmatprep.subr.bf16.mxu1 %v3089_v21 }
 0x2ba   :  { %2799 = vmatpush3.bf16.msra.mxu1 %v3089_v21 }
 0x2bb   :  { %2800 = vmatprep.subr.bf16.mxu1 %v3090_v60 }
 0x2be   :  { %2801 = vmatpush3.bf16.msra.mxu1 %v3090_v60 }
 0x2bf   :  { %2806 = vmatprep.subr.bf16.mxu1 %v3091_v28 }
 0x2c1   :  { %2803 = vmatmul.mubr.bf16.vlgmr.msra.gmra.mrb[32].mxu1 %v1901_v47 }
 0x2c2   :  { %2807 = vmatpush3.bf16.msra.mxu1 %v3091_v28 }
 0x2c3   :  { %2808 = vmatprep.subr.bf16.mxu1 %v3092_v33 }
 0x2c6   :  { %2809 = vmatpush3.bf16.msra.mxu1 %v3092_v33 }
 0x2c7   :  { %2810 = vmatprep.subr.bf16.mxu1 %v3093_v31 }
 0x2ca   :  { %2811 = vmatpush3.bf16.msra.mxu1 %v3093_v31 }
 0x2cb   :  { %2812 = vmatprep.subr.bf16.mxu1 %v3094_v22 }
 0x2ce   :  { %2813 = vmatpush3.bf16.msra.mxu1 %v3094_v22 }
 0x2cf   :  { %2814 = vmatprep.subr.bf16.mxu1 %v3095_v32 }
 0x2d2   :  { %2815 = vmatpush3.bf16.msra.mxu1 %v3095_v32 }
 0x2d3   :  { %2816 = vmatprep.subr.bf16.mxu1 %v3096_v44 }
 0x2d6   :  { %2817 = vmatpush3.bf16.msra.mxu1 %v3096_v44 }
 0x2d7   :  { %2818 = vmatprep.subr.bf16.mxu1 %v3097_v3 }
 0x2da   :  { %2819 = vmatpush3.bf16.msra.mxu1 %v3097_v3 }
 0x2db   :  { %2820 = vmatprep.subr.bf16.mxu1 %v3098_v18 }
 0x2de   :  { %2821 = vmatpush3.bf16.msra.mxu1 %v3098_v18 }
 0x374   :  { %v2754_v29 = vpop.f32.mrb[24].mxu1 }
 0x375   :  { %v2755_v24 = vpop.f32.mrb[25].mxu1 }
 0x376   :  { %v2756_v48 = vadd.f32 %v2755_v24, %v2754_v29  ;;  %v2757_v4 = vpop.f32.mrb[26].mxu1 }
 0x377   :  { %v2758_v1 = vpop.f32.mrb[27].mxu1 }
 0x378   :  { %v2759_v9 = vadd.f32 %v2758_v1, %v2757_v4  ;;  %v2136_v45 = vadd.f32 %v2756_v48, %v2549_v30 }
 0x37a   :  { %v2139_v35 = vadd.f32 %v2759_v9, %v2549_v30 }
 0x37c   :  { %v2760_v53 = vpop.f32.mrb[28].mxu1 }
 0x37d   :  { %v2761_v13 = vpop.f32.mrb[29].mxu1 }
 0x37e   :  { %v2762_v14 = vadd.f32 %v2761_v13, %v2760_v53  ;;  %v2763_v43 = vpop.f32.mrb[30].mxu1 }
 0x37f   :  { %v2764_v20 = vpop.f32.mrb[31].mxu1 }
 0x380   :  { %v2144_v25 = vadd.f32 %v2762_v14, %v2549_v30 }
 0x394   :  { %v2804_v16 = vpop.f32.mrb[32].mxu1 }
 0x395   :  { %v2192_v55 = vadd.f32 %v2804_v16, %v2144_v25  ;;  %v2183_v56 = vpop.f32.mrb[33].mxu1 }
 0x396   :  { %v2184_v58 = vadd.f32 %v2183_v56, %v2136_v45  ;;  %v2805_v34 = vpop.f32.mrb[34].mxu1 }
 0x397   :  { %v2576_v61 = vmul.f32 -1.442695, %v2192_v55  ;;  %v2186_v49 = vpop.f32.mrb[35].mxu1 }
 0x398   :  { %v2574_v52 = vmul.f32 -1.442695, %v2184_v58  ;;  %v2187_v51 = vadd.f32 %v2186_v49, %v2139_v35 }
 0x399   :  { %3141 = vpow2.f32 %v2576_v61 }
 0x39a   :  { %3143 = vpow2.f32 %v2574_v52  ;;  %v2575_v59 = vmul.f32 -1.442695, %v2187_v51 }
 0x39c   :  { %3145 = vpow2.f32 %v2575_v59 }
 0x3a3   :  { %v3142_v26 = vpop.eup %3141 }
 0x3a4   :  { %v3144_v19 = vpop.eup %3143  ;;  %v2208_v46 = vadd.f32 1.0, %v3142_v26 }
 0x3a5   :  { %v2206_v23 = vadd.f32 1.0, %v3144_v19 }
 0x3a6   :  { %v3146_v41 = vpop.eup %3145  ;;  %3147 = vrcp.f32 %v2208_v46 }
 0x3a7   :  { %v2207_v54 = vadd.f32 1.0, %v3146_v41  ;;  %3149 = vrcp.f32 %v2206_v23 }
 0x3a9   :  { %3151 = vrcp.f32 %v2207_v54 }
 0x3b0   :  { %v3148_v50 = vpop.eup %3147 }
 0x3b1   :  { %v3150_v27 = vpop.eup %3149  ;;  %v2216_v37 = vpack.c.bf16 %v3148_v50, %v3148_v50 }
 0x3b3   :  { %v3152_v8 = vpop.eup %3151 }
 0x3b4   :  { %v2215_v11 = vpack.c.bf16 %v3152_v8, %v3150_v27 }
 0x3b6   :  { %2822 = vmatprep.mubr.bf16.mxu1 %v2215_v11 }
 0x3b7   :  { %2823 = vmatmul.mubr.bf16.vlgmr.msra.gmra.mrb[36].mxu1 %v2216_v37 }
 0x48a   :  { %v2824_v63 = vpop.f32.mrb[36].mxu1 }
 0x48b   :  { %v2331_v17 = vadd.f32 %v2824_v63, %v2577_v7  ;;  %v2322_v6 = vpop.f32.mrb[37].mxu1 }
 0x48c   :  { %v2323_v57 = vadd.f32 %v2577_v7, %v2322_v6  ;;  %v2825_v10 = vpop.f32.mrb[38].mxu1 }
 0x48d   :  { %2338 = vst [vmem:[#allocation13 + $0x10] sm:$0xff] %v2331_v17  ;;  %v2325_v12 = vpop.f32.mrb[39].mxu1 }
 0x48e   :  { %2336 = vst [vmem:[#allocation13] sm:$0xff] %v2323_v57  ;;  %v2326_v0 = vadd.f32 %v2577_v7, %v2325_v12 }
 0x490   :  { %2337 = vst [vmem:[#allocation13 + $0x8] sm:$0xff] %v2326_v0 }
 0x491   :  { %3264 = shalt.err (!%p3261_p13)
}
 0x492   :  { %s3265_s4 = scalar_lea.hbm %s3659_s8, 384 }
 0x493   :  { %p3266_p0 = scmp.ne.s32.totalorder %s3659_s8, %s3265_s4  ;;  %p3269_p1 = scmp.lt.u32.totalorder %s3265_s4, %s3659_s8 }
 0x495   :  { %p3271_p2 = pnand %p3269_p1, %p3266_p0 }
 0x497   :  { %3274 = shalt.err (!%p3271_p2)
}
 0x498   :  { %s3295_s15 = smov 128   ;;  %s3296_s16 = smov 8  }
 0x499   :  { %2350 = dma.vmem_to_hbm [thread:$0]  %s2345_s11, 384, %s3659_s8, [#allocation5], %s3295_s15, %s3295_s15, %s3296_s16  }
 0x49a   :  { %3283 = dma.done.wait [#allocation5], 384  }
 0x49b   :  { %3284 = vsyncadd [#allocation5], 4294966912 }
 0x49c   :  { %2354 = vsyncpa [#allocation4], 1 }
 0x49d   :  { %2355 = vsyncpa [#allocation9], 1 }
 0x49e   :  { %2356 = vsyncpa [#allocation12], 1 }
 0x49f   :  { %2357 = vsyncpa [#allocation5], 1 }
 0x4a0   :  { %2358 = vsyncpa [#allocation6], 1 }

// kernel: tpu_custom_call.1
= control target key start
LH: loop header
LB: loop body
LE: loop exit
PB: predicated region body
PF: predicated region fallthrough
CT: control target
= control target key end

     0   :  { %13 = vsyncpa [#allocation4], 0  ;;  %s3651_s0 = inlined_call_operand.hbm [shape: bf16[6,24,128], index: 0, kind: input, shape index: {}]   ;;  %s3652_s1 = inlined_call_operand.vmem [shape: f32[17], index: 1, kind: input, shape index: {}]   ;;  %s3653_s2 = inlined_call_operand.hbm [shape: bf16[768,384], index: 2, kind: input, shape index: {}]   ;;  %s3654_s3 = inlined_call_operand.vmem [shape: f32[1,384], index: 3, kind: input, shape index: {}]   ;;  %s3655_s4 = inlined_call_operand.hbm [shape: bf16[384,128], index: 4, kind: input, shape index: {}]   ;;  %s3656_s5 = inlined_call_operand.vmem [shape: f32[1,128], index: 5, kind: input, shape index: {}]   ;;  %s3657_s6 = inlined_call_operand.hbm [shape: bf16[128,128], index: 6, kind: input, shape index: {}]   ;;  %s3658_s7 = inlined_call_operand.vmem [shape: f32[1,128], index: 7, kind: input, shape index: {}]   ;;  %s3659_s8 = inlined_call_operand.hbm [shape: f32[24,128], index: 8, kind: output, shape index: {}]  }
   0x1   :  { %14 = vsyncpa [#allocation6], 0 }
   0x2   :  { %15 = vsyncpa [#allocation9], 0 }
   0x3   :  { %16 = vsyncpa [#allocation12], 0 }
   0x4   :  { %17 = vsyncpa [#allocation5], 0  ;;  %s3285_s27 = smov [#allocation8]   ;;  %s3153_s9 = scalar_lea.hbm %s3653_s2, 18432 }
   0x5   :  { %s45_s28 = sshll.u32 %s3285_s27, 4  ;;  %p3154_p0 = scmp.ne.s32.totalorder %s3653_s2, %s3153_s9  ;;  %s46_s28 = int_to_ptr.vmem [resolvable:$true] %s45_s28 }
   0x6   :  { %p3157_p1 = scmp.lt.u32.totalorder %s3153_s9, %s3653_s2 }
   0x8   :  { %p3159_p2 = pnand %p3157_p1, %p3154_p0 }
   0xa   :  { %3162 = shalt.err (!%p3159_p2)
}
   0xb   :  { %s3163_s14 = scalar_lea.vmem %s46_s28, 18432  ;;  %p3168_p4 = scmp.lt.s32.totalorder %s46_s28, %s46_s28 }
   0xc   :  { %p3164_p3 = scmp.ne.s32.totalorder %s46_s28, %s3163_s14  ;;  %p3169_p5 = scmp.lt.s32.totalorder %s3163_s14, %s3163_s14 }
   0xe   :  { %p3170_p6 = por %p3169_p5, %p3168_p4 }
  0x10   :  { %p3171_p7 = pnand %p3170_p6, %p3164_p3 }
  0x12   :  { %3174 = shalt.err (!%p3171_p7)
}
  0x13   :  { %s3286_s15 = smov 192   ;;  %s3287_s16 = smov 12  }
  0x14   :  { %51 = dma.hbm_to_vmem [thread:$0]  %s3653_s2, 18432, %s46_s28, [#allocation9], %s3286_s15, %s3286_s15, %s3287_s16  }
  0x15   :  { %s3288_s19 = smov [#allocation3]   ;;  %s3175_s23 = scalar_lea.hbm %s3651_s0, 1152 }
  0x16   :  { %s23_s20 = sshll.u32 %s3288_s19, 4  ;;  %p3176_p8 = scmp.ne.s32.totalorder %s3651_s0, %s3175_s23  ;;  %s24_s20 = int_to_ptr.vmem [resolvable:$true] %s23_s20 }
  0x17   :  { %p3179_p9 = scmp.lt.u32.totalorder %s3175_s23, %s3651_s0 }
  0x19   :  { %p3181_p10 = pnand %p3179_p9, %p3176_p8 }
  0x1b   :  { %3184 = shalt.err (!%p3181_p10)
}
  0x1c   :  { %s3185_s29 = scalar_lea.vmem %s24_s20, 1152  ;;  %p3190_p12 = scmp.lt.s32.totalorder %s24_s20, %s24_s20 }
  0x1d   :  { %p3186_p11 = scmp.ne.s32.totalorder %s24_s20, %s3185_s29  ;;  %p3191_p13 = scmp.lt.s32.totalorder %s3185_s29, %s3185_s29 }
  0x1f   :  { %p3192_p0 = por %p3191_p13, %p3190_p12 }
  0x21   :  { %p3193_p1 = pnand %p3192_p0, %p3186_p11 }
  0x23   :  { %3196 = shalt.err (!%p3193_p1)
}
  0x24   :  { %s3289_s2 = smov 64   ;;  %s3290_s28 = smov 4  }
  0x25   :  { %29 = dma.hbm_to_vmem [thread:$0]  %s3651_s0, 1152, %s24_s20, [#allocation4], %s3289_s2, %s3289_s2, %s3290_s28  }
  0x26   :  { %s36_s12 = sshll.u32 %s3652_s1, 4  ;;  %s37_s12 = int_to_ptr.vmem [resolvable:$true] %s36_s12 }
  0x27   :  { %s3197_s13 = scalar_lea.vmem %s37_s12, 16  ;;  %p3202_p3 = scmp.lt.s32.totalorder %s37_s12, %s37_s12 }
  0x28   :  { %p3198_p2 = scmp.ne.s32.totalorder %s37_s12, %s3197_s13  ;;  %p3203_p4 = scmp.lt.s32.totalorder %s3197_s13, %s3197_s13 }
  0x2a   :  { %p3204_p5 = por %p3203_p4, %p3202_p3 }
  0x2c   :  { %p3205_p6 = pnand %p3204_p5, %p3198_p2 }
  0x2e   :  { %3208 = shalt.err (!%p3205_p6)
}
  0x2f   :  { %s3291_s14 = smov [#allocation7]   ;;  %s3292_s15 = smov [#allocation10]  }
  0x30   :  { %39 = dma.vmem_to_smem %s37_s12, 16, %s3291_s14, [#allocation6]  }
  0x31   :  { %s59_s16 = sshll.u32 %s3292_s15, 4  ;;  %s3293_s17 = smov [#allocation11]   ;;  %s60_s16 = int_to_ptr.vmem [resolvable:$true] %s59_s16 }
  0x32   :  { %s73_s18 = sshll.u32 %s3293_s17, 4  ;;  %s3209_s20 = scalar_lea.hbm %s3655_s4, 3072  ;;  %s74_s18 = int_to_ptr.vmem [resolvable:$true] %s73_s18 }
  0x33   :  { %p3210_p7 = scmp.ne.s32.totalorder %s3655_s4, %s3209_s20  ;;  %p3213_p8 = scmp.lt.u32.totalorder %s3209_s20, %s3655_s4 }
  0x35   :  { %p3215_p9 = pnand %p3213_p8, %p3210_p7 }
  0x37   :  { %3218 = shalt.err (!%p3215_p9)
}
  0x38   :  { %s3219_s24 = scalar_lea.vmem %s60_s16, 3072  ;;  %p3224_p11 = scmp.lt.s32.totalorder %s60_s16, %s60_s16 }
  0x39   :  { %p3220_p10 = scmp.ne.s32.totalorder %s60_s16, %s3219_s24  ;;  %p3225_p12 = scmp.lt.s32.totalorder %s3219_s24, %s3219_s24 }
  0x3b   :  { %p3226_p13 = por %p3225_p12, %p3224_p11 }
  0x3d   :  { %p3227_p0 = pnand %p3226_p13, %p3220_p10 }
  0x3f   :  { %3230 = shalt.err (!%p3227_p0)
}
  0x40   :  { %65 = dma.hbm_to_vmem [thread:$0]  %s3655_s4, 3072, %s60_s16, [#allocation9], %s3289_s2, %s3289_s2, %s3290_s28  }
  0x41   :  { %s3231_s30 = scalar_lea.hbm %s3657_s6, 1024 }
  0x42   :  { %p3232_p1 = scmp.ne.s32.totalorder %s3657_s6, %s3231_s30  ;;  %p3235_p2 = scmp.lt.u32.totalorder %s3231_s30, %s3657_s6 }
  0x44   :  { %p3237_p3 = pnand %p3235_p2, %p3232_p1 }
  0x46   :  { %3240 = shalt.err (!%p3237_p3)
}
  0x47   :  { %s3241_s13 = scalar_lea.vmem %s74_s18, 1024  ;;  %p3246_p5 = scmp.lt.s32.totalorder %s74_s18, %s74_s18 }
  0x48   :  { %p3242_p4 = scmp.ne.s32.totalorder %s74_s18, %s3241_s13  ;;  %p3247_p6 = scmp.lt.s32.totalorder %s3241_s13, %s3241_s13 }
  0x4a   :  { %p3248_p7 = por %p3247_p6, %p3246_p5 }
  0x4c   :  { %p3249_p8 = pnand %p3248_p7, %p3242_p4 }
  0x4e   :  { %3252 = shalt.err (!%p3249_p8)
}
  0x4f   :  { %79 = dma.hbm_to_vmem [thread:$0]  %s3657_s6, 1024, %s74_s18, [#allocation12], %s3289_s2, %s3289_s2, %s3290_s28  }
  0x50   :  { %3275 = dma.done.wait [#allocation4], 1152  }
  0x51   :  { %3276 = vsyncadd [#allocation4], 4294966144 }
  0x52   :  { %3277 = dma.done.wait [#allocation6], 16  }
  0x53   :  { %3278 = vsyncadd [#allocation6], 4294967280 }
  0x54   :  { %3279 = dma.done.wait [#allocation9], 21504  }
  0x55   :  { %3280 = vsyncadd [#allocation9], 4294945792 }
  0x56   :  { %3281 = dma.done.wait [#allocation12], 1024  }
  0x57   :  { %3282 = vsyncadd [#allocation12], 4294966272 }
  0x58   :  { %97 = sfence }
  0x59   :  { %v3402_v0 = vld [vmem:[#allocation3 + $0x8] sm:$0xff]   ;;  %v3404_v1 = vld [vmem:[#allocation3] sm:$0xff]   ;;  %v3406_v2 = vld [vmem:[#allocation3 + $0x10] sm:$0xff]   ;;  %s2359_s6 = sld [smem:[#allocation7 + $0x1]]  ;;  %s2369_s2 = sld [smem:[#allocation7 + $0xb]] }
  0x5a   :  { %v119_v3 = vunpack.c.h.bf16 %v3402_v0  ;;  %v3666_v4 = vunpack.c.l.bf16 %v3404_v1  ;;  %v3410_v5 = vld [vmem:[#allocation3 + $0x28] sm:$0xff]   ;;  %v148_v6 = vld [vmem:[#allocation3 + $0x20] sm:$0xff]   ;;  %v2610_v7 = vunpack.c.l.bf16 %v3406_v2  ;;  %v2607_v8 = vunpack.c.h.bf16 %v3404_v1  ;;  %v3416_v9 = vld [vmem:[#allocation3 + $0x30] sm:$0xff]   ;;  %s195_s28 = sld [smem:[#allocation7]]  ;;  %s2362_s16 = sld [smem:[#allocation7 + $0x4]] }
  0x5b   :  { %v2618_v10 = vunpack.c.l.bf16 %v3410_v5  ;;  %v151_v11 = vunpack.c.h.bf16 %v148_v6  ;;  %v2623_v12 = vunpack.c.h.bf16 %v3416_v9  ;;  %v3665_v13 = vunpack.c.l.bf16 %v3416_v9  ;;  %v3427_v14 = vld [vmem:[#allocation3 + $0x18] sm:$0xff]   ;;  %v3429_v15 = vld [vmem:[#allocation3 + $0x40] sm:$0xff]   ;;  %v2862_v26 = vld [vmem:[#allocation8] ss:$12 sps:$4 sm:$0xff]   ;;  %s2366_s15 = sld [smem:[#allocation7 + $0x8]]  ;;  %s2367_s17 = sld [smem:[#allocation7 + $0x9]] }
  0x5c   :  { %122 = vadd.xlane.f32.xlu1 %v119_v3  ;;  %105 = vadd.xlane.f32.xlu0 %v3666_v4  ;;  %v180_v16 = vld [vmem:[#allocation3 + $0x38] sm:$0xff]   ;;  %v2615_v17 = vunpack.c.h.bf16 %v3427_v14  ;;  %v3664_v18 = vunpack.c.l.bf16 %v3427_v14  ;;  %v3667_v19 = vunpack.c.l.bf16 %v3429_v15  ;;  %v3662_v21 = vunpack.c.h.bf16 %v3406_v2  ;;  %v2863_v29 = vld [vmem:[#allocation8 + $0x1c] ss:$12 sps:$4 sm:$0xff]   ;;  %v2865_v30 = vld [vmem:[#allocation8 + $0x18] ss:$12 sps:$4 sm:$0xff]   ;;  %s2368_s18 = sld [smem:[#allocation7 + $0xa]] }
  0x5d   :  { %v183_v20 = vunpack.c.h.bf16 %v180_v16  ;;  %v3663_v22 = vunpack.c.l.bf16 %v3402_v0  ;;  %v169_v23 = vunpack.c.l.bf16 %v180_v16  ;;  %v3661_v24 = vunpack.c.h.bf16 %v3410_v5  ;;  %v2860_v25 = vld [vmem:[#allocation8 + $0x4] ss:$12 sps:$4 sm:$0xff]   ;;  %v2866_v31 = vld [vmem:[#allocation8 + $0x34] ss:$12 sps:$4 sm:$0xff]   ;;  %v2869_v33 = vld [vmem:[#allocation8 + $0x4c] ss:$12 sps:$4 sm:$0xff]  }
  0x5e   :  { %v3660_v27 = vunpack.c.h.bf16 %v3429_v15  ;;  %v137_v28 = vunpack.c.l.bf16 %v148_v6  ;;  %1590 = vmatprep.subr.bf16.mxu0 %v2860_v25  ;;  %v2868_v32 = vld [vmem:[#allocation8 + $0x30] ss:$12 sps:$4 sm:$0xff]   ;;  %v2871_v34 = vld [vmem:[#allocation8 + $0x48] ss:$12 sps:$4 sm:$0xff]   ;;  %v2874_v36 = vld [vmem:[#allocation8 + $0x60] ss:$12 sps:$4 sm:$0xff]  }
  0x5f   :  { %1591 = vmatpush1.bf16.msra.mxu0 %v2862_v26  ;;  %v2872_v35 = vld [vmem:[#allocation8 + $0x64] ss:$12 sps:$4 sm:$0xff]   ;;  %v2875_v37 = vld [vmem:[#allocation8 + $0x7c] ss:$12 sps:$4 sm:$0xff]   ;;  %v2878_v39 = vld [vmem:[#allocation8 + $0x94] ss:$12 sps:$4 sm:$0xff]  }
  0x60   :  { %124 = vadd.xlane.f32.xlu1 %v2610_v7  ;;  %107 = vadd.xlane.f32.xlu0 %v2607_v8  ;;  %v2877_v38 = vld [vmem:[#allocation8 + $0x78] ss:$12 sps:$4 sm:$0xff]   ;;  %v2880_v40 = vld [vmem:[#allocation8 + $0x90] ss:$12 sps:$4 sm:$0xff]   ;;  %v2883_v42 = vld [vmem:[#allocation8 + $0xa8] ss:$12 sps:$4 sm:$0xff]  }
  0x61   :  { %1592 = vmatprep.subr.bf16.mxu0 %v2863_v29  ;;  %v2881_v41 = vld [vmem:[#allocation8 + $0xac] ss:$12 sps:$4 sm:$0xff]   ;;  %v2884_v43 = vld [vmem:[#allocation8 + $0xc4] ss:$12 sps:$4 sm:$0xff]   ;;  %v2886_v44 = vld [vmem:[#allocation8 + $0xc8] ss:$12 sps:$4 sm:$0xff]  }
  0x62   :  { %v2887_v45 = vld [vmem:[#allocation8 + $0xc0] ss:$12 sps:$4 sm:$0xff]   ;;  %v2888_v46 = vld [vmem:[#allocation8 + $0x8] ss:$12 sps:$4 sm:$0xff]   ;;  %2654 = vmatprep.subr.bf16.mxu1 %v2886_v44  ;;  %v2892_v49 = vld [vmem:[#allocation8 + $0xd8] ss:$12 sps:$4 sm:$0xff]  }
  0x63   :  { %1593 = vmatpush1.bf16.msra.mxu0 %v2865_v30  ;;  %2655 = vmatpush3.bf16.msra.mxu1 %v2888_v46  ;;  %v2889_v47 = vld [vmem:[#allocation8 + $0xdc] ss:$12 sps:$4 sm:$0xff]   ;;  %v2891_v48 = vld [vmem:[#allocation8 + $0xe0] ss:$12 sps:$4 sm:$0xff]   ;;  %v2896_v52 = vld [vmem:[#allocation8 + $0xf8] ss:$12 sps:$4 sm:$0xff]  }
  0x64   :  { %156 = vadd.xlane.f32.xlu1 %v2618_v10  ;;  %154 = vadd.xlane.f32.xlu0 %v151_v11  ;;  %v2893_v50 = vld [vmem:[#allocation8 + $0x20] ss:$12 sps:$4 sm:$0xff]   ;;  %v2897_v53 = vld [vmem:[#allocation8 + $0xf0] ss:$12 sps:$4 sm:$0xff]   ;;  %v2898_v54 = vld [vmem:[#allocation8 + $0x38] ss:$12 sps:$4 sm:$0xff]  }
  0x65   :  { %1594 = vmatprep.subr.bf16.mxu0 %v2866_v31  ;;  %2656 = vmatprep.subr.bf16.mxu1 %v2891_v48  ;;  %v2894_v51 = vld [vmem:[#allocation8 + $0xf4] ss:$12 sps:$4 sm:$0xff]   ;;  %v2899_v55 = vld [vmem:[#allocation8 + $0x10c] ss:$12 sps:$4 sm:$0xff]   ;;  %v2901_v56 = vld [vmem:[#allocation8 + $0x110] ss:$12 sps:$4 sm:$0xff]   ;;  %v3470_v48 = vstv %s2362_s16 }
  0x66   :  { %v2902_v57 = vld [vmem:[#allocation8 + $0x108] ss:$12 sps:$4 sm:$0xff]   ;;  %v2903_v58 = vld [vmem:[#allocation8 + $0x50] ss:$12 sps:$4 sm:$0xff]   ;;  %v2907_v61 = vld [vmem:[#allocation8 + $0x120] ss:$12 sps:$4 sm:$0xff]  }
  0x67   :  { %1595 = vmatpush1.bf16.msra.mxu0 %v2868_v32  ;;  %2657 = vmatpush3.bf16.msra.mxu1 %v2893_v50  ;;  %v2904_v59 = vld [vmem:[#allocation8 + $0x124] ss:$12 sps:$4 sm:$0xff]   ;;  %v2906_v60 = vld [vmem:[#allocation8 + $0x128] ss:$12 sps:$4 sm:$0xff]   ;;  %v2911_v3 = vld [vmem:[#allocation8 + $0x140] ss:$12 sps:$4 sm:$0xff]  }
  0x68   :  { %172 = vadd.xlane.f32.xlu1 %v2623_v12  ;;  %170 = vadd.xlane.f32.xlu0 %v3665_v13  ;;  %v2908_v62 = vld [vmem:[#allocation8 + $0x68] ss:$12 sps:$4 sm:$0xff]   ;;  %v2912_v6 = vld [vmem:[#allocation8 + $0x138] ss:$12 sps:$4 sm:$0xff]   ;;  %v2913_v11 = vld [vmem:[#allocation8 + $0x80] ss:$12 sps:$4 sm:$0xff]  }
  0x69   :  { %1596 = vmatprep.subr.bf16.mxu0 %v2869_v33  ;;  %2658 = vmatprep.subr.bf16.mxu1 %v2896_v52  ;;  %v2909_v63 = vld [vmem:[#allocation8 + $0x13c] ss:$12 sps:$4 sm:$0xff]   ;;  %v2914_v16 = vld [vmem:[#allocation8 + $0x154] ss:$12 sps:$4 sm:$0xff]   ;;  %v2918_v25 = vld [vmem:[#allocation8 + $0x98] ss:$12 sps:$4 sm:$0xff]  }
  0x6a   :  { %v2919_v26 = vld [vmem:[#allocation8 + $0x16c] ss:$12 sps:$4 sm:$0xff]   ;;  %v2922_v29 = vld [vmem:[#allocation8 + $0x168] ss:$12 sps:$4 sm:$0xff]   ;;  %v2923_v30 = vld [vmem:[#allocation8 + $0xb0] ss:$12 sps:$4 sm:$0xff]  }
  0x6b   :  { %1597 = vmatpush1.bf16.msra.mxu0 %v2871_v34  ;;  %2659 = vmatpush3.bf16.msra.mxu1 %v2898_v54  ;;  %v2929_v31 = vld [vmem:[#allocation8 + $0x184] ss:$12 sps:$4 sm:$0xff]   ;;  %v2930_v32 = vld [vmem:[#allocation8 + $0x248] ss:$12 sps:$4 sm:$0xff]   ;;  %s2363_s0 = sld [smem:[#allocation7 + $0x5]]  ;;  %s2370_s19 = sld [smem:[#allocation7 + $0xc]] }
  0x6c   :  { %140 = vadd.xlane.f32.xlu1 %v2615_v17  ;;  %138 = vadd.xlane.f32.xlu0 %v3664_v18  ;;  %s2371_s20 = sld [smem:[#allocation7 + $0xd]]  ;;  %s2360_s1 = sld [smem:[#allocation7 + $0x2]] }
  0x6d   :  { %1598 = vmatprep.subr.bf16.mxu0 %v2872_v35  ;;  %2660 = vmatprep.subr.bf16.mxu1 %v2901_v56  ;;  %s2372_s21 = sld [smem:[#allocation7 + $0xe]]  ;;  %s3456_s22 = sld [smem:[#allocation7 + $0x3]] }
  0x6e   :  { %s3458_s23 = sld [smem:[#allocation7 + $0x6]]  ;;  %s3474_s24 = sld [smem:[#allocation7 + $0x7]] }
  0x6f   :  { %1599 = vmatpush1.bf16.msra.mxu0 %v2874_v36  ;;  %2661 = vmatpush3.bf16.msra.mxu1 %v2903_v58  ;;  %s3476_s25 = sld [smem:[#allocation7 + $0xf]]  ;;  %s3482_s26 = sld [smem:[#allocation7 + $0x10]] }
  0x70   :  { %188 = vadd.xlane.f32.xlu1 %v3667_v19  ;;  %186 = vadd.xlane.f32.xlu0 %v183_v20  ;;  %v2916_v20 = vld [vmem:[#allocation8 + $0x158] ss:$12 sps:$4 sm:$0xff]   ;;  %s3294_s10 = smov [#allocation13]  }
  0x71   :  { %1600 = vmatprep.subr.bf16.mxu0 %v2875_v37  ;;  %2662 = vmatprep.subr.bf16.mxu1 %v2906_v60  ;;  %v3460_v37 = vstv %s2359_s6  ;;  %v3478_v52 = vstv %s2363_s0  ;;  %s2344_s11 = sshll.u32 %s3294_s10, 4  ;;  %s2345_s11 = int_to_ptr.vmem [resolvable:$true] %s2344_s11 }
  0x72   :  { %v3487_v58 = vstv %s2360_s1  ;;  %s3253_s12 = scalar_lea.vmem %s2345_s11, 384  ;;  %p3258_p10 = scmp.lt.s32.totalorder %s2345_s11, %s2345_s11 }
  0x73   :  { %1601 = vmatpush1.bf16.msra.mxu0 %v2877_v38  ;;  %2663 = vmatpush3.bf16.msra.mxu1 %v2908_v62  ;;  %v3462_v38 = vstv %s2369_s2  ;;  %p3254_p9 = scmp.ne.s32.totalorder %s2345_s11, %s3253_s12  ;;  %p3259_p11 = scmp.lt.s32.totalorder %s3253_s12, %s3253_s12 }
  0x74   :  { %126 = vadd.xlane.f32.xlu1 %v3662_v21  ;;  %109 = vadd.xlane.f32.xlu0 %v3663_v22 }
  0x75   :  { %1602 = vmatprep.subr.bf16.mxu0 %v2878_v39  ;;  %2664 = vmatprep.subr.bf16.mxu1 %v2911_v3  ;;  %v3464_v39 = vstv %s195_s28  ;;  %p3260_p12 = por %p3259_p11, %p3258_p10 }
  0x77   :  { %1603 = vmatpush1.bf16.msra.mxu0 %v2880_v40  ;;  %2665 = vmatpush3.bf16.msra.mxu1 %v2913_v11  ;;  %p3261_p13 = pnand %p3260_p12, %p3254_p9 }
  0x78   :  { %174 = vadd.xlane.f32.xlu1 %v169_v23  ;;  %158 = vadd.xlane.f32.xlu0 %v3661_v24  ;;  %v2917_v23 = vld [vmem:[#allocation8 + $0x150] ss:$12 sps:$4 sm:$0xff]  }
  0x79   :  { %1604 = vmatprep.subr.bf16.mxu0 %v2881_v41  ;;  %2666 = vmatprep.subr.bf16.mxu1 %v2916_v20 }
  0x7b   :  { %1605 = vmatpush1.bf16.msra.mxu0 %v2883_v42  ;;  %2667 = vmatpush3.bf16.msra.mxu1 %v2918_v25  ;;  %v3466_v42 = vstv %s2366_s15 }
  0x7c   :  { %190 = vadd.xlane.f32.xlu1 %v3660_v27  ;;  %142 = vadd.xlane.f32.xlu0 %v137_v28  ;;  %v2921_v28 = vld [vmem:[#allocation8 + $0x170] ss:$12 sps:$4 sm:$0xff]  }
  0x7d   :  { %1606 = vmatprep.subr.bf16.mxu0 %v2884_v43  ;;  %2668 = vmatprep.subr.bf16.mxu1 %v2921_v28  ;;  %v3468_v43 = vstv %s2367_s17 }
  0x7f   :  { %1607 = vmatpush1.bf16.msra.mxu0 %v2887_v45  ;;  %2669 = vmatpush3.bf16.msra.mxu1 %v2923_v30 }
  0x80   :  { %1608 = vmatprep.subr.bf16.mxu0 %v2889_v47  ;;  %2682 = vmatprep.subr.bf16.mxu1 %v2930_v32 }
  0x83   :  { %1609 = vmatpush1.bf16.msra.mxu0 %v2892_v49  ;;  %v3472_v49 = vstv %s2368_s18 }
  0x84   :  { %1610 = vmatprep.subr.bf16.mxu0 %v2894_v51 }
  0x87   :  { %1611 = vmatpush1.bf16.msra.mxu0 %v2897_v53  ;;  %v3480_v53 = vstv %s2370_s19 }
  0x88   :  { %1612 = vmatprep.subr.bf16.mxu0 %v2899_v55  ;;  %v3485_v55 = vstv %s2371_s20 }
  0x8b   :  { %1613 = vmatpush1.bf16.msra.mxu0 %v2902_v57 }
  0x8c   :  { %1614 = vmatprep.subr.bf16.mxu0 %v2904_v59  ;;  %v3489_v59 = vstv %s2372_s21 }
  0x8f   :  { %1615 = vmatpush1.bf16.msra.mxu0 %v2907_v61 }
  0x90   :  { %1616 = vmatprep.subr.bf16.mxu0 %v2909_v63  ;;  %v3493_v63 = vstv %s3456_s22 }
  0x93   :  { %1617 = vmatpush1.bf16.msra.mxu0 %v2912_v6 }
  0x94   :  { %1618 = vmatprep.subr.bf16.mxu0 %v2914_v16  ;;  %v3499_v16 = vstv %s3458_s23 }
  0x97   :  { %1619 = vmatpush1.bf16.msra.mxu0 %v2917_v23 }
  0x98   :  { %1620 = vmatprep.subr.bf16.mxu0 %v2919_v26 }
  0x9b   :  { %1621 = vmatpush1.bf16.msra.mxu0 %v2922_v29 }
  0x9c   :  { %1641 = vmatprep.subr.bf16.mxu0 %v2929_v31 }
  0xe9   :  { %v123_v33 = vpop.xlane.xlu1 %122  ;;  %v106_v34 = vpop.xlane.xlu0 %105 }
  0xea   :  { %v128_v46 = vmul.f32 0.0078125, %v123_v33  ;;  %v112_v50 = vmul.f32 0.0078125, %v106_v34 }
  0xec   :  { %v202_v3 = vmul.f32 %v3460_v37, %v128_v46  ;;  %v267_v6 = vmul.f32 %v3462_v38, %v128_v46  ;;  %v197_v20 = vmul.f32 %v3464_v39, %v112_v50  ;;  %v249_v23 = vmul.f32 %v3466_v42, %v112_v50 }
  0xed   :  { %v125_v35 = vpop.xlane.xlu1 %124  ;;  %v108_v36 = vpop.xlane.xlu0 %107  ;;  %v3510_v50 = vstv %s3474_s24 }
  0xee   :  { %v113_v47 = vmul.f32 0.0078125, %v108_v36  ;;  %v129_v51 = vmul.f32 0.0078125, %v125_v35 }
  0xf0   :  { %v250_v11 = vmul.f32 %v3466_v42, %v113_v47  ;;  %v203_v25 = vmul.f32 %v3460_v37, %v129_v51  ;;  %v268_v28 = vmul.f32 %v3462_v38, %v129_v51  ;;  %v198_v29 = vmul.f32 %v3464_v39, %v113_v47 }
  0xf1   :  { %v157_v40 = vpop.xlane.xlu1 %156  ;;  %v155_v41 = vpop.xlane.xlu0 %154 }
  0xf2   :  { %v161_v44 = vmul.f32 0.0078125, %v157_v40  ;;  %v160_v45 = vmul.f32 0.0078125, %v155_v41 }
  0xf4   :  { %v255_v54 = vmul.f32 %v3468_v43, %v161_v44  ;;  %v254_v60 = vmul.f32 %v3468_v43, %v160_v45  ;;  %v224_v51 = vmul.f32 %v3470_v48, %v161_v44 }
  0xf5   :  { %v173_v56 = vpop.xlane.xlu1 %172  ;;  %v171_v57 = vpop.xlane.xlu0 %170 }
  0xf6   :  { %v177_v61 = vmul.f32 0.0078125, %v173_v56  ;;  %v176_v62 = vmul.f32 0.0078125, %v171_v57  ;;  %v258_v30 = vadd.f32 %v255_v54, %v250_v11  ;;  %v257_v34 = vadd.f32 %v254_v60, %v249_v23 }
  0xf7   :  { %v3513_v56 = vstv %s3476_s25  ;;  %v3519_v57 = vstv %s3482_s26  ;;  %v205_v11 = vadd.f32 %v202_v3, %v197_v20  ;;  %v206_v60 = vadd.f32 %v203_v25, %v198_v29 }
  0xf8   :  { %v273_v26 = vmul.f32 %v3480_v53, %v177_v61  ;;  %v272_v31 = vmul.f32 %v3480_v53, %v176_v62  ;;  %v229_v35 = vmul.f32 %v3478_v52, %v177_v61  ;;  %v223_v61 = vmul.f32 %v3470_v48, %v160_v45 }
  0xf9   :  { %v141_v32 = vpop.xlane.xlu1 %140  ;;  %v139_v33 = vpop.xlane.xlu0 %138  ;;  %v228_v23 = vmul.f32 %v3478_v52, %v176_v62 }
  0xfa   :  { %v145_v36 = vmul.f32 0.0078125, %v141_v32  ;;  %v144_v40 = vmul.f32 0.0078125, %v139_v33  ;;  %v276_v41 = vadd.f32 %v273_v26, %v268_v28  ;;  %v275_v46 = vadd.f32 %v272_v31, %v267_v6 }
  0xfb   :  { %v263_v28 = vadd.f32 %v3472_v49, %v258_v30  ;;  %v3525_v31 = vadd.f32 %v3472_v49, %v257_v34  ;;  %v232_v44 = vadd.f32 %v229_v35, %v224_v51  ;;  %v231_v24 = vadd.f32 %v228_v23, %v223_v61 }
  0xfc   :  { %v211_v47 = vmul.f32 %v3487_v58, %v145_v36  ;;  %v210_v54 = vmul.f32 %v3487_v58, %v144_v40  ;;  %v281_v33 = vadd.f32 %v3485_v55, %v276_v41  ;;  %v280_v27 = vadd.f32 %v3485_v55, %v275_v46 }
  0xfd   :  { %v189_v26 = vpop.xlane.xlu1 %188  ;;  %v187_v6 = vpop.xlane.xlu0 %186  ;;  %v286_v3 = vmul.f32 %v3489_v59, %v145_v36  ;;  %v285_v30 = vmul.f32 %v3489_v59, %v144_v40 }
  0xfe   :  { %v193_v32 = vmul.f32 0.0078125, %v189_v26  ;;  %v192_v20 = vmul.f32 0.0078125, %v187_v6  ;;  %v214_v25 = vadd.f32 %v211_v47, %v206_v60  ;;  %v213_v45 = vadd.f32 %v210_v54, %v205_v11 }
  0xff   :  { %v338_v6 = vmax.f32 %v263_v28, %v281_v33  ;;  %v337_v47 = vmax.f32 %v3525_v31, %v280_v27 }
 0x100   :  { %v237_v62 = vmul.f32 %v3499_v16, %v193_v32  ;;  %v291_v29 = vmul.f32 %v3513_v56, %v193_v32  ;;  %v236_v34 = vmul.f32 %v3499_v16, %v192_v20  ;;  %v290_v35 = vmul.f32 %v3513_v56, %v192_v20 }
 0x101   :  { %v127_v51 = vpop.xlane.xlu1 %126  ;;  %v110_v41 = vpop.xlane.xlu0 %109  ;;  %v219_v60 = vadd.f32 %v3493_v63, %v214_v25  ;;  %v218_v61 = vadd.f32 %v3493_v63, %v213_v45 }
 0x102   :  { %v240_v26 = vadd.f32 %v237_v62, %v232_v44  ;;  %v294_v46 = vadd.f32 %v291_v29, %v286_v3  ;;  %v130_v21 = vmul.f32 0.0078125, %v127_v51  ;;  %v114_v36 = vmul.f32 0.0078125, %v110_v41 }
 0x103   :  { %v239_v54 = vadd.f32 %v236_v34, %v231_v24  ;;  %v293_v11 = vadd.f32 %v290_v35, %v285_v30 }
 0x104   :  { %v245_v40 = vadd.f32 %v3510_v50, %v240_v26  ;;  %v299_v23 = vadd.f32 %v3519_v57, %v294_v46  ;;  %v204_v3 = vmul.f32 %v3460_v37, %v130_v21  ;;  %v269_v20 = vmul.f32 %v3462_v38, %v130_v21 }
 0x105   :  { %v244_v32 = vadd.f32 %v3510_v50, %v239_v54  ;;  %v298_v44 = vadd.f32 %v3519_v57, %v293_v11  ;;  %v175_v62 = vpop.xlane.xlu1 %174  ;;  %v199_v30 = vmul.f32 %v3464_v39, %v114_v36  ;;  %v251_v25 = vmul.f32 %v3466_v42, %v114_v36  ;;  %v159_v45 = vpop.xlane.xlu0 %158 }
 0x106   :  { %v302_v29 = vmax.f32 %v219_v60, %v245_v40  ;;  %v341_v24 = vmax.f32 %v338_v6, %v299_v23  ;;  %v178_v51 = vmul.f32 0.0078125, %v175_v62  ;;  %v162_v41 = vmul.f32 0.0078125, %v159_v45 }
 0x107   :  { %v301_v34 = vmax.f32 %v218_v61, %v244_v32  ;;  %v340_v35 = vmax.f32 %v337_v47, %v298_v44  ;;  %v207_v19 = vadd.f32 %v204_v3, %v199_v30 }
 0x108   :  { %v305_v26 = vsub.f32 %v219_v60, %v302_v29  ;;  %v314_v46 = vsub.f32 %v245_v40, %v302_v29  ;;  %v344_v54 = vsub.f32 %v263_v28, %v341_v24  ;;  %v353_v11 = vsub.f32 %v281_v33, %v341_v24 }
 0x109   :  { %v362_v22 = vsub.f32 %v299_v23, %v341_v24  ;;  %v304_v37 = vsub.f32 %v218_v61, %v301_v34  ;;  %v313_v18 = vsub.f32 %v244_v32, %v301_v34  ;;  %v343_v21 = vsub.f32 %v3525_v31, %v340_v35  ;;  %v191_v47 = vpop.xlane.xlu1 %190  ;;  %v143_v28 = vpop.xlane.xlu0 %142 }
 0x10a   :  { %v309_v38 = vmul.f32 1.442695, %v305_v26  ;;  %v318_v6 = vmul.f32 1.442695, %v314_v46  ;;  %v348_v13 = vmul.f32 1.442695, %v344_v54  ;;  %v352_v39 = vsub.f32 %v280_v27, %v340_v35 }
 0x10b   :  { %v357_v4 = vmul.f32 1.442695, %v353_v11  ;;  %v366_v42 = vmul.f32 1.442695, %v362_v22  ;;  %v361_v36 = vsub.f32 %v298_v44, %v340_v35  ;;  %v307_v62 = vmul.f32 1.442695, %v304_v37 }
 0x10c   :  { %3099 = vpow2.f32 %v309_v38  ;;  %v316_v60 = vmul.f32 1.442695, %v313_v18  ;;  %v346_v40 = vmul.f32 1.442695, %v343_v21  ;;  %v355_v33 = vmul.f32 1.442695, %v352_v39 }
 0x10d   :  { %3101 = vpow2.f32 %v318_v6  ;;  %v230_v61 = vmul.f32 %v3478_v52, %v178_v51  ;;  %v274_v31 = vmul.f32 %v3480_v53, %v178_v51  ;;  %v225_v23 = vmul.f32 %v3470_v48, %v162_v41 }
 0x10e   :  { %3103 = vpow2.f32 %v348_v13  ;;  %v256_v27 = vmul.f32 %v3468_v43, %v162_v41  ;;  %v194_v22 = vmul.f32 0.0078125, %v191_v47  ;;  %v364_v32 = vmul.f32 1.442695, %v361_v36 }
 0x10f   :  { %3105 = vpow2.f32 %v357_v4  ;;  %v277_v44 = vadd.f32 %v274_v31, %v269_v20  ;;  %v146_v3 = vmul.f32 0.0078125, %v143_v28  ;;  %v233_v18 = vadd.f32 %v230_v61, %v225_v23  ;;  %v428_v31 = vld [vmem:[#allocation3 + $0xc] sm:$0xf]  ;;  %v3562_v23 = vld [vmem:[#allocation3 + $0x20] sm:$0xff]  }
 0x110   :  { %3107 = vpow2.f32 %v366_v42  ;;  %v259_v29 = vadd.f32 %v256_v27, %v251_v25  ;;  %v238_v24 = vmul.f32 %v3499_v16, %v194_v22  ;;  %v292_v53 = vmul.f32 %v3513_v56, %v194_v22  ;;  %v3564_v27 = vld [vmem:[#allocation3 + $0x38] sm:$0xff]  }
 0x111   :  { %3109 = vpow2.f32 %v307_v62  ;;  %v282_v52 = vadd.f32 %v3485_v55, %v277_v44  ;;  %v212_v13 = vmul.f32 %v3487_v58, %v146_v3  ;;  %v287_v4 = vmul.f32 %v3489_v59, %v146_v3 }
 0x112   :  { %3111 = vpow2.f32 %v316_v60  ;;  %v264_v43 = vadd.f32 %v3472_v49, %v259_v29  ;;  %v241_v48 = vadd.f32 %v238_v24, %v233_v18 }
 0x113   :  { %3113 = vpow2.f32 %v346_v40  ;;  %v215_v20 = vadd.f32 %v212_v13, %v207_v19  ;;  %v295_v16 = vadd.f32 %v292_v53, %v287_v4  ;;  %v431_v53 = vunpack.c.l.bf16 %v428_v31 }
 0x114   :  { %3115 = vpow2.f32 %v355_v33  ;;  %v339_v30 = vmax.f32 %v264_v43, %v282_v52  ;;  %v246_v25 = vadd.f32 %v3510_v50, %v241_v48  ;;  %v481_v13 = vunpack.c.h.bf16 %v3562_v23 }
 0x115   :  { %v220_v45 = vadd.f32 %v3493_v63, %v215_v20  ;;  %3117 = vpow2.f32 %v364_v32  ;;  %v300_v56 = vadd.f32 %v3519_v57, %v295_v16 }
 0x116   :  { %v3100_v55 = vpop.eup %3099 }
 0x117   :  { %v3102_v58 = vpop.eup %3101  ;;  %v303_v34 = vmax.f32 %v220_v45, %v246_v25  ;;  %v342_v51 = vmax.f32 %v339_v30, %v300_v56 }
 0x118   :  { %v3104_v35 = vpop.eup %3103  ;;  %v323_v49 = vadd.f32 %v3102_v58, %v3100_v55 }
 0x119   :  { %v3106_v41 = vpop.eup %3105  ;;  %v306_v59 = vsub.f32 %v220_v45, %v303_v34  ;;  %v315_v26 = vsub.f32 %v246_v25, %v303_v34  ;;  %v345_v21 = vsub.f32 %v264_v43, %v342_v51  ;;  %v354_v57 = vsub.f32 %v282_v52, %v342_v51 }
 0x11a   :  { %v3108_v19 = vpop.eup %3107  ;;  %v371_v46 = vadd.f32 %v3106_v41, %v3104_v35  ;;  %3119 = vrcp.f32 %v323_v49  ;;  %v363_v36 = vsub.f32 %v300_v56, %v342_v51  ;;  %v531_v43 = vunpack.c.h.bf16 %v3564_v27 }
 0x11b   :  { %v3110_v54 = vpop.eup %3109  ;;  %v311_v50 = vmul.f32 1.442695, %v306_v59  ;;  %v320_v63 = vmul.f32 1.442695, %v315_v26  ;;  %v350_v62 = vmul.f32 1.442695, %v345_v21  ;;  %v3668_v26 = vunpack.c.l.bf16 %v3429_v15 }
 0x11c   :  { %v3112_v11 = vpop.eup %3111  ;;  %v374_v37 = vadd.f32 %v3108_v19, %v371_v46  ;;  %v359_v40 = vmul.f32 1.442695, %v354_v57  ;;  %v368_v28 = vmul.f32 1.442695, %v363_v36  ;;  %v3669_v36 = vunpack.c.l.bf16 %v3404_v1 }
 0x11d   :  { %v3114_v38 = vpop.eup %3113  ;;  %v322_v6 = vadd.f32 %v3112_v11, %v3110_v54  ;;  %3121 = vpow2.f32 %v311_v50 }
 0x11e   :  { %v3116_v39 = vpop.eup %3115  ;;  %3123 = vrcp.f32 %v374_v37 }
 0x11f   :  { %3125 = vrcp.f32 %v322_v6  ;;  %v370_v42 = vadd.f32 %v3116_v39, %v3114_v38  ;;  %v3118_v47 = vpop.eup %3117 }
 0x120   :  { %3127 = vpow2.f32 %v320_v63 }
 0x121   :  { %v373_v60 = vadd.f32 %v3118_v47, %v370_v42 }
 0x123   :  { %3129 = vrcp.f32 %v373_v60 }
 0x124   :  { %3131 = vpow2.f32 %v350_v62  ;;  %v3120_v33 = vpop.eup %3119 }
 0x125   :  { %3133 = vpow2.f32 %v359_v40  ;;  %v332_v32 = vmul.f32 %v3120_v33, %v3100_v55  ;;  %v335_v3 = vmul.f32 %v3120_v33, %v3102_v58 }
 0x126   :  { %3135 = vpow2.f32 %v368_v28  ;;  %v3670_v28 = vunpack.c.l.bf16 %v3416_v9  ;;  %v2927_v9 = vld [vmem:[#allocation8 + $0x180] ss:$12 sps:$4 sm:$0xff]  }
 0x127   :  { %v3560_v61 = vpop.eup %3121 }
 0x128   :  { %v3124_v22 = vpop.eup %3123 }
 0x129   :  { %v3126_v44 = vpop.eup %3125  ;;  %v383_v18 = vmul.f32 %v3124_v22, %v3104_v35  ;;  %v386_v29 = vmul.f32 %v3124_v22, %v3106_v41  ;;  %v389_v24 = vmul.f32 %v3124_v22, %v3108_v19  ;;  %v3671_v22 = vunpack.c.l.bf16 %v3427_v14 }
 0x12a   :  { %v3566_v52 = vpop.eup %3127  ;;  %v331_v48 = vmul.f32 %v3126_v44, %v3110_v54  ;;  %v334_v55 = vmul.f32 %v3126_v44, %v3112_v11 }
 0x12b   :  { %v392_v4 = vmul.f32 %v383_v18, %v332_v32  ;;  %v395_v20 = vmul.f32 %v386_v29, %v332_v32  ;;  %v398_v30 = vmul.f32 %v389_v24, %v332_v32  ;;  %v401_v25 = vmul.f32 %v383_v18, %v335_v3 }
 0x12c   :  { %v404_v16 = vmul.f32 %v386_v29, %v335_v3  ;;  %v407_v45 = vmul.f32 %v389_v24, %v335_v3  ;;  %v324_v56 = vadd.f32 %v3566_v52, %v3560_v61 }
 0x12d   :  { %v3130_v58 = vpop.eup %3129  ;;  %v410_v34 = vmul.f32 %v2607_v8, %v392_v4  ;;  %v435_v35 = vmul.f32 %v2610_v7, %v395_v20  ;;  %v460_v49 = vmul.f32 %v2615_v17, %v398_v30  ;;  %v485_v51 = vmul.f32 %v2618_v10, %v401_v25  ;;  %v2934_v30 = vld [vmem:[#allocation8 + $0x19c] ss:$12 sps:$4 sm:$0xff]  }
 0x12e   :  { %v3132_v41 = vpop.eup %3131  ;;  %v510_v59 = vmul.f32 %v2623_v12, %v404_v16  ;;  %v535_v19 = vmul.f32 %v3668_v26, %v407_v45  ;;  %v382_v46 = vmul.f32 %v3130_v58, %v3114_v38  ;;  %v385_v54 = vmul.f32 %v3130_v58, %v3116_v39  ;;  %v2935_v16 = vld [vmem:[#allocation8 + $0x260] ss:$12 sps:$4 sm:$0xff]  }
 0x12f   :  { %v3134_v50 = vpop.eup %3133  ;;  %v2587_v8 = vpack.c.bf16 %v410_v34, %v410_v34  ;;  %v2590_v11 = vpack.c.bf16 %v435_v35, %v435_v35  ;;  %v2593_v37 = vpack.c.bf16 %v460_v49, %v460_v49  ;;  %v2596_v7 = vpack.c.bf16 %v485_v51, %v485_v51  ;;  %v2932_v35 = vld [vmem:[#allocation8 + $0x198] ss:$12 sps:$4 sm:$0xff]   ;;  %v2939_v26 = vld [vmem:[#allocation8 + $0x1b4] ss:$12 sps:$4 sm:$0xff]  }
 0x130   :  { %v2599_v63 = vpack.c.bf16 %v510_v59, %v510_v59  ;;  %v2602_v21 = vpack.c.bf16 %v535_v19, %v535_v19  ;;  %v388_v17 = vmul.f32 %v3130_v58, %v3118_v47  ;;  %v391_v6 = vmul.f32 %v382_v46, %v331_v48  ;;  %v3136_v57 = vpop.eup %3135 }
 0x131   :  { %426 = vst [vmem:[#allocation2 + $0x18] sm:$0xf] %v2587_v8  ;;  %451 = vst [vmem:[#allocation2 + $0x1c] sm:$0xf] %v2590_v11  ;;  %v394_v10 = vmul.f32 %v385_v54, %v331_v48  ;;  %v400_v12 = vmul.f32 %v382_v46, %v334_v55  ;;  %v403_v42 = vmul.f32 %v385_v54, %v334_v55  ;;  %3137 = vrcp.f32 %v324_v56 }
 0x132   :  { %476 = vst [vmem:[#allocation2 + $0x20] sm:$0xf] %v2593_v37  ;;  %501 = vst [vmem:[#allocation2 + $0x24] sm:$0xf] %v2596_v7  ;;  %v397_v38 = vmul.f32 %v388_v17, %v331_v48  ;;  %v406_v39 = vmul.f32 %v388_v17, %v334_v55  ;;  %v409_v62 = vmul.f32 %v3669_v36, %v391_v6  ;;  %v458_v45 = vunpack.c.l.bf16 %v3562_v23  ;;  %v2940_v23 = vld [vmem:[#allocation8 + $0x278] ss:$12 sps:$4 sm:$0xff]  }
 0x133   :  { %526 = vst [vmem:[#allocation2 + $0x28] sm:$0xf] %v2599_v63  ;;  %551 = vst [vmem:[#allocation2 + $0x2c] sm:$0xf] %v2602_v21  ;;  %v372_v60 = vadd.f32 %v3134_v50, %v3132_v41  ;;  %v434_v40 = vmul.f32 %v431_v53, %v394_v10  ;;  %v484_v47 = vmul.f32 %v481_v13, %v400_v12  ;;  %v2931_v53 = vld [vmem:[#allocation8 + $0x188] ss:$12 sps:$4 sm:$0xff]   ;;  %v508_v34 = vunpack.c.l.bf16 %v3564_v27 }
 0x134   :  { %v509_v33 = vmul.f32 %v3670_v28, %v403_v42  ;;  %v2586_v31 = vpack.c.bf16 %v409_v62, %v409_v62  ;;  %v459_v32 = vmul.f32 %v3671_v22, %v397_v38  ;;  %v534_v44 = vmul.f32 %v531_v43, %v406_v39  ;;  %v2937_v17 = vld [vmem:[#allocation8 + $0x1b0] ss:$12 sps:$4 sm:$0xff]   ;;  %v2941_v6 = vld [vmem:[#allocation8 + $0x1b8] ss:$12 sps:$4 sm:$0xff]   ;;  %v2955_v62 = vld [vmem:[#allocation8 + $0x2a8] ss:$12 sps:$4 sm:$0xff]  }
 0x135   :  { %v375_v3 = vadd.f32 %v3136_v57, %v372_v60  ;;  %v2589_v18 = vpack.c.bf16 %v434_v40, %v434_v40  ;;  %v2595_v29 = vpack.c.bf16 %v484_v47, %v484_v47  ;;  %v3674_v11 = vunpack.c.h.bf16 %v3410_v5  ;;  %v2945_v42 = vld [vmem:[#allocation8 + $0x1cc] ss:$12 sps:$4 sm:$0xff]   ;;  %v2943_v5 = vld [vmem:[#allocation8 + $0x1c8] ss:$12 sps:$4 sm:$0xff]   ;;  %v2954_v36 = vld [vmem:[#allocation8 + $0x1e4] ss:$12 sps:$4 sm:$0xff]  }
 0x136   :  { %v2598_v24 = vpack.c.bf16 %v509_v33, %v509_v33  ;;  %425 = vst [vmem:[#allocation2] sm:$0xf] %v2586_v31  ;;  %v2592_v48 = vpack.c.bf16 %v459_v32, %v459_v32  ;;  %v2601_v4 = vpack.c.bf16 %v534_v44, %v534_v44  ;;  %v3675_v63 = vunpack.c.h.bf16 %v3429_v15  ;;  %v2948_v15 = vld [vmem:[#allocation8 + $0x1d0] ss:$12 sps:$4 sm:$0xff]   ;;  %v2952_v60 = vld [vmem:[#allocation8 + $0x1e0] ss:$12 sps:$4 sm:$0xff]  }
 0x137   :  { %3139 = vrcp.f32 %v375_v3  ;;  %450 = vst [vmem:[#allocation2 + $0x4] sm:$0xf] %v2589_v18  ;;  %500 = vst [vmem:[#allocation2 + $0xc] sm:$0xf] %v2595_v29  ;;  %v2956_v40 = vld [vmem:[#allocation8 + $0x1e8] ss:$12 sps:$4 sm:$0xff]  }
 0x138   :  { %525 = vst [vmem:[#allocation2 + $0x10] sm:$0xf] %v2598_v24  ;;  %475 = vst [vmem:[#allocation2 + $0x8] sm:$0xf] %v2592_v48  ;;  %v2959_v31 = vld [vmem:[#allocation8 + $0x1fc] ss:$12 sps:$4 sm:$0xff]  }
 0x139   :  { %550 = vst [vmem:[#allocation2 + $0x14] sm:$0xf] %v2601_v4  ;;  %v2960_v22 = vld [vmem:[#allocation8 + $0x2c0] ss:$12 sps:$4 sm:$0xff]   ;;  %v2957_v44 = vld [vmem:[#allocation8 + $0x1f8] ss:$12 sps:$4 sm:$0xff]  }
 0x13a   :  { %v2961_v3 = vld [vmem:[#allocation8 + $0x200] ss:$12 sps:$4 sm:$0xff]   ;;  %v2965_v29 = vld [vmem:[#allocation8 + $0x2d8] ss:$12 sps:$4 sm:$0xff]   ;;  %v2962_v24 = vld [vmem:[#allocation8 + $0x210] ss:$12 sps:$4 sm:$0xff]  }
 0x13b   :  { %v3138_v1 = vpop.eup %3137  ;;  %v2964_v18 = vld [vmem:[#allocation8 + $0x214] ss:$12 sps:$4 sm:$0xff]   ;;  %v2966_v48 = vld [vmem:[#allocation8 + $0x218] ss:$12 sps:$4 sm:$0xff]  }
 0x13c   :  { %v333_v43 = vmul.f32 %v3138_v1, %v3560_v61  ;;  %v336_v20 = vmul.f32 %v3138_v1, %v3566_v52  ;;  %v2936_v61 = vld [vmem:[#allocation8 + $0x1a0] ss:$12 sps:$4 sm:$0xff]   ;;  %v2970_v1 = vld [vmem:[#allocation8 + $0x2f0] ss:$12 sps:$4 sm:$0xff]  }
 0x13d   :  { %v2924_v13 = vld [vmem:[#allocation2] ss:$24 sps:$4 sm:$0xff]   ;;  %v2969_v4 = vld [vmem:[#allocation8 + $0x22c] ss:$12 sps:$4 sm:$0xff]  }
 0x13e   :  { %v2926_v14 = vld [vmem:[#allocation2 + $0x4] ss:$24 sps:$4 sm:$0xff]  }
 0x13f   :  { %1622 = vmatprep.mubr.bf16.mxu0 %v2926_v14  ;;  %1775 = vmatprep.mubr.bf16.mxu1 %v2926_v14  ;;  %v2951_v32 = vld [vmem:[#allocation2 + $0xc] ss:$24 sps:$4 sm:$0xff]  }
 0x140   :  { %1623 = vmatmul.mubr.bf16.vlgmr.msra.gmra.mrb[0].mxu0 %v2924_v13  ;;  %1776 = vmatmul.mubr.bf16.vlgmr.msra.gmra.mrb[0].mxu1 %v2924_v13  ;;  %v2974_v13 = vld [vmem:[#allocation8 + $0x244] ss:$12 sps:$4 sm:$0xff]   ;;  %v2975_v14 = vld [vmem:[#allocation8 + $0x3c8] ss:$12 sps:$4 sm:$0xff]  }
 0x141   :  { %v3140_v25 = vpop.eup %3139  ;;  %1642 = vmatpush1.bf16.msra.mxu0 %v2927_v9  ;;  %2683 = vmatpush3.bf16.msra.mxu1 %v2931_v53  ;;  %v2967_v9 = vld [vmem:[#allocation8 + $0x228] ss:$12 sps:$4 sm:$0xff]   ;;  %v2971_v53 = vld [vmem:[#allocation8 + $0x230] ss:$12 sps:$4 sm:$0xff]  }
 0x142   :  { %v384_v55 = vmul.f32 %v3140_v25, %v3132_v41  ;;  %v387_v56 = vmul.f32 %v3140_v25, %v3134_v50  ;;  %v390_v58 = vmul.f32 %v3140_v25, %v3136_v57  ;;  %1643 = vmatprep.subr.bf16.mxu0 %v2934_v30  ;;  %2684 = vmatprep.subr.bf16.mxu1 %v2935_v16  ;;  %v3672_v41 = vunpack.c.l.bf16 %v3402_v0  ;;  %v3602_v30 = vld [vmem:[#allocation2 + $0x8] ss:$24 sps:$4 sm:$0xff]   ;;  %v2977_v25 = vld [vmem:[#allocation8 + $0x308] ss:$12 sps:$4 sm:$0xff]  }
 0x143   :  { %v3673_v50 = vunpack.c.h.bf16 %v3406_v2  ;;  %v2946_v2 = vld [vmem:[#allocation8 + $0x290] ss:$12 sps:$4 sm:$0xff]  }
 0x144   :  { %v393_v49 = vmul.f32 %v384_v55, %v333_v43  ;;  %v396_v52 = vmul.f32 %v387_v56, %v333_v43  ;;  %v399_v51 = vmul.f32 %v390_v58, %v333_v43  ;;  %v402_v59 = vmul.f32 %v384_v55, %v336_v20  ;;  %v2980_v16 = vld [vmem:[#allocation8 + $0x25c] ss:$12 sps:$4 sm:$0xff]   ;;  %v2981_v55 = vld [vmem:[#allocation8 + $0x3e0] ss:$12 sps:$4 sm:$0xff]  }
 0x145   :  { %v405_v19 = vmul.f32 %v387_v56, %v336_v20  ;;  %v408_v46 = vmul.f32 %v390_v58, %v336_v20  ;;  %1644 = vmatpush1.bf16.msra.mxu0 %v2932_v35  ;;  %2685 = vmatpush3.bf16.msra.mxu1 %v2936_v61  ;;  %v2972_v20 = vld [vmem:[#allocation8 + $0x240] ss:$12 sps:$4 sm:$0xff]   ;;  %v2978_v56 = vld [vmem:[#allocation8 + $0x258] ss:$12 sps:$4 sm:$0xff]   ;;  %v2983_v61 = vld [vmem:[#allocation8 + $0x270] ss:$12 sps:$4 sm:$0xff]  }
 0x146   :  { %v411_v54 = vmul.f32 %v393_v49, %v3672_v41  ;;  %v436_v27 = vmul.f32 %v3673_v50, %v396_v52  ;;  %v461_v8 = vmul.f32 %v458_v45, %v399_v51  ;;  %v486_v37 = vmul.f32 %v3674_v11, %v402_v59  ;;  %1645 = vmatprep.subr.bf16.mxu0 %v2939_v26  ;;  %v2982_v58 = vld [vmem:[#allocation8 + $0x320] ss:$12 sps:$4 sm:$0xff]   ;;  %v2987_v35 = vld [vmem:[#allocation8 + $0x3f8] ss:$12 sps:$4 sm:$0xff]   ;;  %v2995_v26 = vld [vmem:[#allocation8 + $0x410] ss:$12 sps:$4 sm:$0xff]  }
 0x147   :  { %v511_v7 = vmul.f32 %v508_v34, %v405_v19  ;;  %v536_v21 = vmul.f32 %v3675_v63, %v408_v46  ;;  %2686 = vmatprep.subr.bf16.mxu1 %v2940_v23  ;;  %v2985_v34 = vld [vmem:[#allocation8 + $0x274] ss:$12 sps:$4 sm:$0xff]   ;;  %v2988_v52 = vld [vmem:[#allocation8 + $0x338] ss:$12 sps:$4 sm:$0xff]   ;;  %v2996_v46 = vld [vmem:[#allocation8 + $0x350] ss:$12 sps:$4 sm:$0xff]  }
 0x148   :  { %v2588_v57 = vpack.c.bf16 %v411_v54, %v411_v54  ;;  %v2591_v10 = vpack.c.bf16 %v436_v27, %v436_v27  ;;  %v2594_v12 = vpack.c.bf16 %v461_v8, %v461_v8  ;;  %v2597_v0 = vpack.c.bf16 %v486_v37, %v486_v37  ;;  %v2994_v51 = vld [vmem:[#allocation8 + $0x28c] ss:$12 sps:$4 sm:$0xff]   ;;  %v3610_v59 = vld [vmem:[#allocation2 + $0x14] ss:$24 sps:$4 sm:$0xff]   ;;  %v2992_v19 = vld [vmem:[#allocation8 + $0x288] ss:$12 sps:$4 sm:$0xff]  }
 0x149   :  { %v2600_v38 = vpack.c.bf16 %v511_v7, %v511_v7  ;;  %v2603_v39 = vpack.c.bf16 %v536_v21, %v536_v21  ;;  %1646 = vmatpush1.bf16.msra.mxu0 %v2937_v17  ;;  %2687 = vmatpush3.bf16.msra.mxu1 %v2941_v6  ;;  %v2999_v23 = vld [vmem:[#allocation8 + $0x2a4] ss:$12 sps:$4 sm:$0xff]   ;;  %v3000_v41 = vld [vmem:[#allocation8 + $0x428] ss:$12 sps:$4 sm:$0xff]   ;;  %v2997_v54 = vld [vmem:[#allocation8 + $0x2a0] ss:$12 sps:$4 sm:$0xff]  }
 0x14a   :  { %427 = vst [vmem:[#allocation2 + $0x30] sm:$0xf] %v2588_v57  ;;  %452 = vst [vmem:[#allocation2 + $0x34] sm:$0xf] %v2591_v10  ;;  %1647 = vmatprep.subr.bf16.mxu0 %v2945_v42  ;;  %2688 = vmatprep.subr.bf16.mxu1 %v2946_v2  ;;  %v3001_v50 = vld [vmem:[#allocation8 + $0x368] ss:$12 sps:$4 sm:$0xff]  }
 0x14b   :  { %477 = vst [vmem:[#allocation2 + $0x38] sm:$0xf] %v2594_v12  ;;  %502 = vst [vmem:[#allocation2 + $0x3c] sm:$0xf] %v2597_v0  ;;  %v3004_v27 = vld [vmem:[#allocation8 + $0x2bc] ss:$12 sps:$4 sm:$0xff]  }
 0x14c   :  { %527 = vst [vmem:[#allocation2 + $0x40] sm:$0xf] %v2600_v38  ;;  %552 = vst [vmem:[#allocation2 + $0x44] sm:$0xf] %v2603_v39  ;;  %v3005_v8 = vld [vmem:[#allocation8 + $0x440] ss:$12 sps:$4 sm:$0xff]  }
 0x14d   :  { %1648 = vmatpush1.bf16.msra.mxu0 %v2943_v5  ;;  %2689 = vmatpush3.bf16.msra.mxu1 %v2948_v15  ;;  %v3002_v11 = vld [vmem:[#allocation8 + $0x2b8] ss:$12 sps:$4 sm:$0xff]   ;;  %v3006_v37 = vld [vmem:[#allocation8 + $0x380] ss:$12 sps:$4 sm:$0xff]   ;;  %v3007_v21 = vld [vmem:[#allocation8 + $0x2d0] ss:$12 sps:$4 sm:$0xff]  }
 0x14e   :  { %1649 = vmatprep.subr.bf16.mxu0 %v2954_v36  ;;  %2690 = vmatprep.subr.bf16.mxu1 %v2955_v62  ;;  %v3009_v7 = vld [vmem:[#allocation8 + $0x2d4] ss:$12 sps:$4 sm:$0xff]   ;;  %v3010_v63 = vld [vmem:[#allocation8 + $0x458] ss:$12 sps:$4 sm:$0xff]   ;;  %v3015_v57 = vld [vmem:[#allocation8 + $0x470] ss:$12 sps:$4 sm:$0xff]  }
 0x14f   :  { %v3011_v17 = vld [vmem:[#allocation8 + $0x398] ss:$12 sps:$4 sm:$0xff]   ;;  %v3012_v10 = vld [vmem:[#allocation8 + $0x2e8] ss:$12 sps:$4 sm:$0xff]   ;;  %v3016_v12 = vld [vmem:[#allocation8 + $0x3b0] ss:$12 sps:$4 sm:$0xff]  }
 0x150   :  { %v3014_v6 = vld [vmem:[#allocation8 + $0x2ec] ss:$12 sps:$4 sm:$0xff]   ;;  %v3019_v0 = vld [vmem:[#allocation8 + $0x304] ss:$12 sps:$4 sm:$0xff]   ;;  %v3023_v39 = vld [vmem:[#allocation8 + $0x31c] ss:$12 sps:$4 sm:$0xff]  }
 0x151   :  { %v559_v47 = vld [vmem:[#allocation2 + $0x30] sm:$0xff]  ;;  %1650 = vmatpush1.bf16.msra.mxu0 %v2952_v60  ;;  %2691 = vmatpush3.bf16.msra.mxu1 %v2956_v40  ;;  %v3024_v62 = vld [vmem:[#allocation8 + $0x330] ss:$12 sps:$4 sm:$0xff]   ;;  %v3030_v40 = vld [vmem:[#allocation8 + $0x34c] ss:$12 sps:$4 sm:$0xff]  }
 0x152   :  { %v2400_v28 = vcombine.high %v559_v47, %v559_v47  ;;  %v2399_v33 = vcombine.low %v559_v47, %v559_v47  ;;  %1651 = vmatprep.subr.bf16.mxu0 %v2959_v31  ;;  %2692 = vmatprep.subr.bf16.mxu1 %v2960_v22  ;;  %v560_v43 = vld [vmem:[#allocation2 + $0x38] sm:$0xff]  ;;  %v3614_v38 = vld [vmem:[#allocation2 + $0x10] ss:$24 sps:$4 sm:$0xff]  }
 0x153   :  { %v3604_v45 = vcombine.high %v560_v43, %v560_v43  ;;  %v3608_v49 = vcombine.low %v560_v43, %v560_v43  ;;  %v561_v42 = vld [vmem:[#allocation2 + $0x40] sm:$0xff]  ;;  %v3017_v2 = vld [vmem:[#allocation8 + $0x300] ss:$12 sps:$4 sm:$0xff]   ;;  %v3021_v15 = vld [vmem:[#allocation8 + $0x318] ss:$12 sps:$4 sm:$0xff]  }
 0x154   :  { %1632 = vmatprep.mubr.bf16.mxu0 %v2400_v28  ;;  %1783 = vmatprep.mubr.bf16.mxu1 %v2400_v28  ;;  %v3617_v5 = vcombine.high %v561_v42, %v561_v42  ;;  %v3026_v36 = vld [vmem:[#allocation8 + $0x334] ss:$12 sps:$4 sm:$0xff]   ;;  %v2403_v60 = vcombine.low %v561_v42, %v561_v42  ;;  %v3033_v28 = vld [vmem:[#allocation8 + $0x364] ss:$12 sps:$4 sm:$0xff]   ;;  %v3036_v31 = vld [vmem:[#allocation8 + $0x37c] ss:$12 sps:$4 sm:$0xff]  }
 0x155   :  { %1633 = vmatmul.mubr.bf16.gmra.mrb[4].mxu0 %v2399_v33  ;;  %1784 = vmatmul.mubr.bf16.gmra.mrb[4].mxu1 %v2399_v33  ;;  %v3028_v47 = vld [vmem:[#allocation8 + $0x348] ss:$12 sps:$4 sm:$0xff]   ;;  %v3031_v33 = vld [vmem:[#allocation8 + $0x360] ss:$12 sps:$4 sm:$0xff]   ;;  %v3034_v22 = vld [vmem:[#allocation8 + $0x378] ss:$12 sps:$4 sm:$0xff]  }
 0x156   :  { %1673 = vmatprep.mubr.bf16.mxu0 %v2951_v32  ;;  %1823 = vmatprep.mubr.bf16.mxu1 %v2951_v32  ;;  %v3039_v32 = vld [vmem:[#allocation8 + $0x394] ss:$12 sps:$4 sm:$0xff]  }
 0x157   :  { %1652 = vmatpush1.bf16.msra.mxu0 %v2957_v44  ;;  %2693 = vmatpush3.bf16.msra.mxu1 %v2961_v3  ;;  %v3037_v44 = vld [vmem:[#allocation8 + $0x390] ss:$12 sps:$4 sm:$0xff]   ;;  %v3042_v3 = vld [vmem:[#allocation8 + $0x3ac] ss:$12 sps:$4 sm:$0xff]  }
 0x158   :  { %1653 = vmatprep.subr.bf16.mxu0 %v2964_v18  ;;  %2694 = vmatprep.subr.bf16.mxu1 %v2965_v29  ;;  %v3040_v18 = vld [vmem:[#allocation8 + $0x3a8] ss:$12 sps:$4 sm:$0xff]   ;;  %v3045_v29 = vld [vmem:[#allocation8 + $0x3c4] ss:$12 sps:$4 sm:$0xff]   ;;  %v3055_v43 = vld [vmem:[#allocation8 + $0x420] ss:$12 sps:$4 sm:$0xff]  }
 0x15b   :  { %1654 = vmatpush1.bf16.msra.mxu0 %v2962_v24  ;;  %2695 = vmatpush3.bf16.msra.mxu1 %v2966_v48  ;;  %v3043_v24 = vld [vmem:[#allocation8 + $0x3c0] ss:$12 sps:$4 sm:$0xff]   ;;  %v3048_v48 = vld [vmem:[#allocation8 + $0x3dc] ss:$12 sps:$4 sm:$0xff]  }
 0x15c   :  { %1655 = vmatprep.subr.bf16.mxu0 %v2969_v4  ;;  %2696 = vmatprep.subr.bf16.mxu1 %v2970_v1  ;;  %v3046_v4 = vld [vmem:[#allocation8 + $0x3d8] ss:$12 sps:$4 sm:$0xff]   ;;  %v3051_v1 = vld [vmem:[#allocation8 + $0x3f4] ss:$12 sps:$4 sm:$0xff]  }
 0x15f   :  { %1656 = vmatpush1.bf16.msra.mxu0 %v2967_v9  ;;  %2697 = vmatpush3.bf16.msra.mxu1 %v2971_v53  ;;  %v3049_v9 = vld [vmem:[#allocation8 + $0x3f0] ss:$12 sps:$4 sm:$0xff]   ;;  %v3054_v53 = vld [vmem:[#allocation8 + $0x40c] ss:$12 sps:$4 sm:$0xff]  }
 0x160   :  { %1657 = vmatprep.subr.bf16.mxu0 %v2974_v13  ;;  %2710 = vmatprep.subr.bf16.mxu1 %v2975_v14  ;;  %v3052_v13 = vld [vmem:[#allocation8 + $0x408] ss:$12 sps:$4 sm:$0xff]   ;;  %v3057_v14 = vld [vmem:[#allocation8 + $0x424] ss:$12 sps:$4 sm:$0xff]  }
 0x162   :  { %1824 = vmatmul.mubr.bf16.vlgmr.msra.gmra.mrb[8].mxu1 %v3602_v30 }
 0x163   :  { %1658 = vmatpush1.bf16.msra.mxu0 %v2972_v20  ;;  %1831 = vmatprep.mubr.bf16.mxu1 %v3604_v45  ;;  %v3060_v20 = vld [vmem:[#allocation8 + $0x43c] ss:$12 sps:$4 sm:$0xff]  }
 0x164   :  { %2711 = vmatpush3.bf16.msra.mxu1 %v2977_v25  ;;  %1659 = vmatprep.subr.bf16.mxu0 %v2980_v16  ;;  %v3063_v25 = vld [vmem:[#allocation8 + $0x454] ss:$12 sps:$4 sm:$0xff]   ;;  %v3061_v16 = vld [vmem:[#allocation8 + $0x450] ss:$12 sps:$4 sm:$0xff]  }
 0x165   :  { %2712 = vmatprep.subr.bf16.mxu1 %v2981_v55  ;;  %v3064_v55 = vld [vmem:[#allocation8 + $0x468] ss:$12 sps:$4 sm:$0xff]  }
 0x167   :  { %1660 = vmatpush1.bf16.msra.mxu0 %v2978_v56  ;;  %v3067_v56 = vld [vmem:[#allocation10 + $0x40] sm:$0xff]  }
 0x168   :  { %2713 = vmatpush3.bf16.msra.mxu1 %v2982_v58  ;;  %1661 = vmatprep.subr.bf16.mxu0 %v2985_v34  ;;  %v3068_v58 = vld [vmem:[#allocation10] sm:$0xff]   ;;  %v3069_v34 = vld [vmem:[#allocation10 + $0x48] sm:$0xff]  }
 0x169   :  { %2714 = vmatprep.subr.bf16.mxu1 %v2987_v35  ;;  %v3070_v35 = vld [vmem:[#allocation10 + $0x8] sm:$0xff]  }
 0x16a   :  { %1832 = vmatmul.mubr.bf16.gmra.mrb[12].mxu1 %v3608_v49 }
 0x16b   :  { %1662 = vmatpush1.bf16.msra.mxu0 %v2983_v61  ;;  %1871 = vmatprep.mubr.bf16.mxu1 %v3610_v59  ;;  %v3071_v61 = vld [vmem:[#allocation10 + $0x50] sm:$0xff]  }
 0x16c   :  { %2715 = vmatpush3.bf16.msra.mxu1 %v2988_v52  ;;  %1663 = vmatprep.subr.bf16.mxu0 %v2994_v51  ;;  %v3073_v52 = vld [vmem:[#allocation10 + $0x58] sm:$0xff]  }
 0x16d   :  { %2716 = vmatprep.subr.bf16.mxu1 %v2995_v26  ;;  %v3074_v51 = vld [vmem:[#allocation10 + $0x18] sm:$0xff]   ;;  %v3076_v26 = vld [vmem:[#allocation10 + $0x20] sm:$0xff]  }
 0x16f   :  { %1664 = vmatpush1.bf16.msra.mxu0 %v2992_v19  ;;  %v3077_v19 = vld [vmem:[#allocation10 + $0x68] sm:$0xff]  }
 0x170   :  { %2717 = vmatpush3.bf16.msra.mxu1 %v2996_v46  ;;  %1665 = vmatprep.subr.bf16.mxu0 %v2999_v23  ;;  %v3078_v46 = vld [vmem:[#allocation10 + $0x28] sm:$0xff]  }
 0x171   :  { %2718 = vmatprep.subr.bf16.mxu1 %v3000_v41 }
 0x173   :  { %1666 = vmatpush1.bf16.msra.mxu0 %v2997_v54 }
 0x174   :  { %2719 = vmatpush3.bf16.msra.mxu1 %v3001_v50  ;;  %1667 = vmatprep.subr.bf16.mxu0 %v3004_v27 }
 0x175   :  { %2720 = vmatprep.subr.bf16.mxu1 %v3005_v8 }
 0x177   :  { %1668 = vmatpush1.bf16.msra.mxu0 %v3002_v11  ;;  %v3079_v11 = vld [vmem:[#allocation10 + $0x70] sm:$0xff]  }
 0x178   :  { %2721 = vmatpush3.bf16.msra.mxu1 %v3006_v37  ;;  %1669 = vmatprep.subr.bf16.mxu0 %v3009_v7  ;;  %v3080_v37 = vld [vmem:[#allocation10 + $0x30] sm:$0xff]   ;;  %v3081_v7 = vld [vmem:[#allocation10 + $0x78] sm:$0xff]  }
 0x179   :  { %2722 = vmatprep.subr.bf16.mxu1 %v3010_v63  ;;  %v3082_v63 = vld [vmem:[#allocation10 + $0x38] sm:$0xff]  }
 0x17b   :  { %1670 = vmatpush1.bf16.msra.mxu0 %v3007_v21  ;;  %v3626_v21 = vld [vmem:[#allocation10 + $0x80] sm:$0xff]  }
 0x17c   :  { %2723 = vmatpush3.bf16.msra.mxu1 %v3011_v17  ;;  %1671 = vmatprep.subr.bf16.mxu0 %v3014_v6  ;;  %v756_v17 = vlaneseq }
 0x17d   :  { %2724 = vmatprep.subr.bf16.mxu1 %v3015_v57 }
 0x17e   :  { %v757_v42 = vshrl.u32 %v756_v17, 7 }
 0x17f   :  { %1672 = vmatpush1.bf16.msra.mxu0 %v3012_v10 }
 0x180   :  { %2725 = vmatpush3.bf16.msra.mxu1 %v3016_v12  ;;  %1692 = vmatprep.subr.bf16.mxu0 %v3019_v0 }
 0x181   :  { %2738 = vmatprep.subr.bf16.mxu1 %v3067_v56 }
 0x182   :  { %1674 = vmatmul.mubr.bf16.vlgmr.msra.gmra.mrb[0].mxu0 %v3602_v30  ;;  %v3058_v30 = vld [vmem:[#allocation8 + $0x438] ss:$12 sps:$4 sm:$0xff]  }
 0x183   :  { %1872 = vmatmul.mubr.bf16.vlgmr.msra.gmra.mrb[16].mxu1 %v3614_v38  ;;  %1683 = vmatprep.mubr.bf16.mxu0 %v3604_v45  ;;  %v3066_v45 = vld [vmem:[#allocation8 + $0x46c] ss:$12 sps:$4 sm:$0xff]  }
 0x184   :  { %1693 = vmatpush1.bf16.msra.mxu0 %v3017_v2  ;;  %1879 = vmatprep.mubr.bf16.mxu1 %v3617_v5  ;;  %v766_v2 = vsub.s32 2, %v757_v42 }
 0x185   :  { %1694 = vmatprep.subr.bf16.mxu0 %v3023_v39  ;;  %2739 = vmatpush3.bf16.msra.mxu1 %v3068_v58 }
 0x186   :  { %2740 = vmatprep.subr.bf16.mxu1 %v3069_v34 }
 0x188   :  { %1695 = vmatpush1.bf16.msra.mxu0 %v3021_v15 }
 0x189   :  { %1696 = vmatprep.subr.bf16.mxu0 %v3026_v36  ;;  %2741 = vmatpush3.bf16.msra.mxu1 %v3070_v35  ;;  %v758_v35 = vsub.s32 0, %v757_v42 }
 0x18a   :  { %1684 = vmatmul.mubr.bf16.gmra.mrb[4].mxu0 %v3608_v49  ;;  %v3072_v49 = vld [vmem:[#allocation10 + $0x10] sm:$0xff]   ;;  %2742 = vmatprep.subr.bf16.mxu1 %v3071_v61  ;;  %v762_v61 = vsub.s32 1, %v757_v42 }
 0x18b   :  { %1880 = vmatmul.mubr.bf16.gmra.mrb[20].mxu1 %v2403_v60  ;;  %1724 = vmatprep.mubr.bf16.mxu0 %v3610_v59  ;;  %v3075_v59 = vld [vmem:[#allocation10 + $0x60] sm:$0xff]  }
 0x18c   :  { %1697 = vmatpush1.bf16.msra.mxu0 %v3024_v62 }
 0x18d   :  { %1698 = vmatprep.subr.bf16.mxu0 %v3030_v40  ;;  %2743 = vmatpush3.bf16.msra.mxu1 %v3072_v49 }
 0x18e   :  { %2744 = vmatprep.subr.bf16.mxu1 %v3073_v52 }
 0x190   :  { %1699 = vmatpush1.bf16.msra.mxu0 %v3028_v47 }
 0x191   :  { %1700 = vmatprep.subr.bf16.mxu0 %v3033_v28  ;;  %2745 = vmatpush3.bf16.msra.mxu1 %v3074_v51 }
 0x192   :  { %2746 = vmatprep.subr.bf16.mxu1 %v3075_v59 }
 0x194   :  { %1701 = vmatpush1.bf16.msra.mxu0 %v3031_v33 }
 0x195   :  { %1702 = vmatprep.subr.bf16.mxu0 %v3036_v31  ;;  %2747 = vmatpush3.bf16.msra.mxu1 %v3076_v26 }
 0x196   :  { %2748 = vmatprep.subr.bf16.mxu1 %v3077_v19 }
 0x198   :  { %1703 = vmatpush1.bf16.msra.mxu0 %v3034_v22 }
 0x199   :  { %1704 = vmatprep.subr.bf16.mxu0 %v3039_v32  ;;  %2749 = vmatpush3.bf16.msra.mxu1 %v3078_v46 }
 0x19a   :  { %2750 = vmatprep.subr.bf16.mxu1 %v3079_v11 }
 0x19c   :  { %1705 = vmatpush1.bf16.msra.mxu0 %v3037_v44 }
 0x19d   :  { %1706 = vmatprep.subr.bf16.mxu0 %v3042_v3  ;;  %2751 = vmatpush3.bf16.msra.mxu1 %v3080_v37 }
 0x19e   :  { %2752 = vmatprep.subr.bf16.mxu1 %v3081_v7 }
 0x1a0   :  { %1707 = vmatpush1.bf16.msra.mxu0 %v3040_v18 }
 0x1a1   :  { %1708 = vmatprep.subr.bf16.mxu0 %v3045_v29  ;;  %2753 = vmatpush3.bf16.msra.mxu1 %v3082_v63 }
 0x1a2   :  { %2786 = vmatprep.subr.bf16.mxu1 %v3626_v21 }
 0x1a4   :  { %1709 = vmatpush1.bf16.msra.mxu0 %v3043_v24 }
 0x1a5   :  { %1710 = vmatprep.subr.bf16.mxu0 %v3048_v48 }
 0x1a8   :  { %1711 = vmatpush1.bf16.msra.mxu0 %v3046_v4 }
 0x1a9   :  { %1712 = vmatprep.subr.bf16.mxu0 %v3051_v1 }
 0x1ac   :  { %1713 = vmatpush1.bf16.msra.mxu0 %v3049_v9 }
 0x1ad   :  { %1714 = vmatprep.subr.bf16.mxu0 %v3054_v53 }
 0x1b0   :  { %1715 = vmatpush1.bf16.msra.mxu0 %v3052_v13 }
 0x1b1   :  { %1716 = vmatprep.subr.bf16.mxu0 %v3057_v14 }
 0x1b4   :  { %1717 = vmatpush1.bf16.msra.mxu0 %v3055_v43 }
 0x1b5   :  { %1718 = vmatprep.subr.bf16.mxu0 %v3060_v20 }
 0x1b8   :  { %1719 = vmatpush1.bf16.msra.mxu0 %v3058_v30 }
 0x1b9   :  { %1720 = vmatprep.subr.bf16.mxu0 %v3063_v25 }
 0x1bc   :  { %1721 = vmatpush1.bf16.msra.mxu0 %v3061_v16 }
 0x1bd   :  { %1722 = vmatprep.subr.bf16.mxu0 %v3066_v45 }
 0x1c0   :  { %1723 = vmatpush1.bf16.msra.mxu0 %v3064_v55 }
 0x1c3   :  { %1725 = vmatmul.mubr.bf16.vlgmr.msra.gmra.mrb[0].mxu0 %v3614_v38  ;;  %v754_v38 = vld [vmem:[%s3654_s3] sm:$0x7] }
 0x1c4   :  { %1734 = vmatprep.mubr.bf16.mxu0 %v3617_v5  ;;  %v767_v39 = vrot.slane %v754_v38, %v766_v2  ;;  %v759_v49 = vrot.slane %v754_v38, %v758_v35  ;;  %v763_v52 = vrot.slane %v754_v38, %v762_v61  ;;  %v3085_v38 = vld [vmem:[#allocation10 + $0x90] sm:$0xff]  }
 0x1cb   :  { %1735 = vmatmul.mubr.bf16.gmra.mrb[4].mxu0 %v2403_v60 }
 0x213   :  { %v2670_v23 = vpop.f32.mrb[0].mxu1 }
 0x214   :  { %v2671_v41 = vpop.f32.mrb[1].mxu1 }
 0x215   :  { %v2672_v54 = vadd.f32 %v2671_v41, %v2670_v23  ;;  %v2673_v50 = vpop.f32.mrb[2].mxu1 }
 0x216   :  { %v2674_v27 = vpop.f32.mrb[3].mxu1 }
 0x217   :  { %v2675_v8 = vadd.f32 %v2674_v27, %v2673_v50  ;;  %v1778_v36 = vadd.f32 %v2672_v54, %v767_v39 }
 0x219   :  { %v1781_v47 = vadd.f32 %v2675_v8, %v767_v39 }
 0x228   :  { %v2676_v6 = vpop.f32.mrb[4].mxu1 }
 0x229   :  { %v2677_v57 = vpop.f32.mrb[5].mxu1 }
 0x22a   :  { %v2678_v10 = vadd.f32 %v2677_v57, %v2676_v6  ;;  %v2679_v12 = vpop.f32.mrb[6].mxu1  ;;  %v3084_v57 = vld [vmem:[#allocation10 + $0x88] sm:$0xff]  }
 0x22b   :  { %v2680_v0 = vpop.f32.mrb[7].mxu1 }
 0x22c   :  { %v1786_v44 = vadd.f32 %v2678_v10, %v767_v39 }
 0x235   :  { %v2698_v5 = vpop.f32.mrb[8].mxu1 }
 0x236   :  { %v2699_v15 = vpop.f32.mrb[9].mxu1 }
 0x237   :  { %v2700_v62 = vadd.f32 %v2699_v15, %v2698_v5  ;;  %v2701_v60 = vpop.f32.mrb[10].mxu1  ;;  %v3086_v15 = vld [vmem:[#allocation10 + $0x98] sm:$0xff]  }
 0x238   :  { %v2702_v40 = vpop.f32.mrb[11].mxu1 }
 0x239   :  { %v1826_v28 = vadd.f32 %v2700_v62, %v1778_v36  ;;  %v2703_v33 = vadd.f32 %v2702_v40, %v2701_v60  ;;  %v3087_v36 = vld [vmem:[#allocation10 + $0xa0] sm:$0xff]   ;;  %v3088_v62 = vld [vmem:[#allocation10 + $0xa8] sm:$0xff]   ;;  %v3090_v60 = vld [vmem:[#allocation10 + $0xb8] sm:$0xff]  }
 0x23b   :  { %v1829_v31 = vadd.f32 %v2703_v33, %v1781_v47  ;;  %v3092_v33 = vld [vmem:[#allocation11 + $0x8] sm:$0xff]  }
 0x23d   :  { %v2704_v22 = vpop.f32.mrb[12].mxu1 }
 0x23e   :  { %v2705_v32 = vpop.f32.mrb[13].mxu1 }
 0x23f   :  { %v2706_v3 = vadd.f32 %v2705_v32, %v2704_v22  ;;  %v2707_v18 = vpop.f32.mrb[14].mxu1  ;;  %v3094_v22 = vld [vmem:[#allocation11 + $0x18] sm:$0xff]   ;;  %v3095_v32 = vld [vmem:[#allocation11 + $0x20] sm:$0xff]  }
 0x240   :  { %v2708_v29 = vpop.f32.mrb[15].mxu1  ;;  %v3098_v18 = vld [vmem:[#allocation11 + $0x38] sm:$0xff]  }
 0x241   :  { %v1834_v24 = vadd.f32 %v2706_v3, %v1786_v44  ;;  %v3096_v44 = vld [vmem:[#allocation11 + $0x28] sm:$0xff]   ;;  %v3097_v3 = vld [vmem:[#allocation11 + $0x30] sm:$0xff]  }
 0x256   :  { %v2726_v48 = vpop.f32.mrb[16].mxu1 }
 0x257   :  { %v2727_v4 = vpop.f32.mrb[17].mxu1 }
 0x258   :  { %v2728_v1 = vadd.f32 %v2727_v4, %v2726_v48  ;;  %v2729_v9 = vpop.f32.mrb[18].mxu1 }
 0x259   :  { %v2730_v53 = vpop.f32.mrb[19].mxu1 }
 0x25a   :  { %v1874_v13 = vadd.f32 %v2728_v1, %v1826_v28  ;;  %v2731_v14 = vadd.f32 %v2730_v53, %v2729_v9  ;;  %v3091_v28 = vld [vmem:[#allocation11] sm:$0xff]  }
 0x25c   :  { %v1877_v43 = vadd.f32 %v2731_v14, %v1829_v31  ;;  %v1889_v20 = vmax.f32 %v1874_v13, 0.0  ;;  %v3093_v31 = vld [vmem:[#allocation11 + $0x10] sm:$0xff]  }
 0x25e   :  { %v1892_v30 = vmax.f32 %v1877_v43, 0.0  ;;  %v2732_v25 = vpop.f32.mrb[20].mxu1 }
 0x25f   :  { %v2733_v16 = vpop.f32.mrb[21].mxu1 }
 0x260   :  { %v2734_v45 = vadd.f32 %v2733_v16, %v2732_v25  ;;  %v2735_v55 = vpop.f32.mrb[22].mxu1  ;;  %v1898_v56 = vpack.c.bf16 %v1892_v30, %v1889_v20  ;;  %v2549_v30 = vld [vmem:[%s3656_s5] ss:$0 sm:$0xff] }
 0x261   :  { %v2736_v58 = vpop.f32.mrb[23].mxu1 }
 0x262   :  { %v1882_v34 = vadd.f32 %v2734_v45, %v1834_v24 }
 0x264   :  { %v1895_v40 = vmax.f32 %v1882_v34, 0.0 }
 0x266   :  { %v1901_v47 = vpack.c.bf16 %v1895_v40, %v1895_v40 }
 0x296   :  { %v1726_v51 = vpop.f32.mrb[0].mxu0 }
 0x297   :  { %v2826_v59 = vadd.f32 %v1726_v51, %v759_v49  ;;  %v1728_v26 = vpop.f32.mrb[1].mxu0 }
 0x298   :  { %v2827_v19 = vadd.f32 %v1728_v26, %v763_v52  ;;  %v1730_v46 = vpop.f32.mrb[2].mxu0 }
 0x299   :  { %v2828_v23 = vadd.f32 %v1730_v46, %v759_v49  ;;  %v1732_v41 = vpop.f32.mrb[3].mxu0  ;;  %v1887_v50 = vmax.f32 %v2826_v59, 0.0 }
 0x29a   :  { %v2829_v54 = vadd.f32 %v1732_v41, %v763_v52  ;;  %v1888_v8 = vmax.f32 %v2827_v19, 0.0 }
 0x29b   :  { %v1890_v27 = vmax.f32 %v2828_v23, 0.0 }
 0x29c   :  { %v1891_v11 = vmax.f32 %v2829_v54, 0.0 }
 0x29d   :  { %v1896_v37 = vpack.c.bf16 %v1890_v27, %v1887_v50 }
 0x29e   :  { %v1897_v7 = vpack.c.bf16 %v1891_v11, %v1888_v8  ;;  %v1736_v63 = vpop.f32.mrb[4].mxu0 }
 0x29f   :  { %v2830_v17 = vadd.f32 %v1736_v63, %v759_v49  ;;  %v1738_v6 = vpop.f32.mrb[5].mxu0 }
 0x2a0   :  { %v2831_v10 = vadd.f32 %v1738_v6, %v763_v52  ;;  %v1740_v12 = vpop.f32.mrb[6].mxu0  ;;  %2133 = vmatprep.mubr.bf16.mxu1 %v1897_v7  ;;  %v2577_v7 = vld [vmem:[%s3658_s7] ss:$0 sm:$0xff] }
 0x2a1   :  { %v1741_v0 = vpop.f32.mrb[7].mxu0  ;;  %2134 = vmatmul.mubr.bf16.vlgmr.msra.gmra.mrb[24].mxu1 %v1896_v37  ;;  %v1893_v2 = vmax.f32 %v2830_v17, 0.0 }
 0x2a2   :  { %v1894_v42 = vmax.f32 %v2831_v10, 0.0  ;;  %2787 = vmatpush3.bf16.msra.mxu1 %v3626_v21  ;;  %v3089_v21 = vld [vmem:[#allocation10 + $0xb0] sm:$0xff]  }
 0x2a3   :  { %2788 = vmatprep.subr.bf16.mxu1 %v3084_v57  ;;  %v1899_v5 = vpack.c.bf16 %v1893_v2, %v1893_v2 }
 0x2a4   :  { %v1900_v39 = vpack.c.bf16 %v1894_v42, %v1894_v42 }
 0x2a6   :  { %2789 = vmatpush3.bf16.msra.mxu1 %v3084_v57  ;;  %2141 = vmatprep.mubr.bf16.mxu1 %v1900_v39 }
 0x2a7   :  { %2790 = vmatprep.subr.bf16.mxu1 %v3085_v38 }
 0x2a9   :  { %2142 = vmatmul.mubr.bf16.gmra.mrb[28].mxu1 %v1899_v5 }
 0x2aa   :  { %2791 = vmatpush3.bf16.msra.mxu1 %v3085_v38  ;;  %2802 = vmatprep.mubr.bf16.mxu1 %v1898_v56 }
 0x2ab   :  { %2792 = vmatprep.subr.bf16.mxu1 %v3086_v15 }
 0x2ae   :  { %2793 = vmatpush3.bf16.msra.mxu1 %v3086_v15 }
 0x2af   :  { %2794 = vmatprep.subr.bf16.mxu1 %v3087_v36 }
 0x2b2   :  { %2795 = vmatpush3.bf16.msra.mxu1 %v3087_v36 }
 0x2b3   :  { %2796 = vmatprep.subr.bf16.mxu1 %v3088_v62 }
 0x2b6   :  { %2797 = vmatpush3.bf16.msra.mxu1 %v3088_v62 }
 0x2b7   :  { %2798 = vmatprep.subr.bf16.mxu1 %v3089_v21 }
 0x2ba   :  { %2799 = vmatpush3.bf16.msra.mxu1 %v3089_v21 }
 0x2bb   :  { %2800 = vmatprep.subr.bf16.mxu1 %v3090_v60 }
 0x2be   :  { %2801 = vmatpush3.bf16.msra.mxu1 %v3090_v60 }
 0x2bf   :  { %2806 = vmatprep.subr.bf16.mxu1 %v3091_v28 }
 0x2c1   :  { %2803 = vmatmul.mubr.bf16.vlgmr.msra.gmra.mrb[32].mxu1 %v1901_v47 }
 0x2c2   :  { %2807 = vmatpush3.bf16.msra.mxu1 %v3091_v28 }
 0x2c3   :  { %2808 = vmatprep.subr.bf16.mxu1 %v3092_v33 }
 0x2c6   :  { %2809 = vmatpush3.bf16.msra.mxu1 %v3092_v33 }
 0x2c7   :  { %2810 = vmatprep.subr.bf16.mxu1 %v3093_v31 }
 0x2ca   :  { %2811 = vmatpush3.bf16.msra.mxu1 %v3093_v31 }
 0x2cb   :  { %2812 = vmatprep.subr.bf16.mxu1 %v3094_v22 }
 0x2ce   :  { %2813 = vmatpush3.bf16.msra.mxu1 %v3094_v22 }
 0x2cf   :  { %2814 = vmatprep.subr.bf16.mxu1 %v3095_v32 }
 0x2d2   :  { %2815 = vmatpush3.bf16.msra.mxu1 %v3095_v32 }
 0x2d3   :  { %2816 = vmatprep.subr.bf16.mxu1 %v3096_v44 }
 0x2d6   :  { %2817 = vmatpush3.bf16.msra.mxu1 %v3096_v44 }
 0x2d7   :  { %2818 = vmatprep.subr.bf16.mxu1 %v3097_v3 }
 0x2da   :  { %2819 = vmatpush3.bf16.msra.mxu1 %v3097_v3 }
 0x2db   :  { %2820 = vmatprep.subr.bf16.mxu1 %v3098_v18 }
 0x2de   :  { %2821 = vmatpush3.bf16.msra.mxu1 %v3098_v18 }
 0x374   :  { %v2754_v29 = vpop.f32.mrb[24].mxu1 }
 0x375   :  { %v2755_v24 = vpop.f32.mrb[25].mxu1 }
 0x376   :  { %v2756_v48 = vadd.f32 %v2755_v24, %v2754_v29  ;;  %v2757_v4 = vpop.f32.mrb[26].mxu1 }
 0x377   :  { %v2758_v1 = vpop.f32.mrb[27].mxu1 }
 0x378   :  { %v2759_v9 = vadd.f32 %v2758_v1, %v2757_v4  ;;  %v2136_v45 = vadd.f32 %v2756_v48, %v2549_v30 }
 0x37a   :  { %v2139_v35 = vadd.f32 %v2759_v9, %v2549_v30 }
 0x37c   :  { %v2760_v53 = vpop.f32.mrb[28].mxu1 }
 0x37d   :  { %v2761_v13 = vpop.f32.mrb[29].mxu1 }
 0x37e   :  { %v2762_v14 = vadd.f32 %v2761_v13, %v2760_v53  ;;  %v2763_v43 = vpop.f32.mrb[30].mxu1 }
 0x37f   :  { %v2764_v20 = vpop.f32.mrb[31].mxu1 }
 0x380   :  { %v2144_v25 = vadd.f32 %v2762_v14, %v2549_v30 }
 0x394   :  { %v2804_v16 = vpop.f32.mrb[32].mxu1 }
 0x395   :  { %v2192_v55 = vadd.f32 %v2804_v16, %v2144_v25  ;;  %v2183_v56 = vpop.f32.mrb[33].mxu1 }
 0x396   :  { %v2184_v58 = vadd.f32 %v2183_v56, %v2136_v45  ;;  %v2805_v34 = vpop.f32.mrb[34].mxu1 }
 0x397   :  { %v2576_v61 = vmul.f32 -1.442695, %v2192_v55  ;;  %v2186_v49 = vpop.f32.mrb[35].mxu1 }
 0x398   :  { %v2574_v52 = vmul.f32 -1.442695, %v2184_v58  ;;  %v2187_v51 = vadd.f32 %v2186_v49, %v2139_v35 }
 0x399   :  { %3141 = vpow2.f32 %v2576_v61 }
 0x39a   :  { %3143 = vpow2.f32 %v2574_v52  ;;  %v2575_v59 = vmul.f32 -1.442695, %v2187_v51 }
 0x39c   :  { %3145 = vpow2.f32 %v2575_v59 }
 0x3a3   :  { %v3142_v26 = vpop.eup %3141 }
 0x3a4   :  { %v3144_v19 = vpop.eup %3143  ;;  %v2208_v46 = vadd.f32 1.0, %v3142_v26 }
 0x3a5   :  { %v2206_v23 = vadd.f32 1.0, %v3144_v19 }
 0x3a6   :  { %v3146_v41 = vpop.eup %3145  ;;  %3147 = vrcp.f32 %v2208_v46 }
 0x3a7   :  { %v2207_v54 = vadd.f32 1.0, %v3146_v41  ;;  %3149 = vrcp.f32 %v2206_v23 }
 0x3a9   :  { %3151 = vrcp.f32 %v2207_v54 }
 0x3b0   :  { %v3148_v50 = vpop.eup %3147 }
 0x3b1   :  { %v3150_v27 = vpop.eup %3149  ;;  %v2216_v37 = vpack.c.bf16 %v3148_v50, %v3148_v50 }
 0x3b3   :  { %v3152_v8 = vpop.eup %3151 }
 0x3b4   :  { %v2215_v11 = vpack.c.bf16 %v3152_v8, %v3150_v27 }
 0x3b6   :  { %2822 = vmatprep.mubr.bf16.mxu1 %v2215_v11 }
 0x3b7   :  { %2823 = vmatmul.mubr.bf16.vlgmr.msra.gmra.mrb[36].mxu1 %v2216_v37 }
 0x48a   :  { %v2824_v63 = vpop.f32.mrb[36].mxu1 }
 0x48b   :  { %v2331_v17 = vadd.f32 %v2824_v63, %v2577_v7  ;;  %v2322_v6 = vpop.f32.mrb[37].mxu1 }
 0x48c   :  { %v2323_v57 = vadd.f32 %v2577_v7, %v2322_v6  ;;  %v2825_v10 = vpop.f32.mrb[38].mxu1 }
 0x48d   :  { %2338 = vst [vmem:[#allocation13 + $0x10] sm:$0xff] %v2331_v17  ;;  %v2325_v12 = vpop.f32.mrb[39].mxu1 }
 0x48e   :  { %2336 = vst [vmem:[#allocation13] sm:$0xff] %v2323_v57  ;;  %v2326_v0 = vadd.f32 %v2577_v7, %v2325_v12 }
 0x490   :  { %2337 = vst [vmem:[#allocation13 + $0x8] sm:$0xff] %v2326_v0 }
 0x491   :  { %3264 = shalt.err (!%p3261_p13)
}
 0x492   :  { %s3265_s4 = scalar_lea.hbm %s3659_s8, 384 }
 0x493   :  { %p3266_p0 = scmp.ne.s32.totalorder %s3659_s8, %s3265_s4  ;;  %p3269_p1 = scmp.lt.u32.totalorder %s3265_s4, %s3659_s8 }
 0x495   :  { %p3271_p2 = pnand %p3269_p1, %p3266_p0 }
 0x497   :  { %3274 = shalt.err (!%p3271_p2)
}
 0x498   :  { %s3295_s15 = smov 128   ;;  %s3296_s16 = smov 8  }
 0x499   :  { %2350 = dma.vmem_to_hbm [thread:$0]  %s2345_s11, 384, %s3659_s8, [#allocation5], %s3295_s15, %s3295_s15, %s3296_s16  }
 0x49a   :  { %3283 = dma.done.wait [#allocation5], 384  }
 0x49b   :  { %3284 = vsyncadd [#allocation5], 4294966912 }
 0x49c   :  { %2354 = vsyncpa [#allocation4], 1 }
 0x49d   :  { %2355 = vsyncpa [#allocation9], 1 }
 0x49e   :  { %2356 = vsyncpa [#allocation12], 1 }
 0x49f   :  { %2357 = vsyncpa [#allocation5], 1 }
 0x4a0   :  { %2358 = vsyncpa [#allocation6], 1 }

</bundles_post_ra>
